<compile_context>
chip_gen: v7x
topology: tpu7x:2x2x1
jax: 0.10.0
libtpu: 0.0.40
codegen_flags: <defaults>
</compile_context>

<pallas_src>
import functools
import math

import jax
import jax.numpy as jnp
import numpy as np
from jax.experimental import pallas as pl
from jax.experimental.pallas import tpu as pltpu

LANE = 128
_F32 = jnp.float32
_BF16 = jnp.bfloat16


def _round_up(v, m):
    return (v + m - 1) // m * m


def _pow2_floor(v):
    return 1 << (int(v).bit_length() - 1)


def _clamp_tile(t, n128):
    # Power-of-two tiles only (lcm of all tiles == max tile, so the dense N^2
    # adjacency pad never blows up), clamped to [128, n128].
    t = max(LANE, min(int(t), n128))
    return max(LANE, _pow2_floor(t))


def _compiler_params(sem, vmem_bytes):
    # Explicit scoped-VMEM limit: v5e defaults to 16 MiB which silently caps
    # large streamed tiles; cap below v6e physical, stay honest on v7x (64 MiB).
    vmem = int(max(32 << 20, min(int(vmem_bytes), 100 << 20)))
    return pltpu.CompilerParams(dimension_semantics=sem, vmem_limit_bytes=vmem)


# ---------------------------------------------------------------------------
# Shared MLP_SLE contribution:  (C-1) * (out - rowmean(out))
#   == (C-1) * (log_softmax(out) - rowmean(log_softmax(out)))   exactly.
# ---------------------------------------------------------------------------
def _sle_contribution(x, w1, b1, w2, b2, c):
    # [x | y] @ blockdiag(w1, v1) + [b1 | c1] -> relu -> @ [w2; v2] + (b2 + c2)
    h = jnp.maximum(jnp.dot(x, w1, preferred_element_type=jnp.float32) + b1, 0.0)
    out = jnp.dot(h, w2, preferred_element_type=jnp.float32) + b2
    # Pad class lanes of `out` are exactly zero (zero weight/bias columns), so
    # the lane-sum over c_pad equals the sum over the C real classes.
    mean = jnp.sum(out, axis=-1, keepdims=True) * (1.0 / c)
    return (c - 1.0) * (out - mean)


# ---------------------------------------------------------------------------
# Kernel 1 (hop 0): standalone MLP_SLE, results accumulated in-place (aliased)
# ---------------------------------------------------------------------------
def mlp_sle_kernel(xy_ref, w1_ref, b1_ref, w2_ref, b2_ref, res_in_ref, res_ref, *, c):
    res_ref[...] = res_in_ref[...] + _sle_contribution(
        xy_ref[...], w1_ref[...], b1_ref[...], w2_ref[...], b2_ref[...], c)


def mlp_sle(xy, w1p, b1p, w2p, b2p, results, c, *, tm):
    n, d_in = xy.shape
    h2 = w1p.shape[1]
    c_pad = w2p.shape[1]
    assert n % tm == 0
    vmem = (2 * (tm * d_in + 2 * tm * c_pad) * 4                     # rows + res in/out
            + 2 * (d_in * h2 + h2 * c_pad + 8 * h2 + 8 * c_pad) * 4  # resident weights
            + (4 << 20))
    return pl.pallas_call(
        functools.partial(mlp_sle_kernel, c=float(c)),
        out_shape=jax.ShapeDtypeStruct((n, c_pad), jnp.float32),
        grid_spec=pltpu.PrefetchScalarGridSpec(
            num_scalar_prefetch=0,
            grid=(n // tm,),
            in_specs=[
                pl.BlockSpec((tm, d_in), lambda i: (i, 0)),    # streamed node rows
                pl.BlockSpec((d_in, h2), lambda i: (0, 0)),    # resident packed weights
                pl.BlockSpec((1, h2), lambda i: (0, 0)),
                pl.BlockSpec((h2, c_pad), lambda i: (0, 0)),
                pl.BlockSpec((1, c_pad), lambda i: (0, 0)),
                pl.BlockSpec((tm, c_pad), lambda i: (i, 0)),   # running results (aliased)
            ],
            out_specs=pl.BlockSpec((tm, c_pad), lambda i: (i, 0)),
        ),
        input_output_aliases={5: 0},
        compiler_params=_compiler_params(("parallel",), vmem),
    )(xy, w1p, b1p, w2p, b2p, results)


# ---------------------------------------------------------------------------
# Kernel 2 (hops >= 1): fused propagation + MLP_SLE + results accumulation
#   slab_out = D^-1/2 * ( A @ xs )        with xs = bf16(D^-1/2 * slab_prev)
#   results += (C-1)*(MLP_SLE(slab_out) - rowmean)   [in the k==last finalize]
# ---------------------------------------------------------------------------
def prop_mlp_kernel(adj_ref, xs_ref, dm_ref, w1_ref, b1_ref, w2_ref, b2_ref,
                    res_in_ref, slab_ref, res_ref, *, c):
    @pl.when(pl.program_id(1) == 0)
    def _():
        slab_ref[...] = jnp.zeros_like(slab_ref)

    # bf16 x bf16 MXU matmul, f32 accumulation directly in the resident output
    # block (its index is independent of k -> no separate acc scratch needed).
    slab_ref[...] += jnp.dot(adj_ref[...], xs_ref[...],
                             preferred_element_type=jnp.float32)

    @pl.when(pl.program_id(1) == pl.num_programs(1) - 1)
    def _():
        slab = dm_ref[...] * slab_ref[...]             # D^-1/2 output-row scaling
        slab_ref[...] = slab
        res_ref[...] = res_in_ref[...] + _sle_contribution(
            slab, w1_ref[...], b1_ref[...], w2_ref[...], b2_ref[...], c)


def propagate_mlp(adj_bf16, xs_bf16, dm, w1p, b1p, w2p, b2p, results, c, *, tm, tk):
    n = adj_bf16.shape[0]
    d = xs_bf16.shape[1]
    h2 = w1p.shape[1]
    c_pad = w2p.shape[1]
    assert n % tm == 0 and n % tk == 0 and d % LANE == 0
    grid = (n // tm, n // tk)
    vmem = (2 * (tm * tk + tk * d) * 2                               # bf16 adj + slab streams
            + 2 * tm * LANE * 4                                      # dm column (lane padded)
            + 2 * 2 * tm * c_pad * 4                                 # results in + out
            + 2 * tm * d * 4                                         # slab accumulator/output
            + 2 * (d * h2 + h2 * c_pad + 8 * h2 + 8 * c_pad) * 4     # resident packed weights
            + (6 << 20))
    return pl.pallas_call(
        functools.partial(prop_mlp_kernel, c=float(c)),
        out_shape=(jax.ShapeDtypeStruct((n, d), jnp.float32),
                   jax.ShapeDtypeStruct((n, c_pad), jnp.float32)),
        grid_spec=pltpu.PrefetchScalarGridSpec(
            num_scalar_prefetch=0,
            grid=grid,
            in_specs=[
                pl.BlockSpec((tm, tk), lambda i, k: (i, k)),     # adj tile (dominant stream)
                pl.BlockSpec((tk, d), lambda i, k: (k, 0)),      # prescaled bf16 slab K-tile
                pl.BlockSpec((tm, 1), lambda i, k: (i, 0)),      # deg^-1/2 for output rows
                pl.BlockSpec((d, h2), lambda i, k: (0, 0)),      # resident packed weights
                pl.BlockSpec((1, h2), lambda i, k: (0, 0)),
                pl.BlockSpec((h2, c_pad), lambda i, k: (0, 0)),
                pl.BlockSpec((1, c_pad), lambda i, k: (0, 0)),
                pl.BlockSpec((tm, c_pad), lambda i, k: (i, 0)),  # running results (aliased)
            ],
            out_specs=[
                pl.BlockSpec((tm, d), lambda i, k: (i, 0)),      # propagated slab
                pl.BlockSpec((tm, c_pad), lambda i, k: (i, 0)),  # updated results
            ],
        ),
        input_output_aliases={7: 1},
        compiler_params=_compiler_params(("parallel", "arbitrary"), vmem),
    )(adj_bf16, xs_bf16, dm, w1p, b1p, w2p, b2p, results)


# ---------------------------------------------------------------------------
# Parameter packing: block-diagonal fusion of base MLP + label MLP.
# Hidden dim padded so 2*H_pad is a multiple of 256 (full MXU column width);
# all pad columns/rows are exactly zero, so gating and the rowmean identity
# stay bit-exact.  Hop 0 ("no label MLP") zeroes the v2/c2 blocks.
# ---------------------------------------------------------------------------
def pack_params(params, f, c, h, use_label_mlp):
    d_in = _round_up(f + c, LANE)
    c_pad = _round_up(c, LANE)
    h_pad = _round_up(h, LANE)
    h2 = 2 * h_pad

    w1p = jnp.zeros((d_in, h2), _F32)
    w1p = w1p.at[:f, :h].set(params["w1"])
    w1p = w1p.at[f:f + c, h_pad:h_pad + h].set(params["v1"])
    b1p = jnp.zeros((1, h2), _F32)
    b1p = b1p.at[:, :h].set(params["b1"])
    b1p = b1p.at[:, h_pad:h_pad + h].set(params["c1"])

    w2p = jnp.zeros((h2, c_pad), _F32)
    w2p = w2p.at[:h, :c].set(params["w2"])
    b2p = jnp.zeros((1, c_pad), _F32)
    b2p = b2p.at[:, :c].set(params["b2"])
    if use_label_mlp:
        w2p = w2p.at[h_pad:h_pad + h, :c].set(params["v2"])
        b2p = b2p.at[:, :c].add(params["c2"])
    return w1p, b1p, w2p, b2p


# ---------------------------------------------------------------------------
# EnGCN forward (ensembled weak-learner inference over propagated features)
# ---------------------------------------------------------------------------
def engcn_forward(x, y_emb, adj, deg_inv_sqrt, params, num_layers,
                  *, tm_prop=512, tk_prop=1024, tm_mlp=1024):
    n, f = x.shape
    c = y_emb.shape[1]
    h = params["w1"].shape[1]

    n128 = _round_up(n, LANE)
    tm_prop = _clamp_tile(tm_prop, n128)
    tk_prop = _clamp_tile(tk_prop, n128)
    tm_mlp = _clamp_tile(tm_mlp, n128)
    n_pad = _round_up(n, max(tm_prop, tk_prop, tm_mlp))   # pow2 tiles => lcm == max

    d_in = _round_up(f + c, LANE)
    c_pad = _round_up(c, LANE)

    # Graph prep (done once per forward; hoist outside if calling repeatedly).
    # adj is exactly 0/1 (+ self loops) so the bf16 cast is lossless.
    adj_p = jnp.zeros((n_pad, n_pad), _BF16).at[:n, :n].set(adj.astype(_BF16))
    dis = jnp.zeros((n_pad, 1), _F32).at[:n, 0].set(deg_inv_sqrt.astype(_F32))

    # Node-major slab [x | y_emb | 0]: one adjacency stream per hop propagates
    # both the features and the label embedding.
    slab = jnp.zeros((n_pad, d_in), _F32)
    slab = slab.at[:n, :f].set(x).at[:n, f:f + c].set(y_emb)

    packed_hop0 = pack_params(params, f, c, h, use_label_mlp=False)
    packed_full = pack_params(params, f, c, h, use_label_mlp=True)

    results = jnp.zeros((n_pad, c_pad), _F32)     # lane-dense accumulator (aliased)

    # hop 0: MLP_SLE on the un-propagated slab (label-MLP blocks zeroed).
    results = mlp_sle(slab, *packed_hop0, results, c, tm=tm_mlp)

    # hops 1..L-1: fused propagate + MLP_SLE.  The D^-1/2 column prescale is
    # folded into the (tiny) wrapper-side bf16 cast of the propagate operand,
    # so the kernel's inner (i,k) step is a pure bf16 matmul-accumulate.
    for _ in range(1, num_layers):
        xs = (slab * dis).astype(_BF16)
        slab, results = propagate_mlp(adj_p, xs, dis, *packed_full, results, c,
                                      tm=tm_prop, tk=tk_prop)
    return results[:n, :c]


# ---------------------------------------------------------------------------
# Pure-JAX reference (original, un-fused f32 semantics incl. log_softmax)
# ---------------------------------------------------------------------------
def ref_forward(x, y_emb, adj, deg_inv_sqrt, params, num_layers):
    adj_n = deg_inv_sqrt[:, None] * adj * deg_inv_sqrt[None, :]
    c = params["w2"].shape[1]
    results = jnp.zeros((x.shape[0], c), jnp.float32)
    for hop in range(num_layers):
        h = jnp.maximum(x @ params["w1"] + params["b1"], 0.0)
        out = h @ params["w2"] + params["b2"]
        if hop > 0:
            hl = jnp.maximum(y_emb @ params["v1"] + params["c1"], 0.0)
            out = out + (hl @ params["v2"] + params["c2"])
        logp = jax.nn.log_softmax(out, axis=1)
        results = results + (c - 1) * (logp - jnp.mean(logp, axis=1, keepdims=True))
        x = adj_n @ x
        y_emb = adj_n @ y_emb
    return results


if __name__ == "__main__":
    # Small, deterministic synthetic problem; tiles of 128 force multi-step
    # grids (grid=(2,2) for the fused kernel, (2,) for hop 0) so the pl.when
    # init/finalize, k-accumulation and aliased-results paths are exercised.
    N, F, H, C, L = 256, 96, 64, 16, 3

    key = jax.random.PRNGKey(0)
    k_adj, k_x, k_y, k1, k2, k3, k4 = jax.random.split(key, 7)

    # random symmetric 0/1 adjacency with self loops
    a = (jax.random.uniform(k_adj, (N, N)) < 0.05).astype(jnp.float32)
    adj = jnp.maximum(a, a.T) + jnp.eye(N, dtype=jnp.float32)
    deg = adj.sum(axis=1)
    deg_inv_sqrt = jnp.where(deg > 0, deg ** -0.5, 0.0).astype(jnp.float32)

    x = jax.random.normal(k_x, (N, F), jnp.float32)
    y_int = jax.random.randint(k_y, (N,), 0, C)
    y_emb = jax.nn.one_hot(y_int, C, dtype=jnp.float32)     # initial soft labels

    # deterministic MLP_SLE parameters (base MLP: F->H->C, label MLP: C->H->C)
    params = {
        "w1": 0.1 * jax.random.normal(k1, (F, H), jnp.float32),
        "b1": 0.05 * jnp.ones((1, H), jnp.float32),
        "w2": 0.1 * jax.random.normal(k2, (H, C), jnp.float32),
        "b2": 0.02 * jnp.ones((1, C), jnp.float32),
        "v1": 0.1 * jax.random.normal(k3, (C, H), jnp.float32),
        "c1": 0.05 * jnp.ones((1, H), jnp.float32),
        "v2": 0.1 * jax.random.normal(k4, (H, C), jnp.float32),
        "c2": 0.02 * jnp.ones((1, C), jnp.float32),
    }

    fwd = jax.jit(functools.partial(engcn_forward, num_layers=L,
                                    tm_prop=128, tk_prop=128, tm_mlp=128))
    results = jax.block_until_ready(fwd(x, y_emb, adj, deg_inv_sqrt, params))

    ref = jax.block_until_ready(ref_forward(x, y_emb, adj, deg_inv_sqrt, params, L))
    # Tolerance widened per feedback: the propagate operand is rounded to bf16
    # (adjacency itself stays exact); accumulation and the MLP remain f32.
    np.testing.assert_allclose(np.asarray(results), np.asarray(ref),
                               rtol=2e-2, atol=1e-1)

    print("KERNEL_OK")
</pallas_src>

<mosaic_0001>
module attributes {stable_mosaic.version = 11 : i64} {
  func.func @mlp_sle_kernel(%arg0: i32, %arg1: memref<128x128xf32, #tpu.memory_space<vmem>>, %arg2: memref<128x256xf32, #tpu.memory_space<vmem>>, %arg3: memref<1x256xf32, #tpu.memory_space<vmem>>, %arg4: memref<256x128xf32, #tpu.memory_space<vmem>>, %arg5: memref<1x128xf32, #tpu.memory_space<vmem>>, %arg6: memref<128x128xf32, #tpu.memory_space<vmem>>, %arg7: memref<128x128xf32, #tpu.memory_space<vmem>>) attributes {dimension_semantics = [#tpu.dimension_semantics<parallel>], iteration_bounds = array<i64: 2>, scalar_prefetch = 0 : i64, scratch_operands = 0 : i64, tpu.core_type = #tpu.core_type<tc>, window_params = [{transform_indices = @transform_0, window_bounds = array<i64: 128, 128>}, {pipeline_mode = #tpu.pipeline_mode<synchronous>, transform_indices = @transform_1, window_bounds = array<i64: 128, 256>}, {pipeline_mode = #tpu.pipeline_mode<synchronous>, transform_indices = @transform_2, window_bounds = array<i64: 1, 256>}, {pipeline_mode = #tpu.pipeline_mode<synchronous>, transform_indices = @transform_3, window_bounds = array<i64: 256, 128>}, {pipeline_mode = #tpu.pipeline_mode<synchronous>, transform_indices = @transform_4, window_bounds = array<i64: 1, 128>}, {transform_indices = @transform_5, window_bounds = array<i64: 128, 128>}, {transform_indices = @transform_6, window_bounds = array<i64: 128, 128>}]} {
    %c0 = arith.constant 0 : index
    %c0_0 = arith.constant 0 : index
    %0 = vector.load %arg6[%c0, %c0_0] : memref<128x128xf32, #tpu.memory_space<vmem>>, vector<128x128xf32>
    %c0_1 = arith.constant 0 : index
    %c0_2 = arith.constant 0 : index
    %1 = vector.load %arg1[%c0_1, %c0_2] : memref<128x128xf32, #tpu.memory_space<vmem>>, vector<128x128xf32>
    %c0_3 = arith.constant 0 : index
    %c0_4 = arith.constant 0 : index
    %2 = vector.load %arg2[%c0_3, %c0_4] : memref<128x256xf32, #tpu.memory_space<vmem>>, vector<128x256xf32>
    %c0_5 = arith.constant 0 : index
    %c0_6 = arith.constant 0 : index
    %3 = vector.load %arg3[%c0_5, %c0_6] : memref<1x256xf32, #tpu.memory_space<vmem>>, vector<1x256xf32>
    %c0_7 = arith.constant 0 : index
    %c0_8 = arith.constant 0 : index
    %4 = vector.load %arg4[%c0_7, %c0_8] : memref<256x128xf32, #tpu.memory_space<vmem>>, vector<256x128xf32>
    %c0_9 = arith.constant 0 : index
    %c0_10 = arith.constant 0 : index
    %5 = vector.load %arg5[%c0_9, %c0_10] : memref<1x128xf32, #tpu.memory_space<vmem>>, vector<1x128xf32>
    %cst = arith.constant dense<0.000000e+00> : vector<128x256xf32>
    %6 = tpu.matmul %1, %2, %cst {dimension_numbers = #tpu.dot_dimension_numbers<[1], [0], [0], [1], [0, 0, 1, 1], [], []>} : vector<128x128xf32>, vector<128x256xf32>, vector<128x256xf32> -> vector<128x256xf32>
    %7 = vector.broadcast %3 : vector<1x256xf32> to vector<128x256xf32>
    %8 = arith.addf %6, %7 : vector<128x256xf32>
    %cst_11 = arith.constant 0.000000e+00 : f32
    %9 = vector.broadcast %cst_11 : f32 to vector<128x256xf32>
    %10 = arith.maximumf %8, %9 : vector<128x256xf32>
    %cst_12 = arith.constant dense<0.000000e+00> : vector<128x128xf32>
    %11 = tpu.matmul %10, %4, %cst_12 {dimension_numbers = #tpu.dot_dimension_numbers<[1], [0], [0], [1], [0, 0, 1, 1], [], []>} : vector<128x256xf32>, vector<256x128xf32>, vector<128x128xf32> -> vector<128x128xf32>
    %12 = vector.broadcast %5 : vector<1x128xf32> to vector<128x128xf32>
    %13 = arith.addf %11, %12 : vector<128x128xf32>
    %cst_13 = arith.constant dense<0.000000e+00> : vector<128xf32>
    %14 = vector.multi_reduction <add>, %13, %cst_13 [1] : vector<128x128xf32> to vector<128xf32>
    %15 = vector.shape_cast %14 : vector<128xf32> to vector<128x1xf32>
    %cst_14 = arith.constant 6.250000e-02 : f32
    %16 = vector.broadcast %cst_14 : f32 to vector<128x1xf32>
    %17 = arith.mulf %15, %16 : vector<128x1xf32>
    %18 = vector.broadcast %17 : vector<128x1xf32> to vector<128x128xf32>
    %19 = arith.subf %13, %18 : vector<128x128xf32>
    %cst_15 = arith.constant 1.500000e+01 : f32
    %20 = vector.broadcast %cst_15 : f32 to vector<128x128xf32>
    %21 = arith.mulf %20, %19 : vector<128x128xf32>
    %22 = arith.addf %0, %21 : vector<128x128xf32>
    %c0_16 = arith.constant 0 : index
    %c0_17 = arith.constant 0 : index
    %23 = vector.load %arg7[%c0_16, %c0_17] : memref<128x128xf32, #tpu.memory_space<vmem>>, vector<128x128xf32>
    tpu.vector_store %arg7[%c0_16, %c0_17], %22 {strides = array<i32>} : memref<128x128xf32, #tpu.memory_space<vmem>>, vector<128x128xf32>,
    return
  }
  func.func @transform_0(%arg0: i32) -> (i32, i32) {
    %c0_i32 = arith.constant 0 : i32
    %c0_i32_0 = arith.constant 0 : i32
    return %arg0, %c0_i32 : i32, i32
  }
  func.func @transform_1(%arg0: i32) -> (i32, i32) {
    %c0_i32 = arith.constant 0 : i32
    %c0_i32_0 = arith.constant 0 : i32
    %c0_i32_1 = arith.constant 0 : i32
    return %c0_i32, %c0_i32_0 : i32, i32
  }
  func.func @transform_2(%arg0: i32) -> (i32, i32) {
    %c0_i32 = arith.constant 0 : i32
    %c0_i32_0 = arith.constant 0 : i32
    %c0_i32_1 = arith.constant 0 : i32
    return %c0_i32, %c0_i32_0 : i32, i32
  }
  func.func @transform_3(%arg0: i32) -> (i32, i32) {
    %c0_i32 = arith.constant 0 : i32
    %c0_i32_0 = arith.constant 0 : i32
    %c0_i32_1 = arith.constant 0 : i32
    return %c0_i32, %c0_i32_0 : i32, i32
  }
  func.func @transform_4(%arg0: i32) -> (i32, i32) {
    %c0_i32 = arith.constant 0 : i32
    %c0_i32_0 = arith.constant 0 : i32
    %c0_i32_1 = arith.constant 0 : i32
    return %c0_i32, %c0_i32_0 : i32, i32
  }
  func.func @transform_5(%arg0: i32) -> (i32, i32) {
    %c0_i32 = arith.constant 0 : i32
    %c0_i32_0 = arith.constant 0 : i32
    return %arg0, %c0_i32 : i32, i32
  }
  func.func @transform_6(%arg0: i32) -> (i32, i32) {
    %c0_i32 = arith.constant 0 : i32
    %c0_i32_0 = arith.constant 0 : i32
    return %arg0, %c0_i32 : i32, i32
  }
}

module attributes {stable_mosaic.version = 11 : i64} {
  func.func @prop_mlp_kernel(%arg0: i32, %arg1: i32, %arg2: memref<128x128xbf16, #tpu.memory_space<vmem>>, %arg3: memref<128x128xbf16, #tpu.memory_space<vmem>>, %arg4: memref<128x1xf32, #tpu.memory_space<vmem>>, %arg5: memref<128x256xf32, #tpu.memory_space<vmem>>, %arg6: memref<1x256xf32, #tpu.memory_space<vmem>>, %arg7: memref<256x128xf32, #tpu.memory_space<vmem>>, %arg8: memref<1x128xf32, #tpu.memory_space<vmem>>, %arg9: memref<128x128xf32, #tpu.memory_space<vmem>>, %arg10: memref<128x128xf32, #tpu.memory_space<vmem>>, %arg11: memref<128x128xf32, #tpu.memory_space<vmem>>) attributes {dimension_semantics = [#tpu.dimension_semantics<parallel>, #tpu.dimension_semantics<arbitrary>], iteration_bounds = array<i64: 2, 2>, scalar_prefetch = 0 : i64, scratch_operands = 0 : i64, tpu.core_type = #tpu.core_type<tc>, window_params = [{transform_indices = @transform_0, window_bounds = array<i64: 128, 128>}, {transform_indices = @transform_1, window_bounds = array<i64: 128, 128>}, {transform_indices = @transform_2, window_bounds = array<i64: 128, 1>}, {pipeline_mode = #tpu.pipeline_mode<synchronous>, transform_indices = @transform_3, window_bounds = array<i64: 128, 256>}, {pipeline_mode = #tpu.pipeline_mode<synchronous>, transform_indices = @transform_4, window_bounds = array<i64: 1, 256>}, {pipeline_mode = #tpu.pipeline_mode<synchronous>, transform_indices = @transform_5, window_bounds = array<i64: 256, 128>}, {pipeline_mode = #tpu.pipeline_mode<synchronous>, transform_indices = @transform_6, window_bounds = array<i64: 1, 128>}, {transform_indices = @transform_7, window_bounds = array<i64: 128, 128>}, {transform_indices = @transform_8, window_bounds = array<i64: 128, 128>}, {transform_indices = @transform_9, window_bounds = array<i64: 128, 128>}]} {
    %c0_i32 = arith.constant 0 : i32
    %0 = arith.cmpi eq, %arg1, %c0_i32 : i32
    %1 = arith.extui %0 : i1 to i32
    %c0_i32_0 = arith.constant 0 : i32
    %2 = arith.cmpi ne, %1, %c0_i32_0 : i32
    scf.if %2 {
      %cst_9 = arith.constant 0.000000e+00 : f32
      %12 = vector.broadcast %cst_9 : f32 to vector<128x128xf32>
      %c0_10 = arith.constant 0 : index
      %c0_11 = arith.constant 0 : index
      %13 = vector.load %arg10[%c0_10, %c0_11] : memref<128x128xf32, #tpu.memory_space<vmem>>, vector<128x128xf32>
      tpu.vector_store %arg10[%c0_10, %c0_11], %12 {strides = array<i32>} : memref<128x128xf32, #tpu.memory_space<vmem>>, vector<128x128xf32>,
    } else {
    }
    %c0 = arith.constant 0 : index
    %c0_1 = arith.constant 0 : index
    %3 = vector.load %arg10[%c0, %c0_1] : memref<128x128xf32, #tpu.memory_space<vmem>>, vector<128x128xf32>
    %c0_2 = arith.constant 0 : index
    %c0_3 = arith.constant 0 : index
    %4 = vector.load %arg2[%c0_2, %c0_3] : memref<128x128xbf16, #tpu.memory_space<vmem>>, vector<128x128xbf16>
    %c0_4 = arith.constant 0 : index
    %c0_5 = arith.constant 0 : index
    %5 = vector.load %arg3[%c0_4, %c0_5] : memref<128x128xbf16, #tpu.memory_space<vmem>>, vector<128x128xbf16>
    %cst = arith.constant dense<0.000000e+00> : vector<128x128xf32>
    %6 = tpu.matmul %4, %5, %cst {dimension_numbers = #tpu.dot_dimension_numbers<[1], [0], [0], [1], [0, 0, 1, 1], [], []>} : vector<128x128xbf16>, vector<128x128xbf16>, vector<128x128xf32> -> vector<128x128xf32>
    %7 = arith.addf %3, %6 : vector<128x128xf32>
    %c0_6 = arith.constant 0 : index
    %c0_7 = arith.constant 0 : index
    %8 = vector.load %arg10[%c0_6, %c0_7] : memref<128x128xf32, #tpu.memory_space<vmem>>, vector<128x128xf32>
    tpu.vector_store %arg10[%c0_6, %c0_7], %7 {strides = array<i32>} : memref<128x128xf32, #tpu.memory_space<vmem>>, vector<128x128xf32>,
    %c1_i32 = arith.constant 1 : i32
    %9 = arith.cmpi eq, %arg1, %c1_i32 : i32
    %10 = arith.extui %9 : i1 to i32
    %c0_i32_8 = arith.constant 0 : i32
    %11 = arith.cmpi ne, %10, %c0_i32_8 : i32
    scf.if %11 {
      %c0_9 = arith.constant 0 : index
      %c0_10 = arith.constant 0 : index
      %12 = vector.load %arg4[%c0_9, %c0_10] : memref<128x1xf32, #tpu.memory_space<vmem>>, vector<128x1xf32>
      %c0_11 = arith.constant 0 : index
      %c0_12 = arith.constant 0 : index
      %13 = vector.load %arg10[%c0_11, %c0_12] : memref<128x128xf32, #tpu.memory_space<vmem>>, vector<128x128xf32>
      %14 = vector.broadcast %12 : vector<128x1xf32> to vector<128x128xf32>
      %15 = arith.mulf %14, %13 : vector<128x128xf32>
      %c0_13 = arith.constant 0 : index
      %c0_14 = arith.constant 0 : index
      %16 = vector.load %arg10[%c0_13, %c0_14] : memref<128x128xf32, #tpu.memory_space<vmem>>, vector<128x128xf32>
      tpu.vector_store %arg10[%c0_13, %c0_14], %15 {strides = array<i32>} : memref<128x128xf32, #tpu.memory_space<vmem>>, vector<128x128xf32>,
      %c0_15 = arith.constant 0 : index
      %c0_16 = arith.constant 0 : index
      %17 = vector.load %arg9[%c0_15, %c0_16] : memref<128x128xf32, #tpu.memory_space<vmem>>, vector<128x128xf32>
      %c0_17 = arith.constant 0 : index
      %c0_18 = arith.constant 0 : index
      %18 = vector.load %arg5[%c0_17, %c0_18] : memref<128x256xf32, #tpu.memory_space<vmem>>, vector<128x256xf32>
      %c0_19 = arith.constant 0 : index
      %c0_20 = arith.constant 0 : index
      %19 = vector.load %arg6[%c0_19, %c0_20] : memref<1x256xf32, #tpu.memory_space<vmem>>, vector<1x256xf32>
      %c0_21 = arith.constant 0 : index
      %c0_22 = arith.constant 0 : index
      %20 = vector.load %arg7[%c0_21, %c0_22] : memref<256x128xf32, #tpu.memory_space<vmem>>, vector<256x128xf32>
      %c0_23 = arith.constant 0 : index
      %c0_24 = arith.constant 0 : index
      %21 = vector.load %arg8[%c0_23, %c0_24] : memref<1x128xf32, #tpu.memory_space<vmem>>, vector<1x128xf32>
      %cst_25 = arith.constant dense<0.000000e+00> : vector<128x256xf32>
      %22 = tpu.matmul %15, %18, %cst_25 {dimension_numbers = #tpu.dot_dimension_numbers<[1], [0], [0], [1], [0, 0, 1, 1], [], []>} : vector<128x128xf32>, vector<128x256xf32>, vector<128x256xf32> -> vector<128x256xf32>
      %23 = vector.broadcast %19 : vector<1x256xf32> to vector<128x256xf32>
      %24 = arith.addf %22, %23 : vector<128x256xf32>
      %cst_26 = arith.constant 0.000000e+00 : f32
      %25 = vector.broadcast %cst_26 : f32 to vector<128x256xf32>
      %26 = arith.maximumf %24, %25 : vector<128x256xf32>
      %cst_27 = arith.constant dense<0.000000e+00> : vector<128x128xf32>
      %27 = tpu.matmul %26, %20, %cst_27 {dimension_numbers = #tpu.dot_dimension_numbers<[1], [0], [0], [1], [0, 0, 1, 1], [], []>} : vector<128x256xf32>, vector<256x128xf32>, vector<128x128xf32> -> vector<128x128xf32>
      %28 = vector.broadcast %21 : vector<1x128xf32> to vector<128x128xf32>
      %29 = arith.addf %27, %28 : vector<128x128xf32>
      %cst_28 = arith.constant dense<0.000000e+00> : vector<128xf32>
      %30 = vector.multi_reduction <add>, %29, %cst_28 [1] : vector<128x128xf32> to vector<128xf32>
      %31 = vector.shape_cast %30 : vector<128xf32> to vector<128x1xf32>
      %cst_29 = arith.constant 6.250000e-02 : f32
      %32 = vector.broadcast %cst_29 : f32 to vector<128x1xf32>
      %33 = arith.mulf %31, %32 : vector<128x1xf32>
      %34 = vector.broadcast %33 : vector<128x1xf32> to vector<128x128xf32>
      %35 = arith.subf %29, %34 : vector<128x128xf32>
      %cst_30 = arith.constant 1.500000e+01 : f32
      %36 = vector.broadcast %cst_30 : f32 to vector<128x128xf32>
      %37 = arith.mulf %36, %35 : vector<128x128xf32>
      %38 = arith.addf %17, %37 : vector<128x128xf32>
      %c0_31 = arith.constant 0 : index
      %c0_32 = arith.constant 0 : index
      %39 = vector.load %arg11[%c0_31, %c0_32] : memref<128x128xf32, #tpu.memory_space<vmem>>, vector<128x128xf32>
      tpu.vector_store %arg11[%c0_31, %c0_32], %38 {strides = array<i32>} : memref<128x128xf32, #tpu.memory_space<vmem>>, vector<128x128xf32>,
    } else {
    }
    return
  }
  func.func @transform_0(%arg0: i32, %arg1: i32) -> (i32, i32) {
    %c0_i32 = arith.constant 0 : i32
    return %arg0, %arg1 : i32, i32
  }
  func.func @transform_1(%arg0: i32, %arg1: i32) -> (i32, i32) {
    %c0_i32 = arith.constant 0 : i32
    %c0_i32_0 = arith.constant 0 : i32
    return %arg1, %c0_i32 : i32, i32
  }
  func.func @transform_2(%arg0: i32, %arg1: i32) -> (i32, i32) {
    %c0_i32 = arith.constant 0 : i32
    %c0_i32_0 = arith.constant 0 : i32
    return %arg0, %c0_i32 : i32, i32
  }
  func.func @transform_3(%arg0: i32, %arg1: i32) -> (i32, i32) {
    %c0_i32 = arith.constant 0 : i32
    %c0_i32_0 = arith.constant 0 : i32
    %c0_i32_1 = arith.constant 0 : i32
    return %c0_i32, %c0_i32_0 : i32, i32
  }
  func.func @transform_4(%arg0: i32, %arg1: i32) -> (i32, i32) {
    %c0_i32 = arith.constant 0 : i32
    %c0_i32_0 = arith.constant 0 : i32
    %c0_i32_1 = arith.constant 0 : i32
    return %c0_i32, %c0_i32_0 : i32, i32
  }
  func.func @transform_5(%arg0: i32, %arg1: i32) -> (i32, i32) {
    %c0_i32 = arith.constant 0 : i32
    %c0_i32_0 = arith.constant 0 : i32
    %c0_i32_1 = arith.constant 0 : i32
    return %c0_i32, %c0_i32_0 : i32, i32
  }
  func.func @transform_6(%arg0: i32, %arg1: i32) -> (i32, i32) {
    %c0_i32 = arith.constant 0 : i32
    %c0_i32_0 = arith.constant 0 : i32
    %c0_i32_1 = arith.constant 0 : i32
    return %c0_i32, %c0_i32_0 : i32, i32
  }
  func.func @transform_7(%arg0: i32, %arg1: i32) -> (i32, i32) {
    %c0_i32 = arith.constant 0 : i32
    %c0_i32_0 = arith.constant 0 : i32
    return %arg0, %c0_i32 : i32, i32
  }
  func.func @transform_8(%arg0: i32, %arg1: i32) -> (i32, i32) {
    %c0_i32 = arith.constant 0 : i32
    %c0_i32_0 = arith.constant 0 : i32
    return %arg0, %c0_i32 : i32, i32
  }
  func.func @transform_9(%arg0: i32, %arg1: i32) -> (i32, i32) {
    %c0_i32 = arith.constant 0 : i32
    %c0_i32_0 = arith.constant 0 : i32
    return %arg0, %c0_i32 : i32, i32
  }
}

module attributes {stable_mosaic.version = 11 : i64} {
  func.func @prop_mlp_kernel(%arg0: i32, %arg1: i32, %arg2: memref<128x128xbf16, #tpu.memory_space<vmem>>, %arg3: memref<128x128xbf16, #tpu.memory_space<vmem>>, %arg4: memref<128x1xf32, #tpu.memory_space<vmem>>, %arg5: memref<128x256xf32, #tpu.memory_space<vmem>>, %arg6: memref<1x256xf32, #tpu.memory_space<vmem>>, %arg7: memref<256x128xf32, #tpu.memory_space<vmem>>, %arg8: memref<1x128xf32, #tpu.memory_space<vmem>>, %arg9: memref<128x128xf32, #tpu.memory_space<vmem>>, %arg10: memref<128x128xf32, #tpu.memory_space<vmem>>, %arg11: memref<128x128xf32, #tpu.memory_space<vmem>>) attributes {dimension_semantics = [#tpu.dimension_semantics<parallel>, #tpu.dimension_semantics<arbitrary>], iteration_bounds = array<i64: 2, 2>, scalar_prefetch = 0 : i64, scratch_operands = 0 : i64, tpu.core_type = #tpu.core_type<tc>, window_params = [{transform_indices = @transform_0, window_bounds = array<i64: 128, 128>}, {transform_indices = @transform_1, window_bounds = array<i64: 128, 128>}, {transform_indices = @transform_2, window_bounds = array<i64: 128, 1>}, {pipeline_mode = #tpu.pipeline_mode<synchronous>, transform_indices = @transform_3, window_bounds = array<i64: 128, 256>}, {pipeline_mode = #tpu.pipeline_mode<synchronous>, transform_indices = @transform_4, window_bounds = array<i64: 1, 256>}, {pipeline_mode = #tpu.pipeline_mode<synchronous>, transform_indices = @transform_5, window_bounds = array<i64: 256, 128>}, {pipeline_mode = #tpu.pipeline_mode<synchronous>, transform_indices = @transform_6, window_bounds = array<i64: 1, 128>}, {transform_indices = @transform_7, window_bounds = array<i64: 128, 128>}, {transform_indices = @transform_8, window_bounds = array<i64: 128, 128>}, {transform_indices = @transform_9, window_bounds = array<i64: 128, 128>}]} {
    %c0_i32 = arith.constant 0 : i32
    %0 = arith.cmpi eq, %arg1, %c0_i32 : i32
    %1 = arith.extui %0 : i1 to i32
    %c0_i32_0 = arith.constant 0 : i32
    %2 = arith.cmpi ne, %1, %c0_i32_0 : i32
    scf.if %2 {
      %cst_9 = arith.constant 0.000000e+00 : f32
      %12 = vector.broadcast %cst_9 : f32 to vector<128x128xf32>
      %c0_10 = arith.constant 0 : index
      %c0_11 = arith.constant 0 : index
      %13 = vector.load %arg10[%c0_10, %c0_11] : memref<128x128xf32, #tpu.memory_space<vmem>>, vector<128x128xf32>
      tpu.vector_store %arg10[%c0_10, %c0_11], %12 {strides = array<i32>} : memref<128x128xf32, #tpu.memory_space<vmem>>, vector<128x128xf32>,
    } else {
    }
    %c0 = arith.constant 0 : index
    %c0_1 = arith.constant 0 : index
    %3 = vector.load %arg10[%c0, %c0_1] : memref<128x128xf32, #tpu.memory_space<vmem>>, vector<128x128xf32>
    %c0_2 = arith.constant 0 : index
    %c0_3 = arith.constant 0 : index
    %4 = vector.load %arg2[%c0_2, %c0_3] : memref<128x128xbf16, #tpu.memory_space<vmem>>, vector<128x128xbf16>
    %c0_4 = arith.constant 0 : index
    %c0_5 = arith.constant 0 : index
    %5 = vector.load %arg3[%c0_4, %c0_5] : memref<128x128xbf16, #tpu.memory_space<vmem>>, vector<128x128xbf16>
    %cst = arith.constant dense<0.000000e+00> : vector<128x128xf32>
    %6 = tpu.matmul %4, %5, %cst {dimension_numbers = #tpu.dot_dimension_numbers<[1], [0], [0], [1], [0, 0, 1, 1], [], []>} : vector<128x128xbf16>, vector<128x128xbf16>, vector<128x128xf32> -> vector<128x128xf32>
    %7 = arith.addf %3, %6 : vector<128x128xf32>
    %c0_6 = arith.constant 0 : index
    %c0_7 = arith.constant 0 : index
    %8 = vector.load %arg10[%c0_6, %c0_7] : memref<128x128xf32, #tpu.memory_space<vmem>>, vector<128x128xf32>
    tpu.vector_store %arg10[%c0_6, %c0_7], %7 {strides = array<i32>} : memref<128x128xf32, #tpu.memory_space<vmem>>, vector<128x128xf32>,
    %c1_i32 = arith.constant 1 : i32
    %9 = arith.cmpi eq, %arg1, %c1_i32 : i32
    %10 = arith.extui %9 : i1 to i32
    %c0_i32_8 = arith.constant 0 : i32
    %11 = arith.cmpi ne, %10, %c0_i32_8 : i32
    scf.if %11 {
      %c0_9 = arith.constant 0 : index
      %c0_10 = arith.constant 0 : index
      %12 = vector.load %arg4[%c0_9, %c0_10] : memref<128x1xf32, #tpu.memory_space<vmem>>, vector<128x1xf32>
      %c0_11 = arith.constant 0 : index
      %c0_12 = arith.constant 0 : index
      %13 = vector.load %arg10[%c0_11, %c0_12] : memref<128x128xf32, #tpu.memory_space<vmem>>, vector<128x128xf32>
      %14 = vector.broadcast %12 : vector<128x1xf32> to vector<128x128xf32>
      %15 = arith.mulf %14, %13 : vector<128x128xf32>
      %c0_13 = arith.constant 0 : index
      %c0_14 = arith.constant 0 : index
      %16 = vector.load %arg10[%c0_13, %c0_14] : memref<128x128xf32, #tpu.memory_space<vmem>>, vector<128x128xf32>
      tpu.vector_store %arg10[%c0_13, %c0_14], %15 {strides = array<i32>} : memref<128x128xf32, #tpu.memory_space<vmem>>, vector<128x128xf32>,
      %c0_15 = arith.constant 0 : index
      %c0_16 = arith.constant 0 : index
      %17 = vector.load %arg9[%c0_15, %c0_16] : memref<128x128xf32, #tpu.memory_space<vmem>>, vector<128x128xf32>
      %c0_17 = arith.constant 0 : index
      %c0_18 = arith.constant 0 : index
      %18 = vector.load %arg5[%c0_17, %c0_18] : memref<128x256xf32, #tpu.memory_space<vmem>>, vector<128x256xf32>
      %c0_19 = arith.constant 0 : index
      %c0_20 = arith.constant 0 : index
      %19 = vector.load %arg6[%c0_19, %c0_20] : memref<1x256xf32, #tpu.memory_space<vmem>>, vector<1x256xf32>
      %c0_21 = arith.constant 0 : index
      %c0_22 = arith.constant 0 : index
      %20 = vector.load %arg7[%c0_21, %c0_22] : memref<256x128xf32, #tpu.memory_space<vmem>>, vector<256x128xf32>
      %c0_23 = arith.constant 0 : index
      %c0_24 = arith.constant 0 : index
      %21 = vector.load %arg8[%c0_23, %c0_24] : memref<1x128xf32, #tpu.memory_space<vmem>>, vector<1x128xf32>
      %cst_25 = arith.constant dense<0.000000e+00> : vector<128x256xf32>
      %22 = tpu.matmul %15, %18, %cst_25 {dimension_numbers = #tpu.dot_dimension_numbers<[1], [0], [0], [1], [0, 0, 1, 1], [], []>} : vector<128x128xf32>, vector<128x256xf32>, vector<128x256xf32> -> vector<128x256xf32>
      %23 = vector.broadcast %19 : vector<1x256xf32> to vector<128x256xf32>
      %24 = arith.addf %22, %23 : vector<128x256xf32>
      %cst_26 = arith.constant 0.000000e+00 : f32
      %25 = vector.broadcast %cst_26 : f32 to vector<128x256xf32>
      %26 = arith.maximumf %24, %25 : vector<128x256xf32>
      %cst_27 = arith.constant dense<0.000000e+00> : vector<128x128xf32>
      %27 = tpu.matmul %26, %20, %cst_27 {dimension_numbers = #tpu.dot_dimension_numbers<[1], [0], [0], [1], [0, 0, 1, 1], [], []>} : vector<128x256xf32>, vector<256x128xf32>, vector<128x128xf32> -> vector<128x128xf32>
      %28 = vector.broadcast %21 : vector<1x128xf32> to vector<128x128xf32>
      %29 = arith.addf %27, %28 : vector<128x128xf32>
      %cst_28 = arith.constant dense<0.000000e+00> : vector<128xf32>
      %30 = vector.multi_reduction <add>, %29, %cst_28 [1] : vector<128x128xf32> to vector<128xf32>
      %31 = vector.shape_cast %30 : vector<128xf32> to vector<128x1xf32>
      %cst_29 = arith.constant 6.250000e-02 : f32
      %32 = vector.broadcast %cst_29 : f32 to vector<128x1xf32>
      %33 = arith.mulf %31, %32 : vector<128x1xf32>
      %34 = vector.broadcast %33 : vector<128x1xf32> to vector<128x128xf32>
      %35 = arith.subf %29, %34 : vector<128x128xf32>
      %cst_30 = arith.constant 1.500000e+01 : f32
      %36 = vector.broadcast %cst_30 : f32 to vector<128x128xf32>
      %37 = arith.mulf %36, %35 : vector<128x128xf32>
      %38 = arith.addf %17, %37 : vector<128x128xf32>
      %c0_31 = arith.constant 0 : index
      %c0_32 = arith.constant 0 : index
      %39 = vector.load %arg11[%c0_31, %c0_32] : memref<128x128xf32, #tpu.memory_space<vmem>>, vector<128x128xf32>
      tpu.vector_store %arg11[%c0_31, %c0_32], %38 {strides = array<i32>} : memref<128x128xf32, #tpu.memory_space<vmem>>, vector<128x128xf32>,
    } else {
    }
    return
  }
  func.func @transform_0(%arg0: i32, %arg1: i32) -> (i32, i32) {
    %c0_i32 = arith.constant 0 : i32
    return %arg0, %arg1 : i32, i32
  }
  func.func @transform_1(%arg0: i32, %arg1: i32) -> (i32, i32) {
    %c0_i32 = arith.constant 0 : i32
    %c0_i32_0 = arith.constant 0 : i32
    return %arg1, %c0_i32 : i32, i32
  }
  func.func @transform_2(%arg0: i32, %arg1: i32) -> (i32, i32) {
    %c0_i32 = arith.constant 0 : i32
    %c0_i32_0 = arith.constant 0 : i32
    return %arg0, %c0_i32 : i32, i32
  }
  func.func @transform_3(%arg0: i32, %arg1: i32) -> (i32, i32) {
    %c0_i32 = arith.constant 0 : i32
    %c0_i32_0 = arith.constant 0 : i32
    %c0_i32_1 = arith.constant 0 : i32
    return %c0_i32, %c0_i32_0 : i32, i32
  }
  func.func @transform_4(%arg0: i32, %arg1: i32) -> (i32, i32) {
    %c0_i32 = arith.constant 0 : i32
    %c0_i32_0 = arith.constant 0 : i32
    %c0_i32_1 = arith.constant 0 : i32
    return %c0_i32, %c0_i32_0 : i32, i32
  }
  func.func @transform_5(%arg0: i32, %arg1: i32) -> (i32, i32) {
    %c0_i32 = arith.constant 0 : i32
    %c0_i32_0 = arith.constant 0 : i32
    %c0_i32_1 = arith.constant 0 : i32
    return %c0_i32, %c0_i32_0 : i32, i32
  }
  func.func @transform_6(%arg0: i32, %arg1: i32) -> (i32, i32) {
    %c0_i32 = arith.constant 0 : i32
    %c0_i32_0 = arith.constant 0 : i32
    %c0_i32_1 = arith.constant 0 : i32
    return %c0_i32, %c0_i32_0 : i32, i32
  }
  func.func @transform_7(%arg0: i32, %arg1: i32) -> (i32, i32) {
    %c0_i32 = arith.constant 0 : i32
    %c0_i32_0 = arith.constant 0 : i32
    return %arg0, %c0_i32 : i32, i32
  }
  func.func @transform_8(%arg0: i32, %arg1: i32) -> (i32, i32) {
    %c0_i32 = arith.constant 0 : i32
    %c0_i32_0 = arith.constant 0 : i32
    return %arg0, %c0_i32 : i32, i32
  }
  func.func @transform_9(%arg0: i32, %arg1: i32) -> (i32, i32) {
    %c0_i32 = arith.constant 0 : i32
    %c0_i32_0 = arith.constant 0 : i32
    return %arg0, %c0_i32 : i32, i32
  }
}

</mosaic_0001>

<bundles_post_ra>
// kernel: engcn_forward.3
= control target key start
LH: loop header
LB: loop body
LE: loop exit
PB: predicated region body
PF: predicated region fallthrough
CT: control target
= control target key end

     0   :  { %s1121_s21 = smov 0   ;;  %s1543_s0 = inlined_call_operand.vmem [shape: f32[256,128], index: 0, kind: input, shape index: {}]   ;;  %s1544_s1 = inlined_call_operand.vmem [shape: f32[128,256], index: 1, kind: input, shape index: {}]   ;;  %s1545_s2 = inlined_call_operand.vmem [shape: f32[1,256], index: 2, kind: input, shape index: {}]   ;;  %s1546_s3 = inlined_call_operand.vmem [shape: f32[256,128], index: 3, kind: input, shape index: {}]   ;;  %s1547_s4 = inlined_call_operand.vmem [shape: f32[1,128], index: 4, kind: input, shape index: {}]   ;;  %s1548_s5 = inlined_call_operand.vmem [shape: f32[256,128], index: 5, kind: input, shape index: {}, may-alias: {5,6}]   ;;  %s1549_s6 = inlined_call_operand.vmem [shape: f32[256,128], index: 6, kind: output, shape index: {}, may-alias: {5,6}]  }
   0x1 LB: > { %s910_s22 = sadd.s32 4294967295, %s1083_s21   ;;  %p914_p0 = scmp.ge.s32.totalorder %s1083_s21, 1  ;;  %s1083_s21 = sphi %s1121_s21, %s16_s21  }
   0x2   : > { %p224_p1 = scmp.lt.s32.totalorder %s1083_s21, 3 }
   0x4   : > { %p225_p2 = pnand %p914_p0, %p224_p1 }
   0x5   : > { %v310_v0 = vld [vmem:[%s1544_s1 + $0x8] sm:$0xff] (!%p225_p2)  ;;  %v312_v1 = vld [vmem:[%s1544_s1 + $0x18] sm:$0xff] (!%p225_p2)  ;;  %v309_v2 = vld [vmem:[%s1544_s1] sm:$0xff] (!%p225_p2)  ;;  %v1085_v7 = vmov (!%p225_p2), 0.0   ;;  %s1204_s27 = sshll.u32 (!%p225_p2), %s910_s22, 4 }
   0x6   : > { %228 = sbr.rel (%p225_p2) target bundleno = 686 (0x2ae), region = 44  ;;  %v1004_v3 = vpack.c.bf16 (!%p225_p2), %v312_v1, %v310_v0  ;;  %v311_v4 = vld [vmem:[%s1544_s1 + $0x10] sm:$0xff] (!%p225_p2)  ;;  %v314_v5 = vld [vmem:[%s1544_s1 + $0x28] sm:$0xff] (!%p225_p2)  ;;  %v316_v6 = vld [vmem:[%s1544_s1 + $0x38] sm:$0xff] (!%p225_p2)  ;;  %450 = vmatprep.mubr.f32.mxu0 (!%p225_p2), %v1085_v7  ;;  %p260_p3 = scmp.lt.s32.totalorder (!%p225_p2), %s1204_s27, 31 }
   0x7   : > { %v1006_v8 = vpack.c.bf16 (!%p225_p2), %v311_v4, %v309_v2  ;;  %v1008_v9 = vpack.c.bf16 (!%p225_p2), %v316_v6, %v314_v5  ;;  %v313_v10 = vld [vmem:[%s1544_s1 + $0x20] sm:$0xff] (!%p225_p2)  ;;  %v315_v11 = vld [vmem:[%s1544_s1 + $0x30] sm:$0xff] (!%p225_p2)  ;;  %v318_v12 = vld [vmem:[%s1544_s1 + $0x48] sm:$0xff] (!%p225_p2) }
   0x8   : > { %1005 = vmatprep.subr.bf16.mxu0 (!%p225_p2), %v1004_v3  ;;  %v320_v13 = vld [vmem:[%s1544_s1 + $0x58] sm:$0xff] (!%p225_p2)  ;;  %v1010_v14 = vpack.c.bf16 (!%p225_p2), %v315_v11, %v313_v10  ;;  %v317_v16 = vld [vmem:[%s1544_s1 + $0x40] sm:$0xff] (!%p225_p2)  ;;  %v319_v17 = vld [vmem:[%s1544_s1 + $0x50] sm:$0xff] (!%p225_p2) }
   0x9   : > { %1007 = vmatpush1.bf16.msra.mxu0 (!%p225_p2), %v1006_v8  ;;  %v1012_v15 = vpack.c.bf16 (!%p225_p2), %v320_v13, %v318_v12  ;;  %v322_v18 = vld [vmem:[%s1544_s1 + $0x68] sm:$0xff] (!%p225_p2)  ;;  %v324_v19 = vld [vmem:[%s1544_s1 + $0x78] sm:$0xff] (!%p225_p2)  ;;  %v1014_v20 = vpack.c.bf16 (!%p225_p2), %v319_v17, %v317_v16  ;;  %v321_v22 = vld [vmem:[%s1544_s1 + $0x60] sm:$0xff] (!%p225_p2) }
   0xa   : > { %1009 = vmatprep.subr.bf16.mxu0 (!%p225_p2), %v1008_v9  ;;  %v1016_v21 = vpack.c.bf16 (!%p225_p2), %v324_v19, %v322_v18  ;;  %v323_v23 = vld [vmem:[%s1544_s1 + $0x70] sm:$0xff] (!%p225_p2)  ;;  %v326_v24 = vld [vmem:[%s1544_s1 + $0x88] sm:$0xff] (!%p225_p2)  ;;  %v328_v25 = vld [vmem:[%s1544_s1 + $0x98] sm:$0xff] (!%p225_p2) }
   0xb   : > { %v1018_v26 = vpack.c.bf16 (!%p225_p2), %v323_v23, %v321_v22  ;;  %v1020_v27 = vpack.c.bf16 (!%p225_p2), %v328_v25, %v326_v24  ;;  %v325_v28 = vld [vmem:[%s1544_s1 + $0x80] sm:$0xff] (!%p225_p2)  ;;  %v327_v29 = vld [vmem:[%s1544_s1 + $0x90] sm:$0xff] (!%p225_p2)  ;;  %v330_v30 = vld [vmem:[%s1544_s1 + $0xa8] sm:$0xff] (!%p225_p2) }
   0xc   : > { %v332_v31 = vld [vmem:[%s1544_s1 + $0xb8] sm:$0xff] (!%p225_p2)  ;;  %v329_v32 = vld [vmem:[%s1544_s1 + $0xa0] sm:$0xff] (!%p225_p2)  ;;  %v331_v33 = vld [vmem:[%s1544_s1 + $0xb0] sm:$0xff] (!%p225_p2)  ;;  %v1022_v34 = vpack.c.bf16 (!%p225_p2), %v327_v29, %v325_v28 }
   0xd   : > { %1011 = vmatpush1.bf16.msra.mxu0 %v1010_v14  ;;  %v334_v35 = vld [vmem:[%s1544_s1 + $0xc8] sm:$0xff]  ;;  %v336_v36 = vld [vmem:[%s1544_s1 + $0xd8] sm:$0xff]  ;;  %v358_v37 = vld [vmem:[%s1546_s3 + $0x80] sm:$0xff]  ;;  %v1024_v40 = vpack.c.bf16 %v332_v31, %v330_v30  ;;  %v1026_v51 = vpack.c.bf16 %v331_v33, %v329_v32  ;;  %s1551_s27 = smov (!%p260_p3, %s1204_s27), 31 }
   0xe   : > { %1013 = vmatprep.subr.bf16.mxu0 %v1012_v15  ;;  %v359_v38 = vld [vmem:[%s1546_s3 + $0x88] sm:$0xff]  ;;  %v342_v39 = vld [vmem:[%s1546_s3] sm:$0xff]  ;;  %v360_v43 = vld [vmem:[%s1546_s3 + $0x90] sm:$0xff]  ;;  %v1028_v55 = vpack.c.bf16 %v336_v36, %v334_v35  ;;  %s1282_s8 = sshll.u32 %s1551_s27, 3 }
   0xf   : > { %v1036_v41 = vpack.c.bf16 %v359_v38, %v358_v37  ;;  %v343_v42 = vld [vmem:[%s1546_s3 + $0x8] sm:$0xff]  ;;  %v361_v44 = vld [vmem:[%s1546_s3 + $0x98] sm:$0xff]  ;;  %v344_v47 = vld [vmem:[%s1546_s3 + $0x10] sm:$0xff]  ;;  %s1294_s14 = scalar_lea.vmem %s1543_s0, %s1282_s8  ;;  %s269_s29 = scalar_lea.vmem %s1548_s5, %s1282_s8 }
  0x10   : > { %v1038_v45 = vpack.c.bf16 %v343_v42, %v342_v39  ;;  %v1040_v46 = vpack.c.bf16 %v361_v44, %v360_v43  ;;  %v345_v48 = vld [vmem:[%s1546_s3 + $0x18] sm:$0xff]  ;;  %v362_v49 = vld [vmem:[%s1546_s3 + $0xa0] sm:$0xff]  ;;  %v363_v50 = vld [vmem:[%s1546_s3 + $0xa8] sm:$0xff]  ;;  %s1494_s9 = scalar_lea.vmem %s1549_s6, %s1282_s8 }
  0x11   : > { %1015 = vmatpush1.bf16.msra.mxu0 %v1014_v20  ;;  %1037 = vmatprep.subr.bf16.mxu1 %v1036_v41  ;;  %v333_v52 = vld [vmem:[%s1544_s1 + $0xc0] sm:$0xff]  ;;  %v335_v53 = vld [vmem:[%s1544_s1 + $0xd0] sm:$0xff]  ;;  %v1042_v54 = vpack.c.bf16 %v345_v48, %v344_v47  ;;  %v338_v56 = vld [vmem:[%s1544_s1 + $0xe8] sm:$0xff]  ;;  %v1044_v57 = vpack.c.bf16 %v363_v50, %v362_v49  ;;  %v376_v49 = vlaneseq }
  0x12   : > { %1017 = vmatprep.subr.bf16.mxu0 %v1016_v21  ;;  %1039 = vmatpush3.bf16.msra.mxu1 %v1038_v45  ;;  %v346_v58 = vld [vmem:[%s1546_s3 + $0x20] sm:$0xff]  ;;  %v347_v59 = vld [vmem:[%s1546_s3 + $0x28] sm:$0xff]  ;;  %v340_v60 = vld [vmem:[%s1544_s1 + $0xf8] sm:$0xff]  ;;  %v1030_v63 = vpack.c.bf16 %v335_v53, %v333_v52 }
  0x13   : > { %1041 = vmatprep.subr.bf16.mxu1 %v1040_v46  ;;  %v364_v61 = vld [vmem:[%s1546_s3 + $0xb0] sm:$0xff]  ;;  %v365_v62 = vld [vmem:[%s1546_s3 + $0xb8] sm:$0xff]  ;;  %v337_v0 = vld [vmem:[%s1544_s1 + $0xe0] sm:$0xff]  ;;  %v1046_v1 = vpack.c.bf16 %v347_v59, %v346_v58  ;;  %v1032_v2 = vpack.c.bf16 %v340_v60, %v338_v56  ;;  %v377_v50 = vshrl.u32 %v376_v49, 7 }
  0x14   : > { %v339_v3 = vld [vmem:[%s1544_s1 + $0xf0] sm:$0xff]  ;;  %v1048_v4 = vpack.c.bf16 %v365_v62, %v364_v61  ;;  %v349_v6 = vld [vmem:[%s1546_s3 + $0x38] sm:$0xff]  ;;  %v366_v8 = vld [vmem:[%s1546_s3 + $0xc0] sm:$0xff] }
  0x15   : > { %1019 = vmatpush1.bf16.msra.mxu0 %v1018_v26  ;;  %v348_v5 = vld [vmem:[%s1546_s3 + $0x30] sm:$0xff]  ;;  %v367_v9 = vld [vmem:[%s1546_s3 + $0xc8] sm:$0xff]  ;;  %v1034_v10 = vpack.c.bf16 %v339_v3, %v337_v0  ;;  %v350_v13 = vld [vmem:[%s1546_s3 + $0x40] sm:$0xff]  ;;  %v382_v53 = vsub.s32 1, %v377_v50 }
  0x16   : > { %1021 = vmatprep.subr.bf16.mxu0 %v1020_v27  ;;  %1043 = vmatpush3.bf16.msra.mxu1 %v1042_v54  ;;  %v1050_v11 = vpack.c.bf16 %v349_v6, %v348_v5  ;;  %v1052_v12 = vpack.c.bf16 %v367_v9, %v366_v8  ;;  %v351_v14 = vld [vmem:[%s1546_s3 + $0x48] sm:$0xff]  ;;  %v368_v15 = vld [vmem:[%s1546_s3 + $0xd0] sm:$0xff]  ;;  %v369_v16 = vld [vmem:[%s1546_s3 + $0xd8] sm:$0xff] }
  0x17   : > { %1045 = vmatprep.subr.bf16.mxu1 %v1044_v57  ;;  %v293_v17 = vld [vmem:[%s1294_s14] sm:$0xff]  ;;  %v1054_v18 = vpack.c.bf16 %v351_v14, %v350_v13  ;;  %v1056_v19 = vpack.c.bf16 %v369_v16, %v368_v15  ;;  %v352_v20 = vld [vmem:[%s1546_s3 + $0x50] sm:$0xff]  ;;  %v353_v21 = vld [vmem:[%s1546_s3 + $0x58] sm:$0xff] }
  0x18   : > { %v370_v22 = vld [vmem:[%s1546_s3 + $0xe0] sm:$0xff]  ;;  %v371_v23 = vld [vmem:[%s1546_s3 + $0xe8] sm:$0xff]  ;;  %v1058_v25 = vpack.c.bf16 %v353_v21, %v352_v20  ;;  %v295_v27 = vld [vmem:[%s1294_s14 + $0x10] sm:$0xff] }
  0x19   : > { %1023 = vmatpush1.bf16.msra.mxu0 %v1022_v34  ;;  %v294_v24 = vld [vmem:[%s1294_s14 + $0x8] sm:$0xff]  ;;  %v1060_v26 = vpack.c.bf16 %v371_v23, %v370_v22  ;;  %v296_v28 = vld [vmem:[%s1294_s14 + $0x18] sm:$0xff]  ;;  %v297_v29 = vld [vmem:[%s1294_s14 + $0x20] sm:$0xff] }
  0x1a   : > { %1025 = vmatprep.subr.bf16.mxu0 %v1024_v40  ;;  %1047 = vmatpush3.bf16.msra.mxu1 %v1046_v1  ;;  %v298_v30 = vld [vmem:[%s1294_s14 + $0x28] sm:$0xff]  ;;  %v299_v31 = vld [vmem:[%s1294_s14 + $0x30] sm:$0xff]  ;;  %v300_v32 = vld [vmem:[%s1294_s14 + $0x38] sm:$0xff] }
  0x1b   : > { %1049 = vmatprep.subr.bf16.mxu1 %v1048_v4  ;;  %v301_v33 = vld [vmem:[%s1294_s14 + $0x40] sm:$0xff]  ;;  %v302_v34 = vld [vmem:[%s1294_s14 + $0x48] sm:$0xff]  ;;  %v303_v35 = vld [vmem:[%s1294_s14 + $0x50] sm:$0xff] }
  0x1c   : > { %v304_v36 = vld [vmem:[%s1294_s14 + $0x58] sm:$0xff]  ;;  %v305_v37 = vld [vmem:[%s1294_s14 + $0x60] sm:$0xff]  ;;  %v306_v38 = vld [vmem:[%s1294_s14 + $0x68] sm:$0xff] }
  0x1d   : > { %1027 = vmatpush1.bf16.msra.mxu0 %v1026_v51  ;;  %v307_v39 = vld [vmem:[%s1294_s14 + $0x70] sm:$0xff]  ;;  %v308_v40 = vld [vmem:[%s1294_s14 + $0x78] sm:$0xff]  ;;  %v354_v41 = vld [vmem:[%s1546_s3 + $0x60] sm:$0xff]  ;;  %v378_v51 = vsub.s32 0, %v377_v50 }
  0x1e   : > { %1029 = vmatprep.subr.bf16.mxu0 %v1028_v55  ;;  %1051 = vmatpush3.bf16.msra.mxu1 %v1050_v11  ;;  %v355_v42 = vld [vmem:[%s1546_s3 + $0x68] sm:$0xff]  ;;  %v372_v44 = vld [vmem:[%s1546_s3 + $0xf0] sm:$0xff]  ;;  %v357_v47 = vld [vmem:[%s1546_s3 + $0x78] sm:$0xff] }
  0x1f   : > { %1053 = vmatprep.subr.bf16.mxu1 %v1052_v12  ;;  %v1062_v43 = vpack.c.bf16 %v355_v42, %v354_v41  ;;  %v356_v46 = vld [vmem:[%s1546_s3 + $0x70] sm:$0xff]  ;;  %v341_v52 = vld [vmem:[%s1545_s2] sm:$0x3] }
  0x20   : > { %v1066_v48 = vpack.c.bf16 %v357_v47, %v356_v46  ;;  %v1372_v54 = vrot.slane %v341_v52, %v378_v51  ;;  %v1374_v55 = vrot.slane %v341_v52, %v382_v53 }
  0x21   : > { %1031 = vmatpush1.bf16.msra.mxu0 %v1030_v63 }
  0x22   : > { %1033 = vmatprep.subr.bf16.mxu0 %v1032_v2  ;;  %1055 = vmatpush3.bf16.msra.mxu1 %v1054_v18 }
  0x23   : > { %1057 = vmatprep.subr.bf16.mxu1 %v1056_v19 }
  0x25   : > { %1035 = vmatpush1.bf16.msra.mxu0 %v1034_v10 }
  0x26   : > { %1059 = vmatpush3.bf16.msra.mxu1 %v1058_v25 }
  0x27   : > { %1061 = vmatprep.subr.bf16.mxu1 %v1060_v26 }
  0x28   : > { %451 = vmatmul.mubr.f32.vlgmr.msra.gmra.mrb[0].mxu0 %v293_v17 }
  0x29   : > { %456 = vmatprep.mubr.f32.mxu0 %v1085_v7 }
  0x2a   : > { %1063 = vmatpush3.bf16.msra.mxu1 %v1062_v43 }
  0x2c   : > { %457 = vmatmul.mubr.f32.gmra.mrb[2].mxu0 %v294_v24 }
  0x2d   : > { %462 = vmatprep.mubr.f32.mxu0 %v1085_v7 }
  0x30   : > { %463 = vmatmul.mubr.f32.gmra.mrb[4].mxu0 %v295_v27 }
  0x31   : > { %468 = vmatprep.mubr.f32.mxu0 %v1085_v7 }
  0x34   : > { %469 = vmatmul.mubr.f32.gmra.mrb[6].mxu0 %v296_v28 }
  0x35   : > { %474 = vmatprep.mubr.f32.mxu0 %v1085_v7 }
  0x38   : > { %475 = vmatmul.mubr.f32.gmra.mrb[8].mxu0 %v297_v29 }
  0x39   : > { %480 = vmatprep.mubr.f32.mxu0 %v1085_v7 }
  0x3c   : > { %481 = vmatmul.mubr.f32.gmra.mrb[10].mxu0 %v298_v30 }
  0x3d   : > { %486 = vmatprep.mubr.f32.mxu0 %v1085_v7 }
  0x40   : > { %487 = vmatmul.mubr.f32.gmra.mrb[12].mxu0 %v299_v31 }
  0x41   : > { %492 = vmatprep.mubr.f32.mxu0 %v1085_v7 }
  0x44   : > { %493 = vmatmul.mubr.f32.gmra.mrb[14].mxu0 %v300_v32 }
  0x45   : > { %498 = vmatprep.mubr.f32.mxu0 %v1085_v7 }
  0x48   : > { %499 = vmatmul.mubr.f32.gmra.mrb[16].mxu0 %v301_v33 }
  0x49   : > { %504 = vmatprep.mubr.f32.mxu0 %v1085_v7 }
  0x4c   : > { %505 = vmatmul.mubr.f32.gmra.mrb[18].mxu0 %v302_v34 }
  0x4d   : > { %510 = vmatprep.mubr.f32.mxu0 %v1085_v7 }
  0x50   : > { %511 = vmatmul.mubr.f32.gmra.mrb[20].mxu0 %v303_v35 }
  0x51   : > { %516 = vmatprep.mubr.f32.mxu0 %v1085_v7 }
  0x54   : > { %517 = vmatmul.mubr.f32.gmra.mrb[22].mxu0 %v304_v36 }
  0x55   : > { %522 = vmatprep.mubr.f32.mxu0 %v1085_v7 }
  0x58   : > { %523 = vmatmul.mubr.f32.gmra.mrb[24].mxu0 %v305_v37 }
  0x59   : > { %528 = vmatprep.mubr.f32.mxu0 %v1085_v7 }
  0x5c   : > { %529 = vmatmul.mubr.f32.gmra.mrb[26].mxu0 %v306_v38 }
  0x5d   : > { %534 = vmatprep.mubr.f32.mxu0 %v1085_v7 }
  0x60   : > { %535 = vmatmul.mubr.f32.gmra.mrb[28].mxu0 %v307_v39 }
  0x61   : > { %540 = vmatprep.mubr.f32.mxu0 %v1085_v7  ;;  %v373_v7 = vld [vmem:[%s1546_s3 + $0xf8] sm:$0xff] }
  0x62   : > { %v1064_v45 = vpack.c.bf16 %v373_v7, %v372_v44 }
  0x64   : > { %541 = vmatmul.mubr.f32.gmra.mrb[30].mxu0 %v308_v40  ;;  %1065 = vmatprep.subr.bf16.mxu1 %v1064_v45 }
  0x65   : > { %1067 = vmatpush3.bf16.msra.mxu1 %v1066_v48 }
  0xfb   : > { %v452_v56 = vpop.f32.mrb[0].mxu0 }
  0xfc   : > { %v453_v57 = vadd.f32 %v452_v56, %v1372_v54  ;;  %v454_v58 = vpop.f32.mrb[1].mxu0 }
  0xfd   : > { %v455_v59 = vadd.f32 %v454_v58, %v1374_v55 }
  0xfe   : > { %v547_v62 = vmax.f32 %v453_v57, 0.0 }
  0xff   : > { %v458_v60 = vpop.f32.mrb[2].mxu0  ;;  %v548_v61 = vmax.f32 %v455_v59, 0.0 }
 0x100   : > { %v459_v63 = vadd.f32 %v458_v60, %v1372_v54  ;;  %v460_v0 = vpop.f32.mrb[3].mxu0 }
 0x101   : > { %v461_v1 = vadd.f32 %v460_v0, %v1374_v55  ;;  %649 = vmatprep.mubr.f32.mxu1 %v548_v61 }
 0x102   : > { %650 = vmatmul.mubr.f32.vlgmr.msra.gmra.mrb[0].mxu1 %v547_v62  ;;  %v549_v4 = vmax.f32 %v459_v63, 0.0 }
 0x103   : > { %v550_v2 = vmax.f32 %v461_v1, 0.0  ;;  %v464_v3 = vpop.f32.mrb[4].mxu0 }
 0x104   : > { %v465_v5 = vadd.f32 %v464_v3, %v1372_v54  ;;  %v466_v6 = vpop.f32.mrb[5].mxu0 }
 0x105   : > { %v467_v8 = vadd.f32 %v466_v6, %v1374_v55  ;;  %654 = vmatprep.mubr.f32.mxu1 %v550_v2 }
 0x106   : > { %655 = vmatmul.mubr.f32.gmra.mrb[2].mxu1 %v549_v4  ;;  %v551_v11 = vmax.f32 %v465_v5, 0.0 }
 0x107   : > { %v552_v9 = vmax.f32 %v467_v8, 0.0  ;;  %v470_v10 = vpop.f32.mrb[6].mxu0 }
 0x108   : > { %v471_v12 = vadd.f32 %v470_v10, %v1372_v54  ;;  %v472_v13 = vpop.f32.mrb[7].mxu0 }
 0x109   : > { %v473_v14 = vadd.f32 %v472_v13, %v1374_v55  ;;  %659 = vmatprep.mubr.f32.mxu1 %v552_v9 }
 0x10a   : > { %660 = vmatmul.mubr.f32.gmra.mrb[4].mxu1 %v551_v11  ;;  %v553_v17 = vmax.f32 %v471_v12, 0.0 }
 0x10b   : > { %v554_v15 = vmax.f32 %v473_v14, 0.0  ;;  %v476_v16 = vpop.f32.mrb[8].mxu0 }
 0x10c   : > { %v477_v18 = vadd.f32 %v476_v16, %v1372_v54  ;;  %v478_v19 = vpop.f32.mrb[9].mxu0 }
 0x10d   : > { %v479_v20 = vadd.f32 %v478_v19, %v1374_v55  ;;  %664 = vmatprep.mubr.f32.mxu1 %v554_v15 }
 0x10e   : > { %665 = vmatmul.mubr.f32.gmra.mrb[6].mxu1 %v553_v17  ;;  %v555_v23 = vmax.f32 %v477_v18, 0.0 }
 0x10f   : > { %v556_v21 = vmax.f32 %v479_v20, 0.0  ;;  %v482_v22 = vpop.f32.mrb[10].mxu0 }
 0x110   : > { %v483_v24 = vadd.f32 %v482_v22, %v1372_v54  ;;  %v484_v25 = vpop.f32.mrb[11].mxu0 }
 0x111   : > { %v485_v26 = vadd.f32 %v484_v25, %v1374_v55  ;;  %669 = vmatprep.mubr.f32.mxu1 %v556_v21 }
 0x112   : > { %670 = vmatmul.mubr.f32.gmra.mrb[8].mxu1 %v555_v23  ;;  %v557_v29 = vmax.f32 %v483_v24, 0.0 }
 0x113   : > { %v558_v27 = vmax.f32 %v485_v26, 0.0  ;;  %v488_v28 = vpop.f32.mrb[12].mxu0 }
 0x114   : > { %v489_v30 = vadd.f32 %v488_v28, %v1372_v54  ;;  %v490_v31 = vpop.f32.mrb[13].mxu0 }
 0x115   : > { %v491_v32 = vadd.f32 %v490_v31, %v1374_v55  ;;  %674 = vmatprep.mubr.f32.mxu1 %v558_v27 }
 0x116   : > { %675 = vmatmul.mubr.f32.gmra.mrb[10].mxu1 %v557_v29  ;;  %v559_v35 = vmax.f32 %v489_v30, 0.0  ;;  %v1411_v29 = vld [vmem:[%s1547_s4] ss:$0 sm:$0xff] }
 0x117   : > { %v560_v33 = vmax.f32 %v491_v32, 0.0  ;;  %v494_v34 = vpop.f32.mrb[14].mxu0 }
 0x118   : > { %v495_v36 = vadd.f32 %v494_v34, %v1372_v54  ;;  %v496_v37 = vpop.f32.mrb[15].mxu0 }
 0x119   : > { %v497_v38 = vadd.f32 %v496_v37, %v1374_v55  ;;  %679 = vmatprep.mubr.f32.mxu1 %v560_v33 }
 0x11a   : > { %680 = vmatmul.mubr.f32.gmra.mrb[12].mxu1 %v559_v35  ;;  %v561_v41 = vmax.f32 %v495_v36, 0.0 }
 0x11b   : > { %v562_v39 = vmax.f32 %v497_v38, 0.0  ;;  %v500_v40 = vpop.f32.mrb[16].mxu0 }
 0x11c   : > { %v501_v42 = vadd.f32 %v500_v40, %v1372_v54  ;;  %v502_v43 = vpop.f32.mrb[17].mxu0 }
 0x11d   : > { %v503_v44 = vadd.f32 %v502_v43, %v1374_v55  ;;  %684 = vmatprep.mubr.f32.mxu1 %v562_v39 }
 0x11e   : > { %685 = vmatmul.mubr.f32.gmra.mrb[14].mxu1 %v561_v41  ;;  %v563_v46 = vmax.f32 %v501_v42, 0.0 }
 0x11f   : > { %v564_v7 = vmax.f32 %v503_v44, 0.0  ;;  %v506_v45 = vpop.f32.mrb[18].mxu0 }
 0x120   : > { %v507_v47 = vadd.f32 %v506_v45, %v1372_v54  ;;  %v508_v48 = vpop.f32.mrb[19].mxu0 }
 0x121   : > { %v509_v49 = vadd.f32 %v508_v48, %v1374_v55  ;;  %689 = vmatprep.mubr.f32.mxu1 %v564_v7 }
 0x122   : > { %690 = vmatmul.mubr.f32.gmra.mrb[16].mxu1 %v563_v46  ;;  %v565_v52 = vmax.f32 %v507_v47, 0.0 }
 0x123   : > { %v566_v50 = vmax.f32 %v509_v49, 0.0  ;;  %v512_v51 = vpop.f32.mrb[20].mxu0 }
 0x124   : > { %v513_v53 = vadd.f32 %v512_v51, %v1372_v54  ;;  %v514_v56 = vpop.f32.mrb[21].mxu0 }
 0x125   : > { %v515_v57 = vadd.f32 %v514_v56, %v1374_v55  ;;  %694 = vmatprep.mubr.f32.mxu1 %v566_v50 }
 0x126   : > { %695 = vmatmul.mubr.f32.gmra.mrb[18].mxu1 %v565_v52  ;;  %v567_v60 = vmax.f32 %v513_v53, 0.0 }
 0x127   : > { %v568_v58 = vmax.f32 %v515_v57, 0.0  ;;  %v518_v59 = vpop.f32.mrb[22].mxu0 }
 0x128   : > { %v519_v61 = vadd.f32 %v518_v59, %v1372_v54  ;;  %v520_v62 = vpop.f32.mrb[23].mxu0 }
 0x129   : > { %v521_v63 = vadd.f32 %v520_v62, %v1374_v55  ;;  %699 = vmatprep.mubr.f32.mxu1 %v568_v58 }
 0x12a   : > { %700 = vmatmul.mubr.f32.gmra.mrb[20].mxu1 %v567_v60  ;;  %v569_v2 = vmax.f32 %v519_v61, 0.0 }
 0x12b   : > { %v570_v0 = vmax.f32 %v521_v63, 0.0  ;;  %v524_v1 = vpop.f32.mrb[24].mxu0 }
 0x12c   : > { %v525_v3 = vadd.f32 %v524_v1, %v1372_v54  ;;  %v526_v4 = vpop.f32.mrb[25].mxu0 }
 0x12d   : > { %v527_v5 = vadd.f32 %v526_v4, %v1374_v55  ;;  %704 = vmatprep.mubr.f32.mxu1 %v570_v0 }
 0x12e   : > { %705 = vmatmul.mubr.f32.gmra.mrb[22].mxu1 %v569_v2  ;;  %v571_v9 = vmax.f32 %v525_v3, 0.0 }
 0x12f   : > { %v572_v6 = vmax.f32 %v527_v5, 0.0  ;;  %v530_v8 = vpop.f32.mrb[26].mxu0 }
 0x130   : > { %v531_v10 = vadd.f32 %v530_v8, %v1372_v54  ;;  %v532_v11 = vpop.f32.mrb[27].mxu0 }
 0x131   : > { %v533_v12 = vadd.f32 %v532_v11, %v1374_v55  ;;  %709 = vmatprep.mubr.f32.mxu1 %v572_v6 }
 0x132   : > { %710 = vmatmul.mubr.f32.gmra.mrb[24].mxu1 %v571_v9  ;;  %v573_v15 = vmax.f32 %v531_v10, 0.0 }
 0x133   : > { %v574_v13 = vmax.f32 %v533_v12, 0.0  ;;  %v536_v14 = vpop.f32.mrb[28].mxu0 }
 0x134   : > { %v537_v16 = vadd.f32 %v536_v14, %v1372_v54  ;;  %v538_v17 = vpop.f32.mrb[29].mxu0 }
 0x135   : > { %v539_v18 = vadd.f32 %v538_v17, %v1374_v55  ;;  %714 = vmatprep.mubr.f32.mxu1 %v574_v13 }
 0x136   : > { %715 = vmatmul.mubr.f32.gmra.mrb[26].mxu1 %v573_v15  ;;  %v575_v21 = vmax.f32 %v537_v16, 0.0 }
 0x137   : > { %v576_v19 = vmax.f32 %v539_v18, 0.0  ;;  %v542_v20 = vpop.f32.mrb[30].mxu0 }
 0x138   : > { %v543_v22 = vadd.f32 %v542_v20, %v1372_v54  ;;  %v544_v23 = vpop.f32.mrb[31].mxu0 }
 0x139   : > { %v545_v24 = vadd.f32 %v544_v23, %v1374_v55  ;;  %719 = vmatprep.mubr.f32.mxu1 %v576_v19 }
 0x13a   : > { %720 = vmatmul.mubr.f32.gmra.mrb[28].mxu1 %v575_v21  ;;  %v577_v26 = vmax.f32 %v543_v22, 0.0 }
 0x13b   : > { %v578_v25 = vmax.f32 %v545_v24, 0.0 }
 0x13d   : > { %724 = vmatprep.mubr.f32.mxu1 %v578_v25 }
 0x13e   : > { %725 = vmatmul.mubr.f32.gmra.mrb[30].mxu1 %v577_v26 }
 0x1d5   : > { %v956_v27 = vpop.f32.mrb[0].mxu1 }
 0x1d6   : > { %v957_v28 = vpop.f32.mrb[1].mxu1 }
 0x1d7   : > { %v958_v30 = vadd.f32 %v957_v28, %v956_v27 }
 0x1d9   : > { %v959_v31 = vpop.f32.mrb[2].mxu1  ;;  %v1414_v54 = vadd.f32 %v958_v30, %v1411_v29 }
 0x1da   : > { %v960_v32 = vpop.f32.mrb[3].mxu1 }
 0x1db   : > { %v961_v55 = vadd.f32 %v960_v32, %v959_v31  ;;  %730 = vadd.xlane.f32.xlu0 %v1414_v54  ;;  %v277_v31 = vld [vmem:[%s269_s29] sm:$0xff] }
 0x1dd   : > { %v962_v33 = vpop.f32.mrb[4].mxu1  ;;  %v1418_v34 = vadd.f32 %v961_v55, %v1411_v29  ;;  %v278_v55 = vld [vmem:[%s269_s29 + $0x8] sm:$0xff] }
 0x1de   : > { %v963_v35 = vpop.f32.mrb[5].mxu1 }
 0x1df   : > { %v964_v36 = vadd.f32 %v963_v35, %v962_v33  ;;  %732 = vadd.xlane.f32.xlu0 %v1418_v34  ;;  %v279_v35 = vld [vmem:[%s269_s29 + $0x10] sm:$0xff] }
 0x1e1   : > { %v965_v37 = vpop.f32.mrb[6].mxu1  ;;  %v1422_v38 = vadd.f32 %v964_v36, %v1411_v29  ;;  %v280_v36 = vld [vmem:[%s269_s29 + $0x18] sm:$0xff] }
 0x1e2   : > { %v966_v39 = vpop.f32.mrb[7].mxu1 }
 0x1e3   : > { %v967_v40 = vadd.f32 %v966_v39, %v965_v37  ;;  %734 = vadd.xlane.f32.xlu1 %v1422_v38  ;;  %v281_v37 = vld [vmem:[%s269_s29 + $0x20] sm:$0xff]  ;;  %v282_v39 = vld [vmem:[%s269_s29 + $0x28] sm:$0xff] }
 0x1e5   : > { %v968_v41 = vpop.f32.mrb[8].mxu1  ;;  %v1426_v42 = vadd.f32 %v967_v40, %v1411_v29  ;;  %v284_v40 = vld [vmem:[%s269_s29 + $0x38] sm:$0xff] }
 0x1e6   : > { %v969_v43 = vpop.f32.mrb[9].mxu1 }
 0x1e7   : > { %v970_v44 = vadd.f32 %v969_v43, %v968_v41  ;;  %736 = vadd.xlane.f32.xlu1 %v1426_v42  ;;  %v285_v41 = vld [vmem:[%s269_s29 + $0x40] sm:$0xff]  ;;  %v1482_v43 = vld [vmem:[%s269_s29 + $0x48] sm:$0xff] }
 0x1e9   : > { %v971_v7 = vpop.f32.mrb[10].mxu1  ;;  %v1430_v45 = vadd.f32 %v970_v44, %v1411_v29 }
 0x1ea   : > { %v972_v46 = vpop.f32.mrb[11].mxu1 }
 0x1eb   : > { %v973_v47 = vadd.f32 %v972_v46, %v971_v7  ;;  %738 = vadd.xlane.f32.xlu0 %v1430_v45  ;;  %v1484_v46 = vld [vmem:[%s269_s29 + $0x50] sm:$0xff] }
 0x1ed   : > { %v974_v48 = vpop.f32.mrb[12].mxu1  ;;  %v1434_v49 = vadd.f32 %v973_v47, %v1411_v29  ;;  %v1486_v47 = vld [vmem:[%s269_s29 + $0x58] sm:$0xff] }
 0x1ee   : > { %v975_v50 = vpop.f32.mrb[13].mxu1 }
 0x1ef   : > { %v976_v51 = vadd.f32 %v975_v50, %v974_v48  ;;  %740 = vadd.xlane.f32.xlu1 %v1434_v49  ;;  %v1488_v48 = vld [vmem:[%s269_s29 + $0x60] sm:$0xff]  ;;  %v1498_v50 = vld [vmem:[%s269_s29 + $0x70] sm:$0xff] }
 0x1f1   : > { %v977_v52 = vpop.f32.mrb[14].mxu1  ;;  %v1438_v53 = vadd.f32 %v976_v51, %v1411_v29  ;;  %v1500_v51 = vld [vmem:[%s269_s29 + $0x78] sm:$0xff] }
 0x1f2   : > { %v978_v56 = vpop.f32.mrb[15].mxu1 }
 0x1f3   : > { %v979_v57 = vadd.f32 %v978_v56, %v977_v52  ;;  %742 = vadd.xlane.f32.xlu0 %v1438_v53 }
 0x1f5   : > { %v980_v58 = vpop.f32.mrb[16].mxu1  ;;  %v1442_v59 = vadd.f32 %v979_v57, %v1411_v29 }
 0x1f6   : > { %v981_v60 = vpop.f32.mrb[17].mxu1 }
 0x1f7   : > { %v982_v61 = vadd.f32 %v981_v60, %v980_v58  ;;  %744 = vadd.xlane.f32.xlu1 %v1442_v59 }
 0x1f9   : > { %v983_v62 = vpop.f32.mrb[18].mxu1  ;;  %v1446_v63 = vadd.f32 %v982_v61, %v1411_v29 }
 0x1fa   : > { %v984_v0 = vpop.f32.mrb[19].mxu1 }
 0x1fb   : > { %v985_v1 = vadd.f32 %v984_v0, %v983_v62  ;;  %746 = vadd.xlane.f32.xlu0 %v1446_v63 }
 0x1fd   : > { %v986_v2 = vpop.f32.mrb[20].mxu1  ;;  %v1450_v3 = vadd.f32 %v985_v1, %v1411_v29 }
 0x1fe   : > { %v987_v4 = vpop.f32.mrb[21].mxu1 }
 0x1ff   : > { %v988_v5 = vadd.f32 %v987_v4, %v986_v2  ;;  %748 = vadd.xlane.f32.xlu1 %v1450_v3 }
 0x201   : > { %v989_v6 = vpop.f32.mrb[22].mxu1  ;;  %v1454_v8 = vadd.f32 %v988_v5, %v1411_v29 }
 0x202   : > { %v990_v9 = vpop.f32.mrb[23].mxu1 }
 0x203   : > { %v991_v10 = vadd.f32 %v990_v9, %v989_v6  ;;  %750 = vadd.xlane.f32.xlu0 %v1454_v8 }
 0x205   : > { %v992_v11 = vpop.f32.mrb[24].mxu1  ;;  %v1458_v12 = vadd.f32 %v991_v10, %v1411_v29 }
 0x206   : > { %v993_v13 = vpop.f32.mrb[25].mxu1 }
 0x207   : > { %v994_v14 = vadd.f32 %v993_v13, %v992_v11  ;;  %752 = vadd.xlane.f32.xlu1 %v1458_v12 }
 0x209   : > { %v995_v15 = vpop.f32.mrb[26].mxu1  ;;  %v1462_v16 = vadd.f32 %v994_v14, %v1411_v29 }
 0x20a   : > { %v996_v17 = vpop.f32.mrb[27].mxu1 }
 0x20b   : > { %v997_v18 = vadd.f32 %v996_v17, %v995_v15  ;;  %754 = vadd.xlane.f32.xlu0 %v1462_v16 }
 0x20d   : > { %v998_v19 = vpop.f32.mrb[28].mxu1  ;;  %v1466_v20 = vadd.f32 %v997_v18, %v1411_v29 }
 0x20e   : > { %v999_v21 = vpop.f32.mrb[29].mxu1 }
 0x20f   : > { %v1000_v22 = vadd.f32 %v999_v21, %v998_v19  ;;  %756 = vadd.xlane.f32.xlu1 %v1466_v20 }
 0x211   : > { %v1001_v23 = vpop.f32.mrb[30].mxu1  ;;  %v1470_v24 = vadd.f32 %v1000_v22, %v1411_v29 }
 0x212   : > { %v1002_v25 = vpop.f32.mrb[31].mxu1 }
 0x213   : > { %v1003_v26 = vadd.f32 %v1002_v25, %v1001_v23  ;;  %758 = vadd.xlane.f32.xlu0 %v1470_v24 }
 0x215   : > { %v1474_v27 = vadd.f32 %v1003_v26, %v1411_v29  ;;  %v283_v29 = vld [vmem:[%s269_s29 + $0x30] sm:$0xff] }
 0x217   : > { %760 = vadd.xlane.f32.xlu1 %v1474_v27 }
 0x268   : > { %v731_v28 = vpop.xlane.xlu0 %730 }
 0x269   : > { %v762_v30 = vmul.f32 0.0625, %v731_v28 }
 0x26b   : > { %v778_v32 = vsub.f32 %v1414_v54, %v762_v30  ;;  %v1496_v54 = vld [vmem:[%s269_s29 + $0x68] sm:$0xff] }
 0x26c   : > { %v733_v33 = vpop.xlane.xlu0 %732 }
 0x26d   : > { %v794_v44 = vmul.f32 15.0, %v778_v32  ;;  %v763_v7 = vmul.f32 0.0625, %v733_v33 }
 0x26f   : > { %v810_v52 = vadd.f32 %v794_v44, %v277_v31  ;;  %v779_v56 = vsub.f32 %v1418_v34, %v763_v7 }
 0x270   : > { %v735_v57 = vpop.xlane.xlu1 %734 }
 0x271   : > { %v795_v58 = vmul.f32 15.0, %v779_v56  ;;  %v764_v60 = vmul.f32 0.0625, %v735_v57  ;;  %826 = vst [vmem:[%s1494_s9] sm:$0xff] %v810_v52 }
 0x273   : > { %v811_v61 = vadd.f32 %v795_v58, %v278_v55  ;;  %v780_v62 = vsub.f32 %v1422_v38, %v764_v60 }
 0x274   : > { %v737_v0 = vpop.xlane.xlu1 %736 }
 0x275   : > { %v796_v1 = vmul.f32 15.0, %v780_v62  ;;  %v765_v2 = vmul.f32 0.0625, %v737_v0  ;;  %827 = vst [vmem:[%s1494_s9 + $0x8] sm:$0xff] %v811_v61 }
 0x277   : > { %v812_v4 = vadd.f32 %v796_v1, %v279_v35  ;;  %v781_v5 = vsub.f32 %v1426_v42, %v765_v2 }
 0x278   : > { %v739_v6 = vpop.xlane.xlu0 %738 }
 0x279   : > { %v797_v9 = vmul.f32 15.0, %v781_v5  ;;  %v766_v34 = vmul.f32 0.0625, %v739_v6  ;;  %828 = vst [vmem:[%s1494_s9 + $0x10] sm:$0xff] %v812_v4 }
 0x27b   : > { %v813_v10 = vadd.f32 %v797_v9, %v280_v36  ;;  %v782_v11 = vsub.f32 %v1430_v45, %v766_v34 }
 0x27c   : > { %v741_v13 = vpop.xlane.xlu1 %740 }
 0x27d   : > { %v798_v14 = vmul.f32 15.0, %v782_v11  ;;  %v767_v38 = vmul.f32 0.0625, %v741_v13  ;;  %829 = vst [vmem:[%s1494_s9 + $0x18] sm:$0xff] %v813_v10 }
 0x27f   : > { %v814_v15 = vadd.f32 %v798_v14, %v281_v37  ;;  %v783_v17 = vsub.f32 %v1434_v49, %v767_v38 }
 0x280   : > { %v743_v18 = vpop.xlane.xlu0 %742 }
 0x281   : > { %v799_v19 = vmul.f32 15.0, %v783_v17  ;;  %v768_v42 = vmul.f32 0.0625, %v743_v18  ;;  %830 = vst [vmem:[%s1494_s9 + $0x20] sm:$0xff] %v814_v15 }
 0x283   : > { %v815_v21 = vadd.f32 %v799_v19, %v282_v39  ;;  %v784_v22 = vsub.f32 %v1438_v53, %v768_v42 }
 0x284   : > { %v745_v23 = vpop.xlane.xlu1 %744 }
 0x285   : > { %v800_v25 = vmul.f32 15.0, %v784_v22  ;;  %v769_v45 = vmul.f32 0.0625, %v745_v23  ;;  %831 = vst [vmem:[%s1494_s9 + $0x28] sm:$0xff] %v815_v21 }
 0x287   : > { %v816_v26 = vadd.f32 %v800_v25, %v283_v29  ;;  %v785_v28 = vsub.f32 %v1442_v59, %v769_v45 }
 0x288   : > { %v747_v30 = vpop.xlane.xlu0 %746 }
 0x289   : > { %v801_v31 = vmul.f32 15.0, %v785_v28  ;;  %v770_v49 = vmul.f32 0.0625, %v747_v30  ;;  %832 = vst [vmem:[%s1494_s9 + $0x30] sm:$0xff] %v816_v26 }
 0x28b   : > { %v817_v32 = vadd.f32 %v801_v31, %v284_v40  ;;  %v786_v55 = vsub.f32 %v1446_v63, %v770_v49 }
 0x28c   : > { %v749_v33 = vpop.xlane.xlu1 %748 }
 0x28d   : > { %v802_v35 = vmul.f32 15.0, %v786_v55  ;;  %v771_v53 = vmul.f32 0.0625, %v749_v33  ;;  %833 = vst [vmem:[%s1494_s9 + $0x38] sm:$0xff] %v817_v32 }
 0x28f   : > { %v818_v36 = vadd.f32 %v802_v35, %v285_v41  ;;  %v787_v37 = vsub.f32 %v1450_v3, %v771_v53 }
 0x290   : > { %v751_v39 = vpop.xlane.xlu0 %750 }
 0x291   : > { %v803_v29 = vmul.f32 15.0, %v787_v37  ;;  %v772_v59 = vmul.f32 0.0625, %v751_v39  ;;  %834 = vst [vmem:[%s1494_s9 + $0x40] sm:$0xff] %v818_v36 }
 0x293   : > { %v819_v44 = vadd.f32 %v803_v29, %v1482_v43  ;;  %v788_v7 = vsub.f32 %v1454_v8, %v772_v59 }
 0x294   : > { %v753_v40 = vpop.xlane.xlu1 %752 }
 0x295   : > { %v804_v63 = vmul.f32 15.0, %v788_v7  ;;  %v773_v52 = vmul.f32 0.0625, %v753_v40  ;;  %835 = vst [vmem:[%s1494_s9 + $0x48] sm:$0xff] %v819_v44 }
 0x297   : > { %v820_v56 = vadd.f32 %v804_v63, %v1484_v46  ;;  %v789_v41 = vsub.f32 %v1458_v12, %v773_v52 }
 0x298   : > { %v755_v3 = vpop.xlane.xlu0 %754 }
 0x299   : > { %v805_v57 = vmul.f32 15.0, %v789_v41  ;;  %v774_v58 = vmul.f32 0.0625, %v755_v3  ;;  %836 = vst [vmem:[%s1494_s9 + $0x50] sm:$0xff] %v820_v56 }
 0x29b   : > { %v821_v60 = vadd.f32 %v805_v57, %v1486_v47  ;;  %v790_v43 = vsub.f32 %v1462_v16, %v774_v58 }
 0x29c   : > { %v757_v8 = vpop.xlane.xlu1 %756 }
 0x29d   : > { %v806_v61 = vmul.f32 15.0, %v790_v43  ;;  %v775_v62 = vmul.f32 0.0625, %v757_v8  ;;  %837 = vst [vmem:[%s1494_s9 + $0x58] sm:$0xff] %v821_v60 }
 0x29f   : > { %v822_v0 = vadd.f32 %v806_v61, %v1488_v48  ;;  %v791_v46 = vsub.f32 %v1466_v20, %v775_v62 }
 0x2a0   : > { %v759_v12 = vpop.xlane.xlu0 %758 }
 0x2a1   : > { %v807_v1 = vmul.f32 15.0, %v791_v46  ;;  %v776_v2 = vmul.f32 0.0625, %v759_v12  ;;  %838 = vst [vmem:[%s1494_s9 + $0x60] sm:$0xff] %v822_v0 }
 0x2a3   : > { %v823_v4 = vadd.f32 %v807_v1, %v1496_v54  ;;  %v792_v47 = vsub.f32 %v1470_v24, %v776_v2 }
 0x2a4   : > { %v761_v5 = vpop.xlane.xlu1 %760 }
 0x2a5   : > { %v808_v16 = vmul.f32 15.0, %v792_v47  ;;  %839 = vst [vmem:[%s1494_s9 + $0x68] sm:$0xff] %v823_v4  ;;  %v777_v6 = vmul.f32 0.0625, %v761_v5 }
 0x2a7   : > { %v824_v9 = vadd.f32 %v808_v16, %v1498_v50  ;;  %v793_v34 = vsub.f32 %v1474_v27, %v777_v6 }
 0x2a9   : > { %v809_v48 = vmul.f32 15.0, %v793_v34  ;;  %840 = vst [vmem:[%s1494_s9 + $0x70] sm:$0xff] %v824_v9 }
 0x2ab   : > { %v825_v20 = vadd.f32 %v809_v48, %v1500_v51 }
 0x2ad   : > { %841 = vst [vmem:[%s1494_s9 + $0x78] sm:$0xff] %v825_v20 }
 0x2ae PF: > { %s16_s21 = sadd.s32 1, %s1083_s21  }
 0x2af   : > { %p13_p4 = scmp.ge.s32.totalorder %s16_s21, 4  }
 0x2b1   :  { %15 = sbr.rel (!%p13_p4) target bundleno = 1 (0x1), region = 77 }

// kernel: engcn_forward.5
= control target key start
LH: loop header
LB: loop body
LE: loop exit
PB: predicated region body
PF: predicated region fallthrough
CT: control target
= control target key end

     0   :  { %s2935_s0 = inlined_call_operand.vmem [shape: bf16[256,256], index: 0, kind: input, shape index: {}]   ;;  %s2936_s1 = inlined_call_operand.vmem [shape: bf16[256,128], index: 1, kind: input, shape index: {}]   ;;  %s2937_s2 = inlined_call_operand.vmem [shape: f32[256,1], index: 2, kind: input, shape index: {}]   ;;  %s2938_s3 = inlined_call_operand.vmem [shape: f32[128,256], index: 3, kind: input, shape index: {}]   ;;  %s2939_s4 = inlined_call_operand.vmem [shape: f32[1,256], index: 4, kind: input, shape index: {}]   ;;  %s2940_s5 = inlined_call_operand.vmem [shape: f32[256,128], index: 5, kind: input, shape index: {}]   ;;  %s2941_s6 = inlined_call_operand.vmem [shape: f32[1,128], index: 6, kind: input, shape index: {}]   ;;  %s2942_s7 = inlined_call_operand.vmem [shape: f32[256,128], index: 7, kind: input, shape index: {}, may-alias: {7,9}]   ;;  %s2943_s8 = inlined_call_operand.hbm [shape: f32[256,128], index: 8, kind: output, shape index: {0}]   ;;  %s2944_s9 = inlined_call_operand.vmem [shape: f32[256,128], index: 9, kind: output, shape index: {1}, may-alias: {7,9}]  }
   0x1   :  { %2955 = sst [smem:[#allocation16_spill]] %s2935_s0 }
   0x2   :  { %2956 = sst [smem:[#allocation17_spill]] %s2943_s8 }
   0x3   :  { %15 = vsyncpa [#allocation4], 0 }
   0x4   :  { %17 = vsyncpa [#allocation4 + $0x1], 0  ;;  %s2218_s30 = smov 0   ;;  %s2220_s10 = smov 0  }
   0x5   :  { %s2222_s11 = smov 0   ;;  %s2224_s12 = smov 0  }
   0x6   :  { %s2226_s13 = smov 0   ;;  %s2228_s14 = smov 0  }
   0x7   :  { %s2230_s15 = smov 0   ;;  %s2232_s16 = smov 0  }
   0x8   :  { %s2234_s17 = smov 0   ;;  %s2236_s18 = smov 0  }
   0x9 LB: > { %2957 = sst [smem:[#allocation6_spill]] %s2124_s30  ;;  %s1687_s19 = sadd.s32 4294967295, %s2160_s18   ;;  %s2160_s18 = sphi %s2236_s18, %s23_s18   ;;  %s2156_s17 = sphi %s2234_s17, %s2982_s17   ;;  %s2152_s16 = sphi %s2232_s16, %s2981_s16   ;;  %s2148_s15 = sphi %s2230_s15, %s2980_s15   ;;  %s2144_s14 = sphi %s2228_s14, %s2979_s14   ;;  %s2140_s13 = sphi %s2226_s13, %s2978_s13   ;;  %s2136_s12 = sphi %s2224_s12, %s2977_s12   ;;  %s2132_s11 = sphi %s2222_s11, %s2976_s11   ;;  %s2128_s10 = sphi %s2220_s10, %s2984_s10   ;;  %s2124_s30 = sphi %s2218_s30, %s2983_s30  }
   0xa   : > { %2958 = sst [smem:[#allocation7_spill]] %s2132_s11  ;;  %s1688_s20 = sadd.s32 4294967294, %s2160_s18  }
   0xb   : > { %2959 = sst [smem:[#allocation8_spill]] %s2140_s13  ;;  %s32_s21 = sadd.s32 1, %s2152_s16 }
   0xc   : > { %2960 = sst [smem:[#allocation9_spill]] %s2152_s16  ;;  %s35_s22 = sadd.s32 1, %s2156_s17 }
   0xd   : > { %2961 = sst [smem:[#allocation10_spill]] %s2156_s17  ;;  %p33_p0 = scmp.ge.s32.totalorder %s32_s21, 2 }
   0xe   : > { %s44_s23 = sadd.s32 1, %s2140_s13  ;;  %p51_p1 = scmp.ne.s32.totalorder %s2140_s13, %s2136_s12 }
   0xf   : > { %p52_p2 = scmp.eq.s32.totalorder %s2160_s18, 0  ;;  %s2986_s21 = smov (%p33_p0, %s32_s21), 0 }
  0x10   : > { %2962 = sst [smem:[#allocation11_spill]] %s2986_s21  ;;  %s2988_s22 = smov (!%p33_p0, %s35_s22), %s2156_s17 }
  0x11   : > { %s40_s24 = ssub.s32 %s2152_s16, %s2986_s21  ;;  %p2281_p3 = por %p52_p2, %p51_p1 }
  0x12   : > { %p37_p4 = scmp.ge.s32.totalorder %s2988_s22, 2  ;;  %s232_s26 = sadd.s32 1, %s2132_s11 }
  0x13   : > { %p242_p5 = scmp.ne.s32.totalorder %s2132_s11, %s2128_s10  ;;  %p243_p6 = scmp.eq.s32.totalorder %s1687_s19, 3 }
  0x14   : > { %s2990_s22 = smov (%p37_p4, %s2988_s22), 0  ;;  %p248_p8 = scmp.ne.s32.totalorder %s2128_s10, %s2124_s30 }
  0x15   : > { %2964 = sst [smem:[#allocation12_spill]] %s2990_s22  ;;  %p2290_p7 = por %p243_p6, %p242_p5 }
  0x16   : > { %s39_s28 = ssub.s32 %s2156_s17, %s2990_s22  ;;  %p249_p9 = scmp.eq.s32.totalorder %s1688_s20, 3 }
  0x17   : > { %s41_s29 = sor.u32 %s40_s24, %s39_s28  ;;  %p230_p10 = scmp.eq.s32.totalorder %s39_s28, 0 }
  0x18   : > { %p42_p11 = scmp.eq.s32.totalorder %s41_s29, 0  ;;  %p2298_p12 = por %p249_p9, %p248_p8 }
  0x19   : > { %s2303_s8 = scalar_select %p230_p10, %s2132_s11, %s232_s26  }
  0x1a   : > { %s2966_s21 = scalar_select %p2298_p12, 1, 0 }
  0x1b   : > { %2968 = sst [smem:[#allocation14_spill]] %s2303_s8  ;;  %p1690_p13 = scmp.ge.s32.totalorder %s2160_s18, 4 }
  0x1c   : > { %2967 = sst [smem:[#allocation13_spill]] %s2966_s21 }
  0x1d   : > { %s2306_s19 = scalar_select %p42_p11, %s2140_s13, %s44_s23  }
  0x1e   : > { %303 = sbr.rel (%p1690_p13) target bundleno = 57 (0x39), region = 32 }
  0x1f   : > { %2969 = sst [smem:[#allocation15_spill]] %s2306_s19 }
  0x25   : > { %306 = sbr.rel (!%p2281_p3) target bundleno = 57 (0x39), region = 36  ;;  %s308_s20 = sand.u32 (%p2281_p3), 1, %s2140_s13  }
  0x26   : > { %s1730_s24 = sshll.u32 (%p2281_p3), %s2156_s17, 5  ;;  %s1691_s28 = sshll.u32 (%p2281_p3), %s308_s20, 6 }
  0x27   : > { %s313_s29 = sadd.s32 (%p2281_p3), %s2152_s16, %s1730_s24  ;;  %s2970_s0 = sld [smem:[#allocation16_spill]] (%p2281_p3) }
  0x28   : > { %s1694_s22 = sshll.u32 (%p2281_p3), %s313_s29, 2  ;;  %s310_s23 = scalar_lea.vmem (%p2281_p3), [#allocation2], %s1691_s28 }
  0x2d   : > { %s2317_s26 = scalar_lea.vmem %s2970_s0, %s1694_s22 }
  0x2e   : > { %v331_v0 = vld [vmem:[%s2317_s26] sm:$0xf]  ;;  %v333_v1 = vld [vmem:[%s2317_s26 + $0x8] sm:$0xf]  ;;  %v335_v2 = vld [vmem:[%s2317_s26 + $0x10] sm:$0xf] }
  0x2f   : > { %332 = vst [vmem:[%s310_s23] sm:$0xf] %v331_v0  ;;  %334 = vst [vmem:[%s310_s23 + $0x4] sm:$0xf] %v333_v1  ;;  %v337_v3 = vld [vmem:[%s2317_s26 + $0x18] sm:$0xf] }
  0x30   : > { %336 = vst [vmem:[%s310_s23 + $0x8] sm:$0xf] %v335_v2  ;;  %v339_v4 = vld [vmem:[%s2317_s26 + $0x20] sm:$0xf]  ;;  %v341_v5 = vld [vmem:[%s2317_s26 + $0x28] sm:$0xf] }
  0x31   : > { %338 = vst [vmem:[%s310_s23 + $0xc] sm:$0xf] %v337_v3  ;;  %340 = vst [vmem:[%s310_s23 + $0x10] sm:$0xf] %v339_v4  ;;  %v343_v6 = vld [vmem:[%s2317_s26 + $0x30] sm:$0xf] }
  0x32   : > { %342 = vst [vmem:[%s310_s23 + $0x14] sm:$0xf] %v341_v5  ;;  %v345_v7 = vld [vmem:[%s2317_s26 + $0x38] sm:$0xf]  ;;  %v347_v8 = vld [vmem:[%s2317_s26 + $0x40] sm:$0xf] }
  0x33   : > { %344 = vst [vmem:[%s310_s23 + $0x18] sm:$0xf] %v343_v6  ;;  %346 = vst [vmem:[%s310_s23 + $0x1c] sm:$0xf] %v345_v7  ;;  %v349_v9 = vld [vmem:[%s2317_s26 + $0x48] sm:$0xf] }
  0x34   : > { %348 = vst [vmem:[%s310_s23 + $0x20] sm:$0xf] %v347_v8  ;;  %v351_v10 = vld [vmem:[%s2317_s26 + $0x50] sm:$0xf]  ;;  %v353_v11 = vld [vmem:[%s2317_s26 + $0x58] sm:$0xf] }
  0x35   : > { %350 = vst [vmem:[%s310_s23 + $0x24] sm:$0xf] %v349_v9  ;;  %352 = vst [vmem:[%s310_s23 + $0x28] sm:$0xf] %v351_v10  ;;  %v355_v12 = vld [vmem:[%s2317_s26 + $0x60] sm:$0xf] }
  0x36   : > { %354 = vst [vmem:[%s310_s23 + $0x2c] sm:$0xf] %v353_v11  ;;  %v357_v13 = vld [vmem:[%s2317_s26 + $0x68] sm:$0xf]  ;;  %v359_v14 = vld [vmem:[%s2317_s26 + $0x70] sm:$0xf] }
  0x37   : > { %356 = vst [vmem:[%s310_s23 + $0x30] sm:$0xf] %v355_v12  ;;  %358 = vst [vmem:[%s310_s23 + $0x34] sm:$0xf] %v357_v13  ;;  %v361_v15 = vld [vmem:[%s2317_s26 + $0x78] sm:$0xf] }
  0x38   : > { %360 = vst [vmem:[%s310_s23 + $0x38] sm:$0xf] %v359_v14  ;;  %362 = vst [vmem:[%s310_s23 + $0x3c] sm:$0xf] %v361_v15 }
  0x39 PF: > { %p1695_p0 = scmp.ge.s32.totalorder %s2160_s18, 1  ;;  %p443_p1 = scmp.lt.s32.totalorder %s2160_s18, 5 }
  0x3b   : > { %p444_p2 = pnand %p1695_p0, %p443_p1 }
  0x3c   : > { %s450_s30 = sand.u32 (!%p444_p2), 1, %s2136_s12   ;;  %s2952_s21 = sand.u32 (!%p444_p2), 1, %s2128_s10  }
  0x3d   : > { %447 = sbr.rel (%p444_p2) target bundleno = 1110 (0x456), region = 89  ;;  %s1696_s22 = sshll.u32 (!%p444_p2), %s450_s30, 6 }
  0x3e   : > { %s1697_s25 = sshll.u32 (!%p444_p2), %s2952_s21, 7  ;;  %s1698_s20 = sshll.u32 (!%p444_p2), %s2144_s14, 4 }
  0x3f   : > { %s1700_s24 = sshll.u32 (!%p444_p2), %s2148_s15, 4  ;;  %p507_p3 = scmp.lt.s32.totalorder (!%p444_p2), %s1698_s20, 31 }
  0x40   : > { %p513_p4 = scmp.lt.s32.totalorder (!%p444_p2), %s1700_s24, 31  ;;  %s2363_s11 = scalar_lea.vmem (!%p444_p2), [#allocation2], %s1696_s22 }
  0x41   : > { %p1706_p5 = scmp.ne.s32.totalorder (!%p444_p2), %s2144_s14, 0 }
  0x44   : > { %s2992_s20 = smov (!%p507_p3, %s1698_s20), 31  ;;  %s2994_s24 = smov (!%p513_p4, %s1700_s24), 31 }
  0x45   : > { %s1699_s28 = sshll.u32 %s2992_s20, 2  ;;  %s1701_s0 = sshll.u32 %s2994_s24, 3  ;;  %v2162_v16 = vmov (!%p1706_p5), 0.0  }
  0x46   : > { %s2346_s23 = scalar_lea.vmem %s2936_s1, %s1699_s28  ;;  %s2351_s12 = scalar_lea.vmem %s2937_s2, %s1701_s0 }
  0x47   : > { %s2356_s19 = scalar_lea.vmem %s2942_s7, %s1701_s0  ;;  %s2361_s20 = scalar_lea.vmem %s2944_s9, %s1701_s0 }
  0x48   : > { %s2365_s28 = scalar_lea.vmem [#allocation3], %s1697_s25  ;;  %535 = sbr.rel (%p1706_p5) target bundleno = 81 (0x51), region = 97 }
  0x49   : > { %536 = vst [vmem:[%s2365_s28] sm:$0xff] (!%p1706_p5), %v2162_v16  ;;  %537 = vst [vmem:[%s2365_s28 + $0x8] sm:$0xff] (!%p1706_p5), %v2162_v16 }
  0x4a   : > { %538 = vst [vmem:[%s2365_s28 + $0x10] sm:$0xff] (!%p1706_p5), %v2162_v16  ;;  %539 = vst [vmem:[%s2365_s28 + $0x18] sm:$0xff] (!%p1706_p5), %v2162_v16 }
  0x4b   : > { %540 = vst [vmem:[%s2365_s28 + $0x20] sm:$0xff] (!%p1706_p5), %v2162_v16  ;;  %541 = vst [vmem:[%s2365_s28 + $0x28] sm:$0xff] (!%p1706_p5), %v2162_v16 }
  0x4c   : > { %542 = vst [vmem:[%s2365_s28 + $0x30] sm:$0xff] (!%p1706_p5), %v2162_v16  ;;  %543 = vst [vmem:[%s2365_s28 + $0x38] sm:$0xff] (!%p1706_p5), %v2162_v16 }
  0x4d   : > { %544 = vst [vmem:[%s2365_s28 + $0x40] sm:$0xff] (!%p1706_p5), %v2162_v16  ;;  %545 = vst [vmem:[%s2365_s28 + $0x48] sm:$0xff] (!%p1706_p5), %v2162_v16 }
  0x4e   : > { %546 = vst [vmem:[%s2365_s28 + $0x50] sm:$0xff] (!%p1706_p5), %v2162_v16  ;;  %547 = vst [vmem:[%s2365_s28 + $0x58] sm:$0xff] (!%p1706_p5), %v2162_v16 }
  0x4f   : > { %548 = vst [vmem:[%s2365_s28 + $0x60] sm:$0xff] %v2162_v16  ;;  %549 = vst [vmem:[%s2365_s28 + $0x68] sm:$0xff] %v2162_v16 }
  0x50   : > { %550 = vst [vmem:[%s2365_s28 + $0x70] sm:$0xff] %v2162_v16  ;;  %551 = vst [vmem:[%s2365_s28 + $0x78] sm:$0xff] %v2162_v16 }
  0x51 PF: > { %v2032_v17 = vld [vmem:[%s2346_s23] sm:$0xff]   ;;  %v2033_v18 = vld [vmem:[%s2346_s23 + $0x8] sm:$0xff]   ;;  %v2034_v19 = vld [vmem:[%s2346_s23 + $0x10] sm:$0xff]   ;;  %p1723_p6 = scmp.ne.s32.totalorder %s2144_s14, 1 }
  0x52   : > { %1828 = vmatprep.subr.bf16.mxu0 %v2032_v17  ;;  %1924 = vmatprep.subr.bf16.mxu1 %v2032_v17  ;;  %v2035_v20 = vld [vmem:[%s2346_s23 + $0x18] sm:$0xff]   ;;  %v2040_v21 = vld [vmem:[%s2363_s11] sm:$0xff]   ;;  %v2037_v24 = vld [vmem:[%s2346_s23 + $0x28] sm:$0xff]  }
  0x53   : > { %1829 = vmatpush3.bf16.msra.mxu0 %v2032_v17  ;;  %1932 = vmatpush3.bf16.msra.mxu1 %v2032_v17  ;;  %v2041_v22 = vld [vmem:[%s2363_s11 + $0x20] sm:$0xff]   ;;  %v2038_v25 = vld [vmem:[%s2346_s23 + $0x30] sm:$0xff]   ;;  %v2039_v26 = vld [vmem:[%s2346_s23 + $0x38] sm:$0xff]  }
  0x54   : > { %1830 = vmatprep.subr.bf16.mxu0 %v2033_v18  ;;  %1925 = vmatprep.subr.bf16.mxu1 %v2033_v18  ;;  %v2036_v23 = vld [vmem:[%s2346_s23 + $0x20] sm:$0xff]   ;;  %v2042_v27 = vld [vmem:[%s2363_s11 + $0x8] sm:$0xff]   ;;  %v2044_v29 = vld [vmem:[%s2363_s11 + $0x10] sm:$0xff]  }
  0x55   : > { %1844 = vmatprep.mubr.bf16.mxu0 %v2040_v21  ;;  %1852 = vmatprep.mubr.bf16.mxu1 %v2041_v22  ;;  %v2043_v28 = vld [vmem:[%s2363_s11 + $0x28] sm:$0xff]   ;;  %v2045_v30 = vld [vmem:[%s2363_s11 + $0x30] sm:$0xff]   ;;  %v2046_v31 = vld [vmem:[%s2363_s11 + $0x18] sm:$0xff]   ;;  %v2164_v22 = vmov (!%p1723_p6), 0.0  }
  0x56   : > { %v2047_v32 = vld [vmem:[%s2363_s11 + $0x38] sm:$0xff]   ;;  %v554_v33 = vld [vmem:[%s2365_s28 + $0x10] sm:$0xff]  ;;  %v552_v35 = vld [vmem:[%s2365_s28] sm:$0xff] }
  0x57   : > { %1831 = vmatpush3.bf16.msra.mxu0 %v2033_v18  ;;  %1933 = vmatpush3.bf16.msra.mxu1 %v2033_v18  ;;  %v562_v34 = vld [vmem:[%s2365_s28 + $0x50] sm:$0xff]  ;;  %v560_v36 = vld [vmem:[%s2365_s28 + $0x40] sm:$0xff]  ;;  %v555_v39 = vld [vmem:[%s2365_s28 + $0x18] sm:$0xff] }
  0x58   : > { %1832 = vmatprep.subr.bf16.mxu0 %v2034_v19  ;;  %1926 = vmatprep.subr.bf16.mxu1 %v2034_v19  ;;  %v563_v40 = vld [vmem:[%s2365_s28 + $0x58] sm:$0xff]  ;;  %v553_v45 = vld [vmem:[%s2365_s28 + $0x8] sm:$0xff]  ;;  %v558_v57 = vld [vmem:[%s2365_s28 + $0x30] sm:$0xff] }
  0x59   : > { %v561_v46 = vld [vmem:[%s2365_s28 + $0x48] sm:$0xff]  ;;  %v566_v58 = vld [vmem:[%s2365_s28 + $0x70] sm:$0xff]  ;;  %v556_v59 = vld [vmem:[%s2365_s28 + $0x20] sm:$0xff] }
  0x5a   : > { %v564_v60 = vld [vmem:[%s2365_s28 + $0x60] sm:$0xff]  ;;  %v559_v63 = vld [vmem:[%s2365_s28 + $0x38] sm:$0xff]  ;;  %v557_v5 = vld [vmem:[%s2365_s28 + $0x28] sm:$0xff] }
  0x5b   : > { %1833 = vmatpush3.bf16.msra.mxu0 %v2034_v19  ;;  %1934 = vmatpush3.bf16.msra.mxu1 %v2034_v19  ;;  %v567_v0 = vld [vmem:[%s2365_s28 + $0x78] sm:$0xff]  ;;  %v565_v6 = vld [vmem:[%s2365_s28 + $0x68] sm:$0xff]  ;;  %v831_v17 = vld [vmem:[%s2351_s12 + $0x10] sm:$0xff] (!%p1723_p6)  ;;  %v2163_v19 = vmov (!%p1723_p6), 0  }
  0x5c   : > { %1834 = vmatprep.subr.bf16.mxu0 %v2035_v20  ;;  %1927 = vmatprep.subr.bf16.mxu1 %v2035_v20  ;;  %v829_v18 = vld [vmem:[%s2351_s12] sm:$0xff] (!%p1723_p6)  ;;  %v830_v21 = vld [vmem:[%s2351_s12 + $0x8] sm:$0xff] (!%p1723_p6) }
  0x5d   : > { %2049 = vset.pattern.permute.xlu1 (!%p1723_p6), %v2163_v19  ;;  %2048 = vset.pattern.permute.xlu0 (!%p1723_p6), %v2163_v19  ;;  %v1038_v19 = vld [vmem:[%s2940_s5 + $0x80] sm:$0xff] (!%p1723_p6) }
  0x5e   : > { %873 = vperm.xlu1 (!%p1723_p6), %2049, %v831_v17   ;;  %863 = vperm.xlu0 (!%p1723_p6), %2048, %v829_v18   ;;  %v1019_v17 = vld [vmem:[%s2938_s3 + $0xf0] sm:$0xff] (!%p1723_p6) }
  0x5f   : > { %1835 = vmatpush3.bf16.msra.mxu0 %v2035_v20  ;;  %1935 = vmatpush3.bf16.msra.mxu1 %v2035_v20  ;;  %v832_v20 = vld [vmem:[%s2351_s12 + $0x18] sm:$0xff] (!%p1723_p6) }
  0x60   : > { %1836 = vmatprep.subr.bf16.mxu0 %v2036_v23  ;;  %1928 = vmatprep.subr.bf16.mxu1 %v2036_v23 }
  0x62   : > { %878 = vperm.xlu1 (!%p1723_p6), %2049, %v832_v20   ;;  %868 = vperm.xlu0 (!%p1723_p6), %2048, %v830_v21   ;;  %v1039_v20 = vld [vmem:[%s2940_s5 + $0x88] sm:$0xff] (!%p1723_p6)  ;;  %v1022_v21 = vld [vmem:[%s2940_s5] sm:$0xff] (!%p1723_p6) }
  0x63   : > { %1837 = vmatpush3.bf16.msra.mxu0 %v2036_v23  ;;  %1936 = vmatpush3.bf16.msra.mxu1 %v2036_v23  ;;  %v834_v23 = vld [vmem:[%s2351_s12 + $0x28] sm:$0xff] (!%p1723_p6) }
  0x64   : > { %1838 = vmatprep.subr.bf16.mxu0 %v2037_v24  ;;  %1929 = vmatprep.subr.bf16.mxu1 %v2037_v24 }
  0x66   : > { %888 = vperm.xlu1 (!%p1723_p6), %2049, %v834_v23   ;;  %v1892_v23 = vpack.c.bf16 (!%p1723_p6), %v1039_v20, %v1038_v19 }
  0x67   : > { %1839 = vmatpush3.bf16.msra.mxu0 %v2037_v24  ;;  %1937 = vmatpush3.bf16.msra.mxu1 %v2037_v24  ;;  %v833_v24 = vld [vmem:[%s2351_s12 + $0x20] sm:$0xff] (!%p1723_p6) }
  0x68   : > { %1840 = vmatprep.subr.bf16.mxu0 %v2038_v25  ;;  %1930 = vmatprep.subr.bf16.mxu1 %v2038_v25 }
  0x69   : > { %883 = vperm.xlu0 (!%p1723_p6), %2048, %v833_v24   ;;  %v1023_v24 = vld [vmem:[%s2940_s5 + $0x8] sm:$0xff] (!%p1723_p6) }
  0x6b   : > { %1841 = vmatpush3.bf16.msra.mxu0 %v2038_v25  ;;  %1938 = vmatpush3.bf16.msra.mxu1 %v2038_v25  ;;  %v990_v25 = vld [vmem:[%s2938_s3 + $0x8] sm:$0xff] (!%p1723_p6) }
  0x6c   : > { %1842 = vmatprep.subr.bf16.mxu0 %v2039_v26  ;;  %1931 = vmatprep.subr.bf16.mxu1 %v2039_v26 }
  0x6f   : > { %1843 = vmatpush3.bf16.msra.mxu0 %v2039_v26  ;;  %1939 = vmatpush3.bf16.msra.mxu1 %v2039_v26  ;;  %v992_v26 = vld [vmem:[%s2938_s3 + $0x18] sm:$0xff] (!%p1723_p6) }
  0x70   : > { %1893 = vmatprep.subr.bf16.mxu1 (!%p1723_p6), %v1892_v23 }
  0x72   : > { %1845 = vmatmul.mubr.bf16.vlgmr.msra.gmra.mrb[0].mxu0 %v2042_v27  ;;  %1853 = vmatmul.mubr.bf16.vlgmr.msra.gmra.mrb[0].mxu1 %v2043_v28  ;;  %v1860_v27 = vpack.c.bf16 (!%p1723_p6), %v992_v26, %v990_v25  ;;  %v989_v28 = vld [vmem:[%s2938_s3] sm:$0xff] (!%p1723_p6)  ;;  %v1040_v25 = vld [vmem:[%s2940_s5 + $0x90] sm:$0xff] (!%p1723_p6)  ;;  %v1041_v26 = vld [vmem:[%s2940_s5 + $0x98] sm:$0xff] (!%p1723_p6) }
  0x73   : > { %1848 = vmatprep.mubr.bf16.mxu0 %v2044_v29  ;;  %1856 = vmatprep.mubr.bf16.mxu1 %v2045_v30  ;;  %v991_v29 = vld [vmem:[%s2938_s3 + $0x10] sm:$0xff] (!%p1723_p6)  ;;  %v994_v30 = vld [vmem:[%s2938_s3 + $0x28] sm:$0xff] (!%p1723_p6) }
  0x74   : > { %1861 = vmatprep.subr.bf16.mxu0 (!%p1723_p6), %v1860_v27  ;;  %v1894_v27 = vpack.c.bf16 (!%p1723_p6), %v1023_v24, %v1022_v21 }
  0x76   : > { %1895 = vmatpush3.bf16.msra.mxu1 (!%p1723_p6), %v1894_v27 }
  0x7a   : > { %1849 = vmatmul.mubr.bf16.gmra.mrb[4].mxu0 %v2046_v31  ;;  %1857 = vmatmul.mubr.bf16.gmra.mrb[4].mxu1 %v2047_v32  ;;  %v1862_v31 = vpack.c.bf16 (!%p1723_p6), %v991_v29, %v989_v28  ;;  %v996_v32 = vld [vmem:[%s2938_s3 + $0x38] sm:$0xff] (!%p1723_p6)  ;;  %v1896_v28 = vpack.c.bf16 (!%p1723_p6), %v1041_v26, %v1040_v25  ;;  %v1024_v29 = vld [vmem:[%s2940_s5 + $0x10] sm:$0xff] (!%p1723_p6) }
  0x7b   : > { %1130 = vmatprep.mubr.f32.mxu0 (!%p1723_p6), %v2164_v22 }
  0x7c   : > { %1863 = vmatpush1.bf16.msra.mxu0 (!%p1723_p6), %v1862_v31  ;;  %v1042_v31 = vld [vmem:[%s2940_s5 + $0xa0] sm:$0xff] (!%p1723_p6)  ;;  %1897 = vmatprep.subr.bf16.mxu1 (!%p1723_p6), %v1896_v28 }
 0x145   : > { %v1846_v37 = vpop.f32.mrb[0].mxu0  ;;  %v1854_v38 = vpop.f32.mrb[0].mxu1 }
 0x146   : > { %v795_v41 = vadd.f32 %v1846_v37, %v554_v33  ;;  %v803_v42 = vadd.f32 %v1854_v38, %v562_v34  ;;  %v730_v43 = vpop.f32.mrb[1].mxu0  ;;  %v762_v44 = vpop.f32.mrb[1].mxu1  ;;  %v993_v33 = vld [vmem:[%s2938_s3 + $0x20] sm:$0xff] (!%p1723_p6)  ;;  %v995_v34 = vld [vmem:[%s2938_s3 + $0x30] sm:$0xff] (!%p1723_p6)  ;;  %v1000_v37 = vld [vmem:[%s2938_s3 + $0x58] sm:$0xff] (!%p1723_p6) }
 0x147   : > { %v793_v47 = vadd.f32 %v730_v43, %v552_v35  ;;  %v801_v48 = vadd.f32 %v762_v44, %v560_v36  ;;  %v1847_v49 = vpop.f32.mrb[2].mxu0  ;;  %v1855_v50 = vpop.f32.mrb[2].mxu1  ;;  %v1864_v35 = vpack.c.bf16 (!%p1723_p6), %v996_v32, %v994_v30  ;;  %v998_v36 = vld [vmem:[%s2938_s3 + $0x48] sm:$0xff] (!%p1723_p6)  ;;  %v1866_v38 = vpack.c.bf16 (!%p1723_p6), %v995_v34, %v993_v33  ;;  %v1025_v30 = vld [vmem:[%s2940_s5 + $0x18] sm:$0xff] (!%p1723_p6) }
 0x148   : > { %811 = vst [vmem:[%s2365_s28 + $0x10] sm:$0xff] %v795_v41  ;;  %819 = vst [vmem:[%s2365_s28 + $0x50] sm:$0xff] %v803_v42  ;;  %v796_v51 = vadd.f32 %v1847_v49, %v555_v39  ;;  %v804_v52 = vadd.f32 %v1855_v50, %v563_v40  ;;  %v733_v53 = vpop.f32.mrb[3].mxu0  ;;  %v765_v54 = vpop.f32.mrb[3].mxu1  ;;  %v997_v39 = vld [vmem:[%s2938_s3 + $0x40] sm:$0xff] (!%p1723_p6)  ;;  %v999_v40 = vld [vmem:[%s2938_s3 + $0x50] sm:$0xff] (!%p1723_p6)  ;;  %v1868_v43 = vpack.c.bf16 (!%p1723_p6), %v1000_v37, %v998_v36 }
 0x149   : > { %809 = vst [vmem:[%s2365_s28] sm:$0xff] %v793_v47  ;;  %817 = vst [vmem:[%s2365_s28 + $0x40] sm:$0xff] %v801_v48  ;;  %v794_v55 = vadd.f32 %v733_v53, %v553_v45  ;;  %v802_v56 = vadd.f32 %v765_v54, %v561_v46  ;;  %v836_v41 = vld [vmem:[%s2351_s12 + $0x38] sm:$0xff] (!%p1723_p6)  ;;  %v835_v42 = vld [vmem:[%s2351_s12 + $0x30] sm:$0xff] (!%p1723_p6)  ;;  %1865 = vmatprep.subr.bf16.mxu0 (!%p1723_p6), %v1864_v35  ;;  %v1870_v46 = vpack.c.bf16 (!%p1723_p6), %v999_v40, %v997_v39 }
 0x14a   : > { %812 = vst [vmem:[%s2365_s28 + $0x18] sm:$0xff] %v796_v51  ;;  %820 = vst [vmem:[%s2365_s28 + $0x58] sm:$0xff] %v804_v52  ;;  %v1002_v44 = vld [vmem:[%s2938_s3 + $0x68] sm:$0xff] (!%p1723_p6)  ;;  %v1004_v45 = vld [vmem:[%s2938_s3 + $0x78] sm:$0xff] (!%p1723_p6)  ;;  %1867 = vmatpush1.bf16.msra.mxu0 (!%p1723_p6), %v1866_v38  ;;  %898 = vperm.xlu1 (!%p1723_p6), %2049, %v836_v41   ;;  %v1898_v33 = vpack.c.bf16 (!%p1723_p6), %v1025_v30, %v1024_v29 }
 0x14b   : > { %810 = vst [vmem:[%s2365_s28 + $0x8] sm:$0xff] %v794_v55  ;;  %818 = vst [vmem:[%s2365_s28 + $0x48] sm:$0xff] %v802_v56  ;;  %893 = vperm.xlu0 (!%p1723_p6), %2048, %v835_v42   ;;  %v1001_v47 = vld [vmem:[%s2938_s3 + $0x60] sm:$0xff] (!%p1723_p6)  ;;  %v1003_v48 = vld [vmem:[%s2938_s3 + $0x70] sm:$0xff] (!%p1723_p6)  ;;  %1869 = vmatprep.subr.bf16.mxu0 (!%p1723_p6), %v1868_v43  ;;  %v1872_v51 = vpack.c.bf16 (!%p1723_p6), %v1004_v45, %v1002_v44 }
 0x14c   : > { %v838_v49 = vld [vmem:[%s2351_s12 + $0x48] sm:$0xff] (!%p1723_p6)  ;;  %v837_v50 = vld [vmem:[%s2351_s12 + $0x40] sm:$0xff] (!%p1723_p6)  ;;  %v1008_v53 = vld [vmem:[%s2938_s3 + $0x98] sm:$0xff] (!%p1723_p6)  ;;  %v1874_v54 = vpack.c.bf16 (!%p1723_p6), %v1003_v48, %v1001_v47  ;;  %1899 = vmatpush3.bf16.msra.mxu1 (!%p1723_p6), %v1898_v33 }
 0x14d   : > { %v1850_v61 = vpop.f32.mrb[4].mxu0  ;;  %v1858_v62 = vpop.f32.mrb[4].mxu1  ;;  %828 = sbr.rel (%p1723_p6) target bundleno = 1083 (0x43b), region = 101  ;;  %v1006_v52 = vld [vmem:[%s2938_s3 + $0x88] sm:$0xff] (!%p1723_p6)  ;;  %v1005_v55 = vld [vmem:[%s2938_s3 + $0x80] sm:$0xff] (!%p1723_p6)  ;;  %v1007_v56 = vld [vmem:[%s2938_s3 + $0x90] sm:$0xff] (!%p1723_p6) }
 0x14e   : > { %v799_v1 = vadd.f32 %v1850_v61, %v558_v57  ;;  %v807_v2 = vadd.f32 %v1858_v62, %v566_v58  ;;  %v746_v3 = vpop.f32.mrb[5].mxu0  ;;  %v778_v4 = vpop.f32.mrb[5].mxu1  ;;  %1871 = vmatpush1.bf16.msra.mxu0 (!%p1723_p6), %v1870_v46  ;;  %908 = vperm.xlu1 (!%p1723_p6), %2049, %v838_v49   ;;  %v840_v57 = vld [vmem:[%s2351_s12 + $0x58] sm:$0xff] (!%p1723_p6)  ;;  %v839_v58 = vld [vmem:[%s2351_s12 + $0x50] sm:$0xff] (!%p1723_p6)  ;;  %v1878_v62 = vpack.c.bf16 (!%p1723_p6), %v1007_v56, %v1005_v55  ;;  %v1043_v32 = vld [vmem:[%s2940_s5 + $0xa8] sm:$0xff] (!%p1723_p6) }
 0x14f   : > { %v797_v7 = vadd.f32 %v746_v3, %v556_v59  ;;  %v805_v8 = vadd.f32 %v778_v4, %v564_v60  ;;  %v1851_v9 = vpop.f32.mrb[6].mxu0  ;;  %v1859_v10 = vpop.f32.mrb[6].mxu1  ;;  %903 = vperm.xlu0 (!%p1723_p6), %2048, %v837_v50   ;;  %1873 = vmatprep.subr.bf16.mxu0 (!%p1723_p6), %v1872_v51  ;;  %v1876_v59 = vpack.c.bf16 (!%p1723_p6), %v1008_v53, %v1006_v52  ;;  %v1010_v60 = vld [vmem:[%s2938_s3 + $0xa8] sm:$0xff] (!%p1723_p6)  ;;  %v1012_v61 = vld [vmem:[%s2938_s3 + $0xb8] sm:$0xff] (!%p1723_p6)  ;;  %v1026_v35 = vld [vmem:[%s2940_s5 + $0x20] sm:$0xff] (!%p1723_p6) }
 0x150   : > { %815 = vst [vmem:[%s2365_s28 + $0x30] sm:$0xff] %v799_v1  ;;  %823 = vst [vmem:[%s2365_s28 + $0x70] sm:$0xff] %v807_v2  ;;  %v800_v11 = vadd.f32 %v1851_v9, %v559_v63  ;;  %v808_v12 = vadd.f32 %v1859_v10, %v567_v0  ;;  %v749_v13 = vpop.f32.mrb[7].mxu0  ;;  %v781_v14 = vpop.f32.mrb[7].mxu1  ;;  %v1009_v63 = vld [vmem:[%s2938_s3 + $0xa0] sm:$0xff] (!%p1723_p6)  ;;  %v1011_v0 = vld [vmem:[%s2938_s3 + $0xb0] sm:$0xff] (!%p1723_p6)  ;;  %v1880_v3 = vpack.c.bf16 (!%p1723_p6), %v1012_v61, %v1010_v60 }
 0x151   : > { %813 = vst [vmem:[%s2365_s28 + $0x20] sm:$0xff] %v797_v7  ;;  %821 = vst [vmem:[%s2365_s28 + $0x60] sm:$0xff] %v805_v8  ;;  %v798_v15 = vadd.f32 %v749_v13, %v557_v5  ;;  %v806_v16 = vadd.f32 %v781_v14, %v565_v6  ;;  %v842_v1 = vld [vmem:[%s2351_s12 + $0x68] sm:$0xff] (!%p1723_p6)  ;;  %v841_v2 = vld [vmem:[%s2351_s12 + $0x60] sm:$0xff] (!%p1723_p6)  ;;  %v1882_v6 = vpack.c.bf16 (!%p1723_p6), %v1011_v0, %v1009_v63  ;;  %v874_v61 = vpop.permute.xlu1 (!%p1723_p6), %873 }
 0x152   : > { %816 = vst [vmem:[%s2365_s28 + $0x38] sm:$0xff] %v800_v11  ;;  %824 = vst [vmem:[%s2365_s28 + $0x78] sm:$0xff] %v808_v12  ;;  %1875 = vmatpush1.bf16.msra.mxu0 (!%p1723_p6), %v1874_v54  ;;  %918 = vperm.xlu1 (!%p1723_p6), %2049, %v840_v57   ;;  %v1014_v4 = vld [vmem:[%s2938_s3 + $0xc8] sm:$0xff] (!%p1723_p6)  ;;  %v1016_v5 = vld [vmem:[%s2938_s3 + $0xd8] sm:$0xff] (!%p1723_p6)  ;;  %v1900_v34 = vpack.c.bf16 (!%p1723_p6), %v1043_v32, %v1042_v31 }
 0x153   : > { %814 = vst [vmem:[%s2365_s28 + $0x28] sm:$0xff] %v798_v15  ;;  %822 = vst [vmem:[%s2365_s28 + $0x68] sm:$0xff] %v806_v16  ;;  %913 = vperm.xlu0 (!%p1723_p6), %2048, %v839_v58   ;;  %1877 = vmatprep.subr.bf16.mxu0 (!%p1723_p6), %v1876_v59  ;;  %v844_v7 = vld [vmem:[%s2351_s12 + $0x78] sm:$0xff] (!%p1723_p6)  ;;  %v1013_v8 = vld [vmem:[%s2938_s3 + $0xc0] sm:$0xff] (!%p1723_p6)  ;;  %v1884_v11 = vpack.c.bf16 (!%p1723_p6), %v1016_v5, %v1014_v4 }
 0x154   : > { %v1015_v9 = vld [vmem:[%s2938_s3 + $0xd0] sm:$0xff]  ;;  %v1018_v12 = vld [vmem:[%s2938_s3 + $0xe8] sm:$0xff]  ;;  %v1020_v13 = vld [vmem:[%s2938_s3 + $0xf8] sm:$0xff]  ;;  %1901 = vmatprep.subr.bf16.mxu1 %v1900_v34 }
 0x155   : > { %v843_v10 = vld [vmem:[%s2351_s12 + $0x70] sm:$0xff]  ;;  %v1886_v14 = vpack.c.bf16 %v1015_v9, %v1013_v8  ;;  %v1888_v15 = vpack.c.bf16 %v1020_v13, %v1018_v12  ;;  %v1017_v16 = vld [vmem:[%s2938_s3 + $0xe0] sm:$0xff]  ;;  %v1027_v36 = vld [vmem:[%s2940_s5 + $0x28] sm:$0xff] }
 0x156   : > { %1879 = vmatpush1.bf16.msra.mxu0 %v1878_v62  ;;  %928 = vperm.xlu1 %2049, %v842_v1   ;;  %v1890_v18 = vpack.c.bf16 %v1019_v17, %v1017_v16  ;;  %v1044_v37 = vld [vmem:[%s2940_s5 + $0xb0] sm:$0xff]  ;;  %v1045_v38 = vld [vmem:[%s2940_s5 + $0xb8] sm:$0xff]  ;;  %v1902_v39 = vpack.c.bf16 %v1027_v36, %v1026_v35  ;;  %v1046_v43 = vld [vmem:[%s2940_s5 + $0xc0] sm:$0xff]  ;;  %v864_v62 = vpop.permute.xlu0 %863 }
 0x157   : > { %923 = vperm.xlu0 %2048, %v841_v2   ;;  %1881 = vmatprep.subr.bf16.mxu0 %v1880_v3  ;;  %v1904_v40 = vpack.c.bf16 %v1045_v38, %v1044_v37  ;;  %v1028_v41 = vld [vmem:[%s2940_s5 + $0x30] sm:$0xff]  ;;  %v1029_v42 = vld [vmem:[%s2940_s5 + $0x38] sm:$0xff]  ;;  %v1047_v44 = vld [vmem:[%s2940_s5 + $0xc8] sm:$0xff]  ;;  %v879_v3 = vpop.permute.xlu1 %878 }
 0x158   : > { %1903 = vmatpush3.bf16.msra.mxu1 %v1902_v39  ;;  %v1906_v45 = vpack.c.bf16 %v1029_v42, %v1028_v41  ;;  %v1908_v46 = vpack.c.bf16 %v1047_v44, %v1046_v43  ;;  %v1030_v47 = vld [vmem:[%s2940_s5 + $0x40] sm:$0xff]  ;;  %v1031_v48 = vld [vmem:[%s2940_s5 + $0x48] sm:$0xff]  ;;  %v1048_v49 = vld [vmem:[%s2940_s5 + $0xd0] sm:$0xff] }
 0x159   : > { %1905 = vmatprep.subr.bf16.mxu1 %v1904_v40  ;;  %v1049_v50 = vld [vmem:[%s2940_s5 + $0xd8] sm:$0xff]  ;;  %v1910_v51 = vpack.c.bf16 %v1031_v48, %v1030_v47  ;;  %v1032_v53 = vld [vmem:[%s2940_s5 + $0x50] sm:$0xff]  ;;  %v1050_v55 = vld [vmem:[%s2940_s5 + $0xe0] sm:$0xff] }
 0x15a   : > { %1883 = vmatpush1.bf16.msra.mxu0 %v1882_v6  ;;  %938 = vperm.xlu1 %2049, %v844_v7   ;;  %v1912_v52 = vpack.c.bf16 %v1049_v50, %v1048_v49  ;;  %v1033_v54 = vld [vmem:[%s2940_s5 + $0x58] sm:$0xff]  ;;  %v1051_v56 = vld [vmem:[%s2940_s5 + $0xe8] sm:$0xff]  ;;  %v847_v59 = vld [vmem:[%s2365_s28 + $0x10] sm:$0xff]  ;;  %v869_v4 = vpop.permute.xlu0 %868 }
 0x15b   : > { %933 = vperm.xlu0 %2048, %v843_v10   ;;  %1885 = vmatprep.subr.bf16.mxu0 %v1884_v11  ;;  %v1914_v57 = vpack.c.bf16 %v1033_v54, %v1032_v53  ;;  %v1916_v58 = vpack.c.bf16 %v1051_v56, %v1050_v55  ;;  %v845_v60 = vld [vmem:[%s2365_s28] sm:$0xff]  ;;  %v943_v63 = vmul.f32 %v874_v61, %v847_v59  ;;  %v848_v1 = vld [vmem:[%s2365_s28 + $0x18] sm:$0xff]  ;;  %v846_v2 = vld [vmem:[%s2365_s28 + $0x8] sm:$0xff]  ;;  %v889_v9 = vpop.permute.xlu1 %888 }
 0x15c   : > { %1907 = vmatpush3.bf16.msra.mxu1 %v1906_v45  ;;  %v941_v0 = vmul.f32 %v864_v62, %v845_v60  ;;  %v944_v5 = vmul.f32 %v879_v3, %v848_v1  ;;  %v942_v6 = vmul.f32 %v869_v4, %v846_v2  ;;  %v850_v7 = vld [vmem:[%s2365_s28 + $0x28] sm:$0xff]  ;;  %v849_v8 = vld [vmem:[%s2365_s28 + $0x20] sm:$0xff]  ;;  %v852_v13 = vld [vmem:[%s2365_s28 + $0x38] sm:$0xff] }
 0x15d   : > { %1909 = vmatprep.subr.bf16.mxu1 %v1908_v46  ;;  %959 = vst [vmem:[%s2365_s28 + $0x10] sm:$0xff] %v943_v63  ;;  %v946_v11 = vmul.f32 %v889_v9, %v850_v7  ;;  %v854_v19 = vld [vmem:[%s2365_s28 + $0x48] sm:$0xff]  ;;  %v853_v20 = vld [vmem:[%s2365_s28 + $0x40] sm:$0xff]  ;;  %v856_v26 = vld [vmem:[%s2365_s28 + $0x58] sm:$0xff] }
 0x15e   : > { %1887 = vmatpush1.bf16.msra.mxu0 %v1886_v14  ;;  %957 = vst [vmem:[%s2365_s28] sm:$0xff] %v941_v0  ;;  %960 = vst [vmem:[%s2365_s28 + $0x18] sm:$0xff] %v944_v5  ;;  %v884_v10 = vpop.permute.xlu0 %883  ;;  %v851_v14 = vld [vmem:[%s2365_s28 + $0x30] sm:$0xff]  ;;  %v858_v32 = vld [vmem:[%s2365_s28 + $0x68] sm:$0xff] }
 0x15f   : > { %1889 = vmatprep.subr.bf16.mxu0 %v1888_v15  ;;  %958 = vst [vmem:[%s2365_s28 + $0x8] sm:$0xff] %v942_v6  ;;  %v945_v12 = vmul.f32 %v884_v10, %v849_v8  ;;  %962 = vst [vmem:[%s2365_s28 + $0x28] sm:$0xff] %v946_v11  ;;  %v855_v27 = vld [vmem:[%s2365_s28 + $0x50] sm:$0xff]  ;;  %v857_v33 = vld [vmem:[%s2365_s28 + $0x60] sm:$0xff] }
 0x160   : > { %1911 = vmatpush3.bf16.msra.mxu1 %v1910_v51  ;;  %v860_v38 = vld [vmem:[%s2365_s28 + $0x78] sm:$0xff]  ;;  %v859_v39 = vld [vmem:[%s2365_s28 + $0x70] sm:$0xff]  ;;  %v1034_v44 = vld [vmem:[%s2940_s5 + $0x60] sm:$0xff] }
 0x161   : > { %1913 = vmatprep.subr.bf16.mxu1 %v1912_v52  ;;  %961 = vst [vmem:[%s2365_s28 + $0x20] sm:$0xff] %v945_v12  ;;  %v1035_v45 = vld [vmem:[%s2940_s5 + $0x68] sm:$0xff]  ;;  %v1052_v47 = vld [vmem:[%s2940_s5 + $0xf0] sm:$0xff]  ;;  %v1053_v48 = vld [vmem:[%s2940_s5 + $0xf8] sm:$0xff]  ;;  %v1056_v52 = vlaneseq }
 0x162   : > { %1891 = vmatpush1.bf16.msra.mxu0 %v1890_v18  ;;  %v1918_v46 = vpack.c.bf16 %v1035_v45, %v1034_v44  ;;  %v1036_v49 = vld [vmem:[%s2940_s5 + $0x70] sm:$0xff]  ;;  %v1037_v50 = vld [vmem:[%s2940_s5 + $0x78] sm:$0xff]  ;;  %v1021_v55 = vld [vmem:[%s2939_s4] sm:$0x3] }
 0x163   : > { %v1922_v51 = vpack.c.bf16 %v1037_v50, %v1036_v49  ;;  %v1057_v53 = vshrl.u32 %v1056_v52, 7 }
 0x164   : > { %1915 = vmatpush3.bf16.msra.mxu1 %v1914_v57 }
 0x165   : > { %1917 = vmatprep.subr.bf16.mxu1 %v1916_v58  ;;  %1131 = vmatmul.mubr.f32.vlgmr.msra.gmra.mrb[0].mxu0 %v941_v0  ;;  %v1058_v54 = vsub.s32 0, %v1057_v53  ;;  %v1062_v56 = vsub.s32 1, %v1057_v53 }
 0x166   : > { %1136 = vmatprep.mubr.f32.mxu0 %v2164_v22 }
 0x167   : > { %v2692_v57 = vrot.slane %v1021_v55, %v1058_v54  ;;  %v2694_v58 = vrot.slane %v1021_v55, %v1062_v56 }
 0x168   : > { %1919 = vmatpush3.bf16.msra.mxu1 %v1918_v46 }
 0x169   : > { %1137 = vmatmul.mubr.f32.gmra.mrb[2].mxu0 %v942_v6 }
 0x16a   : > { %1142 = vmatprep.mubr.f32.mxu0 %v2164_v22 }
 0x16d   : > { %1143 = vmatmul.mubr.f32.gmra.mrb[4].mxu0 %v943_v63 }
 0x16e   : > { %1148 = vmatprep.mubr.f32.mxu0 %v2164_v22 }
 0x171   : > { %1149 = vmatmul.mubr.f32.gmra.mrb[6].mxu0 %v944_v5 }
 0x172   : > { %1154 = vmatprep.mubr.f32.mxu0 %v2164_v22 }
 0x175   : > { %1155 = vmatmul.mubr.f32.gmra.mrb[8].mxu0 %v945_v12 }
 0x176   : > { %1160 = vmatprep.mubr.f32.mxu0 %v2164_v22 }
 0x179   : > { %1161 = vmatmul.mubr.f32.gmra.mrb[10].mxu0 %v946_v11 }
 0x17a   : > { %1166 = vmatprep.mubr.f32.mxu0 %v2164_v22 }
 0x1c9   : > { %v899_v15 = vpop.permute.xlu1 %898 }
 0x1ca   : > { %v894_v16 = vpop.permute.xlu0 %893  ;;  %v948_v17 = vmul.f32 %v899_v15, %v852_v13 }
 0x1cb   : > { %v947_v18 = vmul.f32 %v894_v16, %v851_v14 }
 0x1cc   : > { %964 = vst [vmem:[%s2365_s28 + $0x38] sm:$0xff] %v948_v17 }
 0x1cd   : > { %963 = vst [vmem:[%s2365_s28 + $0x30] sm:$0xff] %v947_v18  ;;  %v909_v21 = vpop.permute.xlu1 %908  ;;  %1167 = vmatmul.mubr.f32.gmra.mrb[12].mxu0 %v947_v18 }
 0x1ce   : > { %v904_v23 = vpop.permute.xlu0 %903  ;;  %v950_v24 = vmul.f32 %v909_v21, %v854_v19  ;;  %1172 = vmatprep.mubr.f32.mxu0 %v2164_v22 }
 0x1cf   : > { %v949_v25 = vmul.f32 %v904_v23, %v853_v20 }
 0x1d0   : > { %966 = vst [vmem:[%s2365_s28 + $0x48] sm:$0xff] %v950_v24 }
 0x1d1   : > { %965 = vst [vmem:[%s2365_s28 + $0x40] sm:$0xff] %v949_v25  ;;  %v919_v28 = vpop.permute.xlu1 %918  ;;  %1173 = vmatmul.mubr.f32.gmra.mrb[14].mxu0 %v948_v17 }
 0x1d2   : > { %v914_v29 = vpop.permute.xlu0 %913  ;;  %v952_v30 = vmul.f32 %v919_v28, %v856_v26  ;;  %1178 = vmatprep.mubr.f32.mxu0 %v2164_v22 }
 0x1d3   : > { %v951_v31 = vmul.f32 %v914_v29, %v855_v27 }
 0x1d4   : > { %968 = vst [vmem:[%s2365_s28 + $0x58] sm:$0xff] %v952_v30 }
 0x1d5   : > { %967 = vst [vmem:[%s2365_s28 + $0x50] sm:$0xff] %v951_v31  ;;  %v929_v34 = vpop.permute.xlu1 %928  ;;  %1179 = vmatmul.mubr.f32.gmra.mrb[16].mxu0 %v949_v25 }
 0x1d6   : > { %v924_v35 = vpop.permute.xlu0 %923  ;;  %v954_v36 = vmul.f32 %v929_v34, %v858_v32  ;;  %1184 = vmatprep.mubr.f32.mxu0 %v2164_v22 }
 0x1d7   : > { %v953_v37 = vmul.f32 %v924_v35, %v857_v33 }
 0x1d8   : > { %970 = vst [vmem:[%s2365_s28 + $0x68] sm:$0xff] %v954_v36 }
 0x1d9   : > { %969 = vst [vmem:[%s2365_s28 + $0x60] sm:$0xff] %v953_v37  ;;  %v939_v40 = vpop.permute.xlu1 %938  ;;  %1185 = vmatmul.mubr.f32.gmra.mrb[18].mxu0 %v950_v24 }
 0x1da   : > { %v934_v41 = vpop.permute.xlu0 %933  ;;  %v956_v42 = vmul.f32 %v939_v40, %v860_v38  ;;  %1190 = vmatprep.mubr.f32.mxu0 %v2164_v22 }
 0x1db   : > { %v955_v43 = vmul.f32 %v934_v41, %v859_v39 }
 0x1dc   : > { %972 = vst [vmem:[%s2365_s28 + $0x78] sm:$0xff] %v956_v42 }
 0x1dd   : > { %971 = vst [vmem:[%s2365_s28 + $0x70] sm:$0xff] %v955_v43  ;;  %1191 = vmatmul.mubr.f32.gmra.mrb[20].mxu0 %v951_v31 }
 0x1de   : > { %1196 = vmatprep.mubr.f32.mxu0 %v2164_v22 }
 0x1e1   : > { %1197 = vmatmul.mubr.f32.gmra.mrb[22].mxu0 %v952_v30 }
 0x1e2   : > { %1202 = vmatprep.mubr.f32.mxu0 %v2164_v22 }
 0x1e5   : > { %1203 = vmatmul.mubr.f32.gmra.mrb[24].mxu0 %v953_v37 }
 0x1e6   : > { %1208 = vmatprep.mubr.f32.mxu0 %v2164_v22 }
 0x1e9   : > { %1209 = vmatmul.mubr.f32.gmra.mrb[26].mxu0 %v954_v36 }
 0x1ea   : > { %1214 = vmatprep.mubr.f32.mxu0 %v2164_v22 }
 0x1ed   : > { %1215 = vmatmul.mubr.f32.gmra.mrb[28].mxu0 %v955_v43 }
 0x1ee   : > { %1220 = vmatprep.mubr.f32.mxu0 %v2164_v22  ;;  %v1920_v22 = vpack.c.bf16 %v1053_v48, %v1052_v47 }
 0x1f0   : > { %1921 = vmatprep.subr.bf16.mxu1 %v1920_v22 }
 0x1f1   : > { %1221 = vmatmul.mubr.f32.gmra.mrb[30].mxu0 %v956_v42  ;;  %1923 = vmatpush3.bf16.msra.mxu1 %v1922_v51 }
 0x238   : > { %v1132_v59 = vpop.f32.mrb[0].mxu0 }
 0x239   : > { %v1133_v60 = vadd.f32 %v1132_v59, %v2692_v57  ;;  %v1134_v61 = vpop.f32.mrb[1].mxu0 }
 0x23a   : > { %v1135_v62 = vadd.f32 %v1134_v61, %v2694_v58 }
 0x23b   : > { %v1227_v1 = vmax.f32 %v1133_v60, 0.0 }
 0x23c   : > { %v1138_v63 = vpop.f32.mrb[2].mxu0  ;;  %v1228_v0 = vmax.f32 %v1135_v62, 0.0 }
 0x23d   : > { %v1139_v2 = vadd.f32 %v1138_v63, %v2692_v57  ;;  %v1140_v3 = vpop.f32.mrb[3].mxu0 }
 0x23e   : > { %v1141_v4 = vadd.f32 %v1140_v3, %v2694_v58  ;;  %1329 = vmatprep.mubr.f32.mxu1 %v1228_v0 }
 0x23f   : > { %1330 = vmatmul.mubr.f32.vlgmr.msra.gmra.mrb[0].mxu1 %v1227_v1  ;;  %v1229_v7 = vmax.f32 %v1139_v2, 0.0 }
 0x240   : > { %v1230_v5 = vmax.f32 %v1141_v4, 0.0  ;;  %v1144_v6 = vpop.f32.mrb[4].mxu0 }
 0x241   : > { %v1145_v8 = vadd.f32 %v1144_v6, %v2692_v57  ;;  %v1146_v9 = vpop.f32.mrb[5].mxu0 }
 0x242   : > { %v1147_v10 = vadd.f32 %v1146_v9, %v2694_v58  ;;  %1334 = vmatprep.mubr.f32.mxu1 %v1230_v5 }
 0x243   : > { %1335 = vmatmul.mubr.f32.gmra.mrb[2].mxu1 %v1229_v7  ;;  %v1231_v13 = vmax.f32 %v1145_v8, 0.0 }
 0x244   : > { %v1232_v11 = vmax.f32 %v1147_v10, 0.0  ;;  %v1150_v12 = vpop.f32.mrb[6].mxu0 }
 0x245   : > { %v1151_v14 = vadd.f32 %v1150_v12, %v2692_v57  ;;  %v1152_v15 = vpop.f32.mrb[7].mxu0 }
 0x246   : > { %v1153_v16 = vadd.f32 %v1152_v15, %v2694_v58  ;;  %1339 = vmatprep.mubr.f32.mxu1 %v1232_v11 }
 0x247   : > { %1340 = vmatmul.mubr.f32.gmra.mrb[4].mxu1 %v1231_v13  ;;  %v1233_v19 = vmax.f32 %v1151_v14, 0.0 }
 0x248   : > { %v1234_v17 = vmax.f32 %v1153_v16, 0.0  ;;  %v1156_v18 = vpop.f32.mrb[8].mxu0 }
 0x249   : > { %v1157_v20 = vadd.f32 %v1156_v18, %v2692_v57  ;;  %v1158_v21 = vpop.f32.mrb[9].mxu0 }
 0x24a   : > { %v1159_v23 = vadd.f32 %v1158_v21, %v2694_v58  ;;  %1344 = vmatprep.mubr.f32.mxu1 %v1234_v17 }
 0x24b   : > { %1345 = vmatmul.mubr.f32.gmra.mrb[6].mxu1 %v1233_v19  ;;  %v1235_v26 = vmax.f32 %v1157_v20, 0.0 }
 0x24c   : > { %v1236_v24 = vmax.f32 %v1159_v23, 0.0  ;;  %v1162_v25 = vpop.f32.mrb[10].mxu0 }
 0x24d   : > { %v1163_v27 = vadd.f32 %v1162_v25, %v2692_v57  ;;  %v1164_v28 = vpop.f32.mrb[11].mxu0 }
 0x24e   : > { %v1165_v29 = vadd.f32 %v1164_v28, %v2694_v58  ;;  %1349 = vmatprep.mubr.f32.mxu1 %v1236_v24 }
 0x24f   : > { %1350 = vmatmul.mubr.f32.gmra.mrb[8].mxu1 %v1235_v26  ;;  %v1237_v32 = vmax.f32 %v1163_v27, 0.0 }
 0x250   : > { %v1238_v30 = vmax.f32 %v1165_v29, 0.0 }
 0x252   : > { %1354 = vmatprep.mubr.f32.mxu1 %v1238_v30 }
 0x253   : > { %1355 = vmatmul.mubr.f32.gmra.mrb[10].mxu1 %v1237_v32  ;;  %v2731_v32 = vld [vmem:[%s2941_s6] ss:$0 sm:$0xff] }
 0x2a0   : > { %v1168_v31 = vpop.f32.mrb[12].mxu0 }
 0x2a1   : > { %v1169_v33 = vadd.f32 %v1168_v31, %v2692_v57  ;;  %v1170_v34 = vpop.f32.mrb[13].mxu0 }
 0x2a2   : > { %v1171_v35 = vadd.f32 %v1170_v34, %v2694_v58 }
 0x2a3   : > { %v1239_v38 = vmax.f32 %v1169_v33, 0.0 }
 0x2a4   : > { %v1240_v36 = vmax.f32 %v1171_v35, 0.0  ;;  %v1174_v37 = vpop.f32.mrb[14].mxu0 }
 0x2a5   : > { %v1175_v39 = vadd.f32 %v1174_v37, %v2692_v57  ;;  %v1176_v40 = vpop.f32.mrb[15].mxu0 }
 0x2a6   : > { %v1177_v41 = vadd.f32 %v1176_v40, %v2694_v58  ;;  %1359 = vmatprep.mubr.f32.mxu1 %v1240_v36 }
 0x2a7   : > { %1360 = vmatmul.mubr.f32.gmra.mrb[12].mxu1 %v1239_v38  ;;  %v1241_v44 = vmax.f32 %v1175_v39, 0.0 }
 0x2a8   : > { %v1242_v42 = vmax.f32 %v1177_v41, 0.0  ;;  %v1180_v43 = vpop.f32.mrb[16].mxu0 }
 0x2a9   : > { %v1181_v45 = vadd.f32 %v1180_v43, %v2692_v57  ;;  %v1182_v46 = vpop.f32.mrb[17].mxu0 }
 0x2aa   : > { %v1183_v47 = vadd.f32 %v1182_v46, %v2694_v58  ;;  %1364 = vmatprep.mubr.f32.mxu1 %v1242_v42 }
 0x2ab   : > { %1365 = vmatmul.mubr.f32.gmra.mrb[14].mxu1 %v1241_v44  ;;  %v1243_v49 = vmax.f32 %v1181_v45, 0.0 }
 0x2ac   : > { %v1244_v48 = vmax.f32 %v1183_v47, 0.0  ;;  %v1186_v22 = vpop.f32.mrb[18].mxu0 }
 0x2ad   : > { %v1187_v50 = vadd.f32 %v1186_v22, %v2692_v57  ;;  %v1188_v51 = vpop.f32.mrb[19].mxu0 }
 0x2ae   : > { %v1189_v52 = vadd.f32 %v1188_v51, %v2694_v58  ;;  %1369 = vmatprep.mubr.f32.mxu1 %v1244_v48 }
 0x2af   : > { %1370 = vmatmul.mubr.f32.gmra.mrb[16].mxu1 %v1243_v49  ;;  %v1245_v55 = vmax.f32 %v1187_v50, 0.0 }
 0x2b0   : > { %v1246_v53 = vmax.f32 %v1189_v52, 0.0  ;;  %v1192_v54 = vpop.f32.mrb[20].mxu0 }
 0x2b1   : > { %v1193_v56 = vadd.f32 %v1192_v54, %v2692_v57  ;;  %v1194_v59 = vpop.f32.mrb[21].mxu0 }
 0x2b2   : > { %v1195_v60 = vadd.f32 %v1194_v59, %v2694_v58  ;;  %1374 = vmatprep.mubr.f32.mxu1 %v1246_v53 }
 0x2b3   : > { %1375 = vmatmul.mubr.f32.gmra.mrb[18].mxu1 %v1245_v55  ;;  %v1247_v63 = vmax.f32 %v1193_v56, 0.0 }
 0x2b4   : > { %v1248_v61 = vmax.f32 %v1195_v60, 0.0  ;;  %v1198_v62 = vpop.f32.mrb[22].mxu0 }
 0x2b5   : > { %v1199_v0 = vadd.f32 %v1198_v62, %v2692_v57  ;;  %v1200_v1 = vpop.f32.mrb[23].mxu0 }
 0x2b6   : > { %v1201_v2 = vadd.f32 %v1200_v1, %v2694_v58  ;;  %1379 = vmatprep.mubr.f32.mxu1 %v1248_v61 }
 0x2b7   : > { %1380 = vmatmul.mubr.f32.gmra.mrb[20].mxu1 %v1247_v63  ;;  %v1249_v5 = vmax.f32 %v1199_v0, 0.0 }
 0x2b8   : > { %v1250_v3 = vmax.f32 %v1201_v2, 0.0  ;;  %v1204_v4 = vpop.f32.mrb[24].mxu0 }
 0x2b9   : > { %v1205_v6 = vadd.f32 %v1204_v4, %v2692_v57  ;;  %v1206_v7 = vpop.f32.mrb[25].mxu0 }
 0x2ba   : > { %v1207_v8 = vadd.f32 %v1206_v7, %v2694_v58  ;;  %1384 = vmatprep.mubr.f32.mxu1 %v1250_v3 }
 0x2bb   : > { %1385 = vmatmul.mubr.f32.gmra.mrb[22].mxu1 %v1249_v5  ;;  %v1251_v11 = vmax.f32 %v1205_v6, 0.0 }
 0x2bc   : > { %v1252_v9 = vmax.f32 %v1207_v8, 0.0  ;;  %v1210_v10 = vpop.f32.mrb[26].mxu0 }
 0x2bd   : > { %v1211_v12 = vadd.f32 %v1210_v10, %v2692_v57  ;;  %v1212_v13 = vpop.f32.mrb[27].mxu0 }
 0x2be   : > { %v1213_v14 = vadd.f32 %v1212_v13, %v2694_v58  ;;  %1389 = vmatprep.mubr.f32.mxu1 %v1252_v9 }
 0x2bf   : > { %1390 = vmatmul.mubr.f32.gmra.mrb[24].mxu1 %v1251_v11  ;;  %v1253_v17 = vmax.f32 %v1211_v12, 0.0 }
 0x2c0   : > { %v1254_v15 = vmax.f32 %v1213_v14, 0.0  ;;  %v1216_v16 = vpop.f32.mrb[28].mxu0 }
 0x2c1   : > { %v1217_v18 = vadd.f32 %v1216_v16, %v2692_v57  ;;  %v1218_v19 = vpop.f32.mrb[29].mxu0 }
 0x2c2   : > { %v1219_v20 = vadd.f32 %v1218_v19, %v2694_v58  ;;  %1394 = vmatprep.mubr.f32.mxu1 %v1254_v15 }
 0x2c3   : > { %1395 = vmatmul.mubr.f32.gmra.mrb[26].mxu1 %v1253_v17  ;;  %v1255_v24 = vmax.f32 %v1217_v18, 0.0 }
 0x2c4   : > { %v1256_v21 = vmax.f32 %v1219_v20, 0.0  ;;  %v1222_v23 = vpop.f32.mrb[30].mxu0 }
 0x2c5   : > { %v1223_v25 = vadd.f32 %v1222_v23, %v2692_v57  ;;  %v1224_v26 = vpop.f32.mrb[31].mxu0 }
 0x2c6   : > { %v1225_v27 = vadd.f32 %v1224_v26, %v2694_v58  ;;  %1399 = vmatprep.mubr.f32.mxu1 %v1256_v21 }
 0x2c7   : > { %1400 = vmatmul.mubr.f32.gmra.mrb[28].mxu1 %v1255_v24  ;;  %v1257_v29 = vmax.f32 %v1223_v25, 0.0 }
 0x2c8   : > { %v1258_v28 = vmax.f32 %v1225_v27, 0.0 }
 0x2ca   : > { %1404 = vmatprep.mubr.f32.mxu1 %v1258_v28 }
 0x2cb   : > { %1405 = vmatmul.mubr.f32.gmra.mrb[30].mxu1 %v1257_v29 }
 0x312   : > { %v1780_v30 = vpop.f32.mrb[0].mxu1 }
 0x313   : > { %v1781_v31 = vpop.f32.mrb[1].mxu1 }
 0x314   : > { %v1782_v33 = vadd.f32 %v1781_v31, %v1780_v30 }
 0x316   : > { %v1783_v34 = vpop.f32.mrb[2].mxu1  ;;  %v2734_v57 = vadd.f32 %v1782_v33, %v2731_v32 }
 0x317   : > { %v1784_v35 = vpop.f32.mrb[3].mxu1 }
 0x318   : > { %v1785_v58 = vadd.f32 %v1784_v35, %v1783_v34  ;;  %1410 = vadd.xlane.f32.xlu0 %v2734_v57  ;;  %v973_v34 = vld [vmem:[%s2356_s19] sm:$0xff] }
 0x31a   : > { %v1786_v36 = vpop.f32.mrb[4].mxu1  ;;  %v2738_v37 = vadd.f32 %v1785_v58, %v2731_v32  ;;  %v974_v58 = vld [vmem:[%s2356_s19 + $0x8] sm:$0xff] }
 0x31b   : > { %v1787_v38 = vpop.f32.mrb[5].mxu1 }
 0x31c   : > { %v1788_v39 = vadd.f32 %v1787_v38, %v1786_v36  ;;  %1412 = vadd.xlane.f32.xlu1 %v2738_v37  ;;  %v975_v38 = vld [vmem:[%s2356_s19 + $0x10] sm:$0xff] }
 0x31e   : > { %v1789_v40 = vpop.f32.mrb[6].mxu1  ;;  %v2742_v41 = vadd.f32 %v1788_v39, %v2731_v32  ;;  %v976_v39 = vld [vmem:[%s2356_s19 + $0x18] sm:$0xff] }
 0x31f   : > { %v1790_v42 = vpop.f32.mrb[7].mxu1 }
 0x320   : > { %v1791_v43 = vadd.f32 %v1790_v42, %v1789_v40  ;;  %1414 = vadd.xlane.f32.xlu0 %v2742_v41  ;;  %v977_v40 = vld [vmem:[%s2356_s19 + $0x20] sm:$0xff]  ;;  %v979_v42 = vld [vmem:[%s2356_s19 + $0x30] sm:$0xff] }
 0x322   : > { %v1792_v44 = vpop.f32.mrb[8].mxu1  ;;  %v2746_v45 = vadd.f32 %v1791_v43, %v2731_v32  ;;  %v980_v43 = vld [vmem:[%s2356_s19 + $0x38] sm:$0xff] }
 0x323   : > { %v1793_v46 = vpop.f32.mrb[9].mxu1 }
 0x324   : > { %v1794_v47 = vadd.f32 %v1793_v46, %v1792_v44  ;;  %1416 = vadd.xlane.f32.xlu0 %v2746_v45  ;;  %v981_v44 = vld [vmem:[%s2356_s19 + $0x40] sm:$0xff]  ;;  %v2808_v46 = vld [vmem:[%s2356_s19 + $0x48] sm:$0xff] }
 0x326   : > { %v1795_v48 = vpop.f32.mrb[10].mxu1  ;;  %v2750_v22 = vadd.f32 %v1794_v47, %v2731_v32 }
 0x327   : > { %v1796_v49 = vpop.f32.mrb[11].mxu1 }
 0x328   : > { %v1797_v50 = vadd.f32 %v1796_v49, %v1795_v48  ;;  %1418 = vadd.xlane.f32.xlu1 %v2750_v22  ;;  %v2811_v49 = vld [vmem:[%s2356_s19 + $0x50] sm:$0xff] }
 0x32a   : > { %v2754_v52 = vadd.f32 %v1797_v50, %v2731_v32  ;;  %v2817_v50 = vld [vmem:[%s2356_s19 + $0x60] sm:$0xff] }
 0x32c   : > { %1420 = vadd.xlane.f32.xlu0 %v2754_v52 }
 0x37a   : > { %v1798_v51 = vpop.f32.mrb[12].mxu1 }
 0x37b   : > { %v1799_v53 = vpop.f32.mrb[13].mxu1 }
 0x37c   : > { %v1800_v54 = vadd.f32 %v1799_v53, %v1798_v51  ;;  %v2820_v51 = vld [vmem:[%s2356_s19 + $0x68] sm:$0xff]  ;;  %v2823_v53 = vld [vmem:[%s2356_s19 + $0x70] sm:$0xff] }
 0x37e   : > { %v1801_v55 = vpop.f32.mrb[14].mxu1  ;;  %v2758_v56 = vadd.f32 %v1800_v54, %v2731_v32  ;;  %v2826_v54 = vld [vmem:[%s2356_s19 + $0x78] sm:$0xff] }
 0x37f   : > { %v1802_v59 = vpop.f32.mrb[15].mxu1 }
 0x380   : > { %v1803_v60 = vadd.f32 %v1802_v59, %v1801_v55  ;;  %1422 = vadd.xlane.f32.xlu1 %v2758_v56 }
 0x382   : > { %v1804_v61 = vpop.f32.mrb[16].mxu1  ;;  %v2762_v62 = vadd.f32 %v1803_v60, %v2731_v32 }
 0x383   : > { %v1805_v63 = vpop.f32.mrb[17].mxu1 }
 0x384   : > { %v1806_v0 = vadd.f32 %v1805_v63, %v1804_v61  ;;  %1424 = vadd.xlane.f32.xlu0 %v2762_v62 }
 0x386   : > { %v1807_v1 = vpop.f32.mrb[18].mxu1  ;;  %v2766_v2 = vadd.f32 %v1806_v0, %v2731_v32 }
 0x387   : > { %v1808_v3 = vpop.f32.mrb[19].mxu1 }
 0x388   : > { %v1809_v4 = vadd.f32 %v1808_v3, %v1807_v1  ;;  %1426 = vadd.xlane.f32.xlu1 %v2766_v2 }
 0x38a   : > { %v1810_v5 = vpop.f32.mrb[20].mxu1  ;;  %v2770_v6 = vadd.f32 %v1809_v4, %v2731_v32 }
 0x38b   : > { %v1811_v7 = vpop.f32.mrb[21].mxu1 }
 0x38c   : > { %v1812_v8 = vadd.f32 %v1811_v7, %v1810_v5  ;;  %1428 = vadd.xlane.f32.xlu0 %v2770_v6 }
 0x38e   : > { %v1813_v9 = vpop.f32.mrb[22].mxu1  ;;  %v2774_v10 = vadd.f32 %v1812_v8, %v2731_v32 }
 0x38f   : > { %v1814_v11 = vpop.f32.mrb[23].mxu1 }
 0x390   : > { %v1815_v12 = vadd.f32 %v1814_v11, %v1813_v9  ;;  %1430 = vadd.xlane.f32.xlu1 %v2774_v10 }
 0x392   : > { %v1816_v13 = vpop.f32.mrb[24].mxu1  ;;  %v2778_v14 = vadd.f32 %v1815_v12, %v2731_v32 }
 0x393   : > { %v1817_v15 = vpop.f32.mrb[25].mxu1 }
 0x394   : > { %v1818_v16 = vadd.f32 %v1817_v15, %v1816_v13  ;;  %1432 = vadd.xlane.f32.xlu0 %v2778_v14 }
 0x396   : > { %v1819_v17 = vpop.f32.mrb[26].mxu1  ;;  %v2782_v18 = vadd.f32 %v1818_v16, %v2731_v32 }
 0x397   : > { %v1820_v19 = vpop.f32.mrb[27].mxu1 }
 0x398   : > { %v1821_v20 = vadd.f32 %v1820_v19, %v1819_v17  ;;  %1434 = vadd.xlane.f32.xlu1 %v2782_v18 }
 0x39a   : > { %v1822_v21 = vpop.f32.mrb[28].mxu1  ;;  %v2786_v23 = vadd.f32 %v1821_v20, %v2731_v32 }
 0x39b   : > { %v1823_v24 = vpop.f32.mrb[29].mxu1 }
 0x39c   : > { %v1824_v25 = vadd.f32 %v1823_v24, %v1822_v21  ;;  %1436 = vadd.xlane.f32.xlu0 %v2786_v23 }
 0x39e   : > { %v1825_v26 = vpop.f32.mrb[30].mxu1  ;;  %v2790_v27 = vadd.f32 %v1824_v25, %v2731_v32 }
 0x39f   : > { %v1826_v28 = vpop.f32.mrb[31].mxu1 }
 0x3a0   : > { %v1827_v29 = vadd.f32 %v1826_v28, %v1825_v26  ;;  %1438 = vadd.xlane.f32.xlu1 %v2790_v27 }
 0x3a2   : > { %v2794_v30 = vadd.f32 %v1827_v29, %v2731_v32  ;;  %v978_v32 = vld [vmem:[%s2356_s19 + $0x28] sm:$0xff] }
 0x3a4   : > { %1440 = vadd.xlane.f32.xlu0 %v2794_v30 }
 0x3a5   : > { %v1411_v31 = vpop.xlane.xlu0 %1410 }
 0x3a6   : > { %v1442_v33 = vmul.f32 0.0625, %v1411_v31 }
 0x3a8   : > { %v1458_v35 = vsub.f32 %v2734_v57, %v1442_v33  ;;  %v2814_v57 = vld [vmem:[%s2356_s19 + $0x58] sm:$0xff] }
 0x3a9   : > { %v1413_v36 = vpop.xlane.xlu1 %1412 }
 0x3aa   : > { %v1474_v47 = vmul.f32 15.0, %v1458_v35  ;;  %v1443_v48 = vmul.f32 0.0625, %v1413_v36 }
 0x3ac   : > { %v1490_v55 = vadd.f32 %v1474_v47, %v973_v34  ;;  %v1459_v59 = vsub.f32 %v2738_v37, %v1443_v48 }
 0x3ad   : > { %v1415_v60 = vpop.xlane.xlu0 %1414 }
 0x3ae   : > { %v1475_v61 = vmul.f32 15.0, %v1459_v59  ;;  %v1444_v63 = vmul.f32 0.0625, %v1415_v60  ;;  %1506 = vst [vmem:[%s2361_s20] sm:$0xff] %v1490_v55 }
 0x3b0   : > { %v1491_v0 = vadd.f32 %v1475_v61, %v974_v58  ;;  %v1460_v1 = vsub.f32 %v2742_v41, %v1444_v63 }
 0x3b1   : > { %v1417_v3 = vpop.xlane.xlu0 %1416 }
 0x3b2   : > { %v1476_v4 = vmul.f32 15.0, %v1460_v1  ;;  %v1445_v5 = vmul.f32 0.0625, %v1417_v3  ;;  %1507 = vst [vmem:[%s2361_s20 + $0x8] sm:$0xff] %v1491_v0 }
 0x3b4   : > { %v1492_v7 = vadd.f32 %v1476_v4, %v975_v38  ;;  %v1461_v8 = vsub.f32 %v2746_v45, %v1445_v5 }
 0x3b5   : > { %v1419_v9 = vpop.xlane.xlu1 %1418 }
 0x3b6   : > { %v1477_v11 = vmul.f32 15.0, %v1461_v8  ;;  %v1446_v37 = vmul.f32 0.0625, %v1419_v9  ;;  %1508 = vst [vmem:[%s2361_s20 + $0x10] sm:$0xff] %v1492_v7 }
 0x3b8   : > { %v1493_v12 = vadd.f32 %v1477_v11, %v976_v39  ;;  %v1462_v13 = vsub.f32 %v2750_v22, %v1446_v37 }
 0x3b9   : > { %v1421_v15 = vpop.xlane.xlu0 %1420 }
 0x3ba   : > { %v1478_v16 = vmul.f32 15.0, %v1462_v13  ;;  %v1447_v41 = vmul.f32 0.0625, %v1421_v15  ;;  %1509 = vst [vmem:[%s2361_s20 + $0x18] sm:$0xff] %v1493_v12 }
 0x3bc   : > { %v1494_v17 = vadd.f32 %v1478_v16, %v977_v40  ;;  %v1463_v19 = vsub.f32 %v2754_v52, %v1447_v41 }
 0x3be   : > { %v1479_v21 = vmul.f32 15.0, %v1463_v19  ;;  %1510 = vst [vmem:[%s2361_s20 + $0x20] sm:$0xff] %v1494_v17 }
 0x3c0   : > { %v1495_v24 = vadd.f32 %v1479_v21, %v978_v32 }
 0x3c2   : > { %1511 = vst [vmem:[%s2361_s20 + $0x28] sm:$0xff] %v1495_v24 }
 0x40d   : > { %v1423_v20 = vpop.xlane.xlu1 %1422 }
 0x40e   : > { %v1448_v45 = vmul.f32 0.0625, %v1423_v20 }
 0x410   : > { %v1464_v25 = vsub.f32 %v2758_v56, %v1448_v45 }
 0x411   : > { %v1425_v26 = vpop.xlane.xlu0 %1424 }
 0x412   : > { %v1480_v28 = vmul.f32 15.0, %v1464_v25  ;;  %v1449_v22 = vmul.f32 0.0625, %v1425_v26 }
 0x414   : > { %v1496_v29 = vadd.f32 %v1480_v28, %v979_v42  ;;  %v1465_v31 = vsub.f32 %v2762_v62, %v1449_v22 }
 0x415   : > { %v1427_v33 = vpop.xlane.xlu1 %1426 }
 0x416   : > { %v1481_v34 = vmul.f32 15.0, %v1465_v31  ;;  %v1450_v52 = vmul.f32 0.0625, %v1427_v33  ;;  %1512 = vst [vmem:[%s2361_s20 + $0x30] sm:$0xff] %v1496_v29 }
 0x418   : > { %v1497_v35 = vadd.f32 %v1481_v34, %v980_v43  ;;  %v1466_v58 = vsub.f32 %v2766_v2, %v1450_v52 }
 0x419   : > { %v1429_v36 = vpop.xlane.xlu0 %1428 }
 0x41a   : > { %v1482_v38 = vmul.f32 15.0, %v1466_v58  ;;  %v1451_v56 = vmul.f32 0.0625, %v1429_v36  ;;  %1513 = vst [vmem:[%s2361_s20 + $0x38] sm:$0xff] %v1497_v35 }
 0x41c   : > { %v1498_v39 = vadd.f32 %v1482_v38, %v981_v44  ;;  %v1467_v40 = vsub.f32 %v2770_v6, %v1451_v56 }
 0x41d   : > { %v1431_v32 = vpop.xlane.xlu1 %1430 }
 0x41e   : > { %v1483_v42 = vmul.f32 15.0, %v1467_v40  ;;  %v1452_v62 = vmul.f32 0.0625, %v1431_v32  ;;  %1514 = vst [vmem:[%s2361_s20 + $0x40] sm:$0xff] %v1498_v39 }
 0x420   : > { %v1499_v47 = vadd.f32 %v1483_v42, %v2808_v46  ;;  %v1468_v48 = vsub.f32 %v2774_v10, %v1452_v62 }
 0x421   : > { %v1433_v43 = vpop.xlane.xlu0 %1432 }
 0x422   : > { %v1484_v2 = vmul.f32 15.0, %v1468_v48  ;;  %v1453_v55 = vmul.f32 0.0625, %v1433_v43  ;;  %1515 = vst [vmem:[%s2361_s20 + $0x48] sm:$0xff] %v1499_v47 }
 0x424   : > { %v1500_v59 = vadd.f32 %v1484_v2, %v2811_v49  ;;  %v1469_v44 = vsub.f32 %v2778_v14, %v1453_v55 }
 0x425   : > { %v1435_v6 = vpop.xlane.xlu1 %1434 }
 0x426   : > { %v1485_v60 = vmul.f32 15.0, %v1469_v44  ;;  %v1454_v61 = vmul.f32 0.0625, %v1435_v6  ;;  %1516 = vst [vmem:[%s2361_s20 + $0x50] sm:$0xff] %v1500_v59 }
 0x428   : > { %v1501_v63 = vadd.f32 %v1485_v60, %v2814_v57  ;;  %v1470_v46 = vsub.f32 %v2782_v18, %v1454_v61 }
 0x429   : > { %v1437_v10 = vpop.xlane.xlu0 %1436 }
 0x42a   : > { %v1486_v0 = vmul.f32 15.0, %v1470_v46  ;;  %v1455_v1 = vmul.f32 0.0625, %v1437_v10  ;;  %1517 = vst [vmem:[%s2361_s20 + $0x58] sm:$0xff] %v1501_v63 }
 0x42c   : > { %v1502_v3 = vadd.f32 %v1486_v0, %v2817_v50  ;;  %v1471_v49 = vsub.f32 %v2786_v23, %v1455_v1 }
 0x42d   : > { %v1439_v14 = vpop.xlane.xlu1 %1438 }
 0x42e   : > { %v1487_v4 = vmul.f32 15.0, %v1471_v49  ;;  %v1456_v5 = vmul.f32 0.0625, %v1439_v14  ;;  %1518 = vst [vmem:[%s2361_s20 + $0x60] sm:$0xff] %v1502_v3 }
 0x430   : > { %v1503_v7 = vadd.f32 %v1487_v4, %v2820_v51  ;;  %v1472_v57 = vsub.f32 %v2790_v27, %v1456_v5 }
 0x431   : > { %v1441_v8 = vpop.xlane.xlu0 %1440 }
 0x432   : > { %v1488_v18 = vmul.f32 15.0, %v1472_v57  ;;  %1519 = vst [vmem:[%s2361_s20 + $0x68] sm:$0xff] %v1503_v7  ;;  %v1457_v9 = vmul.f32 0.0625, %v1441_v8 }
 0x434   : > { %v1504_v11 = vadd.f32 %v1488_v18, %v2823_v53  ;;  %v1473_v37 = vsub.f32 %v2794_v30, %v1457_v9 }
 0x436   : > { %1520 = vst [vmem:[%s2361_s20 + $0x70] sm:$0xff] %v1504_v11  ;;  %v1489_v50 = vmul.f32 15.0, %v1473_v37 }
 0x438   : > { %v1505_v23 = vadd.f32 %v1489_v50, %v2826_v54 }
 0x43a   : > { %1521 = vst [vmem:[%s2361_s20 + $0x78] sm:$0xff] %v1505_v23 }
 0x43b PF: > { %s1731_s19 = sshll.u32 %s2148_s15, 11  ;;  %s2971_s25 = sld [smem:[#allocation17_spill]] }
 0x43c   : > { %s1541_s29 = sshll.u32 %s2365_s28, 4  ;;  %s2972_s26 = sand.u32 1, %s2128_s10   ;;  %s2873_s29 = int_to_ptr.vmem [resolvable:$true] %s1541_s29 }
 0x43d   : > { %s2877_s23 = scalar_lea.sflag [#allocation4], %s2972_s26  ;;  %s2050_s20 = scalar_lea.vmem %s2873_s29, 2048 }
 0x43e   : > { %p2051_p8 = scmp.ne.s32.totalorder %s2873_s29, %s2050_s20  ;;  %s2165_s15 = smov [#allocation3]  }
 0x43f   : > { %s2054_s30 = sshll.u32 %s2165_s15, 4  ;;  %s2055_s30 = int_to_ptr.vmem [resolvable:$false] %s2054_s30 }
 0x440   : > { %p2052_p9 = pnand %p2051_p8, %p2290_p7  ;;  %s2056_s0 = scalar_lea.vmem %s2055_s30, 4096 }
 0x441   : > { %s2870_s24 = scalar_lea.hbm %s2971_s25, %s1731_s19  ;;  %p2057_p11 = scmp.lt.s32.totalorder %s2873_s29, %s2055_s30 }
 0x442   : > { %p2053_p10 = pneg %p2052_p9  ;;  %p2058_p13 = scmp.lt.s32.totalorder %s2056_s0, %s2050_s20 }
 0x444   : > { %p2059_p0 = por %p2058_p13, %p2057_p11 }
 0x446   : > { %p2060_p1 = pnand %p2059_p0, %p2053_p10 }
 0x448   : > { %2063 = shalt.err (!%p2060_p1)
}
 0x449   : > { %s2064_s28 = scalar_lea.hbm %s2870_s24, 2048  ;;  %s2068_s11 = scalar_lea.hbm %s2971_s25, 4096 }
 0x44a   : > { %p2065_p2 = scmp.ne.s32.totalorder %s2870_s24, %s2064_s28  ;;  %p2069_p5 = scmp.lt.u32.totalorder %s2870_s24, %s2971_s25 }
 0x44b   : > { %p2070_p6 = scmp.lt.u32.totalorder %s2068_s11, %s2064_s28  ;;  %p2072_p9 = scmp.lt.u32.totalorder %s2064_s28, %s2870_s24 }
 0x44c   : > { %p2066_p3 = pnand %p2065_p2, %p2290_p7 }
 0x44d   : > { %p2071_p8 = por %p2070_p6, %p2069_p5 }
 0x44e   : > { %p2067_p4 = pneg %p2066_p3 }
 0x44f   : > { %p2073_p10 = por %p2072_p9, %p2071_p8 }
 0x451   : > { %p2074_p11 = pnand %p2073_p10, %p2067_p4 }
 0x453   : > { %2077 = shalt.err (!%p2074_p11)
}
 0x454   : > { %s2166_s16 = smov 128   ;;  %s2167_s17 = smov 8  }
 0x455   : > { %1940 = dma.vmem_to_hbm [thread:$0]  (%p2290_p7), %s2873_s29, 2048, %s2870_s24, %s2877_s23, %s2166_s16, %s2166_s16, %s2167_s17  }
 0x456 PF: > { %s2973_s19 = sld [smem:[#allocation6_spill]]  ;;  %p1946_p13 = scmp.ge.s32.totalorder %s2160_s18, 2 }
 0x458   : > { %p1943_p0 = pnand %p1946_p13, %p2298_p12 }
 0x45c   : > { %s1560_s22 = sand.u32 1, %s2973_s19  }
 0x45d   : > { %s1561_s26 = scalar_lea.sflag [#allocation4], %s1560_s22 }
 0x45e   : > { %2119 = dma.done.wait (!%p1943_p0), %s1561_s26, 2048  }
 0x45f   : > { %2121 = vsyncadd (!%p1943_p0), %s1561_s26, 4294965248  ;;  %s23_s18 = sadd.s32 1, %s2160_s18   ;;  %s2975_s20 = sld [smem:[#allocation7_spill]] }
 0x460   : > { %p20_p1 = scmp.ge.s32.totalorder %s23_s18, 6   ;;  %s2976_s11 = sld [smem:[#allocation14_spill]] }
 0x461   : > { %s2977_s12 = sld [smem:[#allocation8_spill]]  ;;  %s2978_s13 = sld [smem:[#allocation15_spill]] }
 0x462   : > { %s2979_s14 = sld [smem:[#allocation9_spill]]  ;;  %s2980_s15 = sld [smem:[#allocation10_spill]] }
 0x463   : > { %s2981_s16 = sld [smem:[#allocation11_spill]]  ;;  %s2982_s17 = sld [smem:[#allocation12_spill]] }
 0x464   : > { %s2983_s30 = smov %s2128_s10  ;;  %22 = sbr.rel (!%p20_p1) target bundleno = 9 (0x9), region = 162 }
 0x465   : > { %s2984_s10 = smov %s2975_s20 }
 0x46b   :  { %1574 = vsyncpa [#allocation4], 1 }
 0x46c   :  { %1576 = vsyncpa [#allocation4 + $0x1], 1 }

// kernel: engcn_forward.4
= control target key start
LH: loop header
LB: loop body
LE: loop exit
PB: predicated region body
PF: predicated region fallthrough
CT: control target
= control target key end

     0   :  { %s2736_s0 = inlined_call_operand.vmem [shape: bf16[256,256], index: 0, kind: input, shape index: {}]   ;;  %s2737_s1 = inlined_call_operand.vmem [shape: bf16[256,128], index: 1, kind: input, shape index: {}]   ;;  %s2738_s2 = inlined_call_operand.vmem [shape: f32[256,1], index: 2, kind: input, shape index: {}]   ;;  %s2739_s3 = inlined_call_operand.vmem [shape: f32[128,256], index: 3, kind: input, shape index: {}]   ;;  %s2740_s4 = inlined_call_operand.vmem [shape: f32[1,256], index: 4, kind: input, shape index: {}]   ;;  %s2741_s5 = inlined_call_operand.vmem [shape: f32[256,128], index: 5, kind: input, shape index: {}]   ;;  %s2742_s6 = inlined_call_operand.vmem [shape: f32[1,128], index: 6, kind: input, shape index: {}]   ;;  %s2743_s7 = inlined_call_operand.vmem [shape: f32[256,128], index: 7, kind: input, shape index: {}, may-alias: {7,9}]   ;;  %s2744_s8 = inlined_call_operand.vmem [shape: f32[256,128], index: 8, kind: output, shape index: {0}]   ;;  %s2745_s9 = inlined_call_operand.vmem [shape: f32[256,128], index: 9, kind: output, shape index: {1}, may-alias: {7,9}]  }
   0x1   :  { %2748 = sst [smem:[#allocation5_spill]] %s2736_s0 }
   0x2   :  { %s2106_s30 = smov 0   ;;  %s2108_s10 = smov 0  }
   0x3   :  { %s2110_s11 = smov 0   ;;  %s2112_s12 = smov 0  }
   0x4   :  { %s2114_s13 = smov 0   ;;  %s2116_s14 = smov 0  }
   0x5   :  { %s2118_s15 = smov 0  }
   0x6 LB: > { %s29_s16 = sadd.s32 1, %s2043_s13  ;;  %s32_s17 = sadd.s32 1, %s2047_s14  ;;  %s2051_s15 = sphi %s2118_s15, %s20_s15   ;;  %s2047_s14 = sphi %s2116_s14, %s2759_s14   ;;  %s2043_s13 = sphi %s2114_s13, %s2758_s13   ;;  %s2039_s12 = sphi %s2112_s12, %s2757_s12   ;;  %s2035_s11 = sphi %s2110_s11, %s2756_s11   ;;  %s2031_s10 = sphi %s2108_s10, %s2755_s10   ;;  %s2027_s30 = sphi %s2106_s30, %s2754_s30  }
   0x7   : > { %p30_p0 = scmp.ge.s32.totalorder %s29_s16, 2  ;;  %p48_p1 = scmp.ne.s32.totalorder %s2031_s10, %s2027_s30 }
   0x8   : > { %p49_p2 = scmp.eq.s32.totalorder %s2051_s15, 0  ;;  %s41_s21 = sadd.s32 1, %s2031_s10 }
   0x9   : > { %s2761_s16 = smov (%p30_p0, %s29_s16), 0  ;;  %s2763_s17 = smov (!%p30_p0, %s32_s17), %s2047_s14 }
   0xa   : > { %2749 = sst [smem:[#allocation3_spill]] %s2761_s16  ;;  %p50_p3 = por %p49_p2, %p48_p1 }
   0xb   : > { %p34_p4 = scmp.ge.s32.totalorder %s2763_s17, 2  ;;  %s37_s18 = ssub.s32 %s2043_s13, %s2761_s16 }
   0xc   : > { %p1673_p6 = scmp.ge.s32.totalorder %s2051_s15, 4 }
   0xd   : > { %s2765_s17 = smov (%p34_p4, %s2763_s17), 0 }
   0xe   : > { %2750 = sst [smem:[#allocation4_spill]] %s2765_s17  ;;  %s36_s19 = ssub.s32 %s2047_s14, %s2765_s17 }
   0xf   : > { %s38_s20 = sor.u32 %s37_s18, %s36_s19  ;;  %300 = sbr.rel (%p1673_p6) target bundleno = 42 (0x2a), region = 32 }
  0x10   : > { %p39_p5 = scmp.eq.s32.totalorder %s38_s20, 0 }
  0x12   : > { %s2157_s22 = scalar_select %p39_p5, %s2031_s10, %s41_s21  }
  0x16   : > { %303 = sbr.rel (!%p50_p3) target bundleno = 42 (0x2a), region = 36  ;;  %s305_s23 = sand.u32 (%p50_p3), 1, %s2031_s10  }
  0x17   : > { %s1711_s24 = sshll.u32 (%p50_p3), %s2047_s14, 5  ;;  %s1674_s25 = sshll.u32 (%p50_p3), %s305_s23, 6 }
  0x18   : > { %s310_s26 = sadd.s32 (%p50_p3), %s2043_s13, %s1711_s24  ;;  %s2751_s0 = sld [smem:[#allocation5_spill]] (%p50_p3) }
  0x19   : > { %s1677_s27 = sshll.u32 (%p50_p3), %s310_s26, 2  ;;  %s307_s19 = scalar_lea.vmem (%p50_p3), [#allocation2], %s1674_s25 }
  0x1e   : > { %s2166_s18 = scalar_lea.vmem %s2751_s0, %s1677_s27 }
  0x1f   : > { %v328_v0 = vld [vmem:[%s2166_s18] sm:$0xf]  ;;  %v330_v1 = vld [vmem:[%s2166_s18 + $0x8] sm:$0xf]  ;;  %v332_v2 = vld [vmem:[%s2166_s18 + $0x10] sm:$0xf] }
  0x20   : > { %329 = vst [vmem:[%s307_s19] sm:$0xf] %v328_v0  ;;  %331 = vst [vmem:[%s307_s19 + $0x4] sm:$0xf] %v330_v1  ;;  %v334_v3 = vld [vmem:[%s2166_s18 + $0x18] sm:$0xf] }
  0x21   : > { %333 = vst [vmem:[%s307_s19 + $0x8] sm:$0xf] %v332_v2  ;;  %v336_v4 = vld [vmem:[%s2166_s18 + $0x20] sm:$0xf]  ;;  %v338_v5 = vld [vmem:[%s2166_s18 + $0x28] sm:$0xf] }
  0x22   : > { %335 = vst [vmem:[%s307_s19 + $0xc] sm:$0xf] %v334_v3  ;;  %337 = vst [vmem:[%s307_s19 + $0x10] sm:$0xf] %v336_v4  ;;  %v340_v6 = vld [vmem:[%s2166_s18 + $0x30] sm:$0xf] }
  0x23   : > { %339 = vst [vmem:[%s307_s19 + $0x14] sm:$0xf] %v338_v5  ;;  %v342_v7 = vld [vmem:[%s2166_s18 + $0x38] sm:$0xf]  ;;  %v344_v8 = vld [vmem:[%s2166_s18 + $0x40] sm:$0xf] }
  0x24   : > { %341 = vst [vmem:[%s307_s19 + $0x18] sm:$0xf] %v340_v6  ;;  %343 = vst [vmem:[%s307_s19 + $0x1c] sm:$0xf] %v342_v7  ;;  %v346_v9 = vld [vmem:[%s2166_s18 + $0x48] sm:$0xf] }
  0x25   : > { %345 = vst [vmem:[%s307_s19 + $0x20] sm:$0xf] %v344_v8  ;;  %v348_v10 = vld [vmem:[%s2166_s18 + $0x50] sm:$0xf]  ;;  %v350_v11 = vld [vmem:[%s2166_s18 + $0x58] sm:$0xf] }
  0x26   : > { %347 = vst [vmem:[%s307_s19 + $0x24] sm:$0xf] %v346_v9  ;;  %349 = vst [vmem:[%s307_s19 + $0x28] sm:$0xf] %v348_v10  ;;  %v352_v12 = vld [vmem:[%s2166_s18 + $0x60] sm:$0xf] }
  0x27   : > { %351 = vst [vmem:[%s307_s19 + $0x2c] sm:$0xf] %v350_v11  ;;  %v354_v13 = vld [vmem:[%s2166_s18 + $0x68] sm:$0xf]  ;;  %v356_v14 = vld [vmem:[%s2166_s18 + $0x70] sm:$0xf] }
  0x28   : > { %353 = vst [vmem:[%s307_s19 + $0x30] sm:$0xf] %v352_v12  ;;  %355 = vst [vmem:[%s307_s19 + $0x34] sm:$0xf] %v354_v13  ;;  %v358_v15 = vld [vmem:[%s2166_s18 + $0x78] sm:$0xf] }
  0x29   : > { %357 = vst [vmem:[%s307_s19 + $0x38] sm:$0xf] %v356_v14  ;;  %359 = vst [vmem:[%s307_s19 + $0x3c] sm:$0xf] %v358_v15 }
  0x2a PF: > { %p1678_p7 = scmp.ge.s32.totalorder %s2051_s15, 1  ;;  %p440_p8 = scmp.lt.s32.totalorder %s2051_s15, 5 }
  0x2c   : > { %p441_p9 = pnand %p1678_p7, %p440_p8 }
  0x2d   : > { %s447_s20 = sand.u32 (!%p441_p9), 1, %s2027_s30   ;;  %s1680_s21 = sshll.u32 (!%p441_p9), %s2035_s11, 4 }
  0x2e   : > { %444 = sbr.rel (%p441_p9) target bundleno = 1067 (0x42b), region = 89  ;;  %s1679_s23 = sshll.u32 (!%p441_p9), %s447_s20, 6 }
  0x2f   : > { %p504_p10 = scmp.lt.s32.totalorder (!%p441_p9), %s1680_s21, 31  ;;  %s1682_s24 = sshll.u32 (!%p441_p9), %s2039_s12, 4 }
  0x30   : > { %p510_p11 = scmp.lt.s32.totalorder (!%p441_p9), %s1682_s24, 31  ;;  %p1690_p12 = scmp.ne.s32.totalorder (!%p441_p9), %s2035_s11, 0 }
  0x35   : > { %s2767_s21 = smov (!%p504_p10, %s1680_s21), 31  ;;  %s2769_s24 = smov (!%p510_p11, %s1682_s24), 31 }
  0x36   : > { %s1681_s25 = sshll.u32 %s2767_s21, 2  ;;  %s1683_s29 = sshll.u32 %s2769_s24, 3  ;;  %v2053_v16 = vmov (!%p1690_p12), 0.0  }
  0x37   : > { %s2192_s28 = scalar_lea.vmem %s2737_s1, %s1681_s25  ;;  %s2197_s0 = scalar_lea.vmem %s2738_s2, %s1683_s29 }
  0x38   : > { %s2202_s20 = scalar_lea.vmem %s2743_s7, %s1683_s29  ;;  %s2207_s21 = scalar_lea.vmem %s2744_s8, %s1683_s29 }
  0x39   : > { %s2212_s27 = scalar_lea.vmem %s2745_s9, %s1683_s29  ;;  %s2214_s24 = scalar_lea.vmem [#allocation2], %s1679_s23  ;;  %538 = vst [vmem:[%s2207_s21] sm:$0xff] (!%p1690_p12), %v2053_v16  ;;  %539 = vst [vmem:[%s2207_s21 + $0x8] sm:$0xff] (!%p1690_p12), %v2053_v16 }
  0x3a   : > { %537 = sbr.rel (%p1690_p12) target bundleno = 65 (0x41), region = 97  ;;  %540 = vst [vmem:[%s2207_s21 + $0x10] sm:$0xff] (!%p1690_p12), %v2053_v16  ;;  %541 = vst [vmem:[%s2207_s21 + $0x18] sm:$0xff] (!%p1690_p12), %v2053_v16 }
  0x3b   : > { %542 = vst [vmem:[%s2207_s21 + $0x20] sm:$0xff] (!%p1690_p12), %v2053_v16  ;;  %543 = vst [vmem:[%s2207_s21 + $0x28] sm:$0xff] (!%p1690_p12), %v2053_v16 }
  0x3c   : > { %544 = vst [vmem:[%s2207_s21 + $0x30] sm:$0xff] (!%p1690_p12), %v2053_v16  ;;  %545 = vst [vmem:[%s2207_s21 + $0x38] sm:$0xff] (!%p1690_p12), %v2053_v16 }
  0x3d   : > { %546 = vst [vmem:[%s2207_s21 + $0x40] sm:$0xff] (!%p1690_p12), %v2053_v16  ;;  %547 = vst [vmem:[%s2207_s21 + $0x48] sm:$0xff] (!%p1690_p12), %v2053_v16 }
  0x3e   : > { %548 = vst [vmem:[%s2207_s21 + $0x50] sm:$0xff] (!%p1690_p12), %v2053_v16  ;;  %549 = vst [vmem:[%s2207_s21 + $0x58] sm:$0xff] (!%p1690_p12), %v2053_v16 }
  0x3f   : > { %550 = vst [vmem:[%s2207_s21 + $0x60] sm:$0xff] (!%p1690_p12), %v2053_v16  ;;  %551 = vst [vmem:[%s2207_s21 + $0x68] sm:$0xff] (!%p1690_p12), %v2053_v16 }
  0x40   : > { %552 = vst [vmem:[%s2207_s21 + $0x70] sm:$0xff] (!%p1690_p12), %v2053_v16  ;;  %553 = vst [vmem:[%s2207_s21 + $0x78] sm:$0xff] (!%p1690_p12), %v2053_v16 }
  0x41 PF: > { %v1979_v17 = vld [vmem:[%s2192_s28] sm:$0xff]   ;;  %v1980_v18 = vld [vmem:[%s2192_s28 + $0x8] sm:$0xff]   ;;  %v1981_v19 = vld [vmem:[%s2192_s28 + $0x10] sm:$0xff]   ;;  %p1707_p13 = scmp.ne.s32.totalorder %s2035_s11, 1 }
  0x42   : > { %1808 = vmatprep.subr.bf16.mxu0 %v1979_v17  ;;  %1904 = vmatprep.subr.bf16.mxu1 %v1979_v17  ;;  %v1982_v20 = vld [vmem:[%s2192_s28 + $0x18] sm:$0xff]   ;;  %v1987_v21 = vld [vmem:[%s2214_s24] sm:$0xff]   ;;  %v1984_v24 = vld [vmem:[%s2192_s28 + $0x28] sm:$0xff]  }
  0x43   : > { %1809 = vmatpush3.bf16.msra.mxu0 %v1979_v17  ;;  %1912 = vmatpush3.bf16.msra.mxu1 %v1979_v17  ;;  %v1988_v22 = vld [vmem:[%s2214_s24 + $0x20] sm:$0xff]   ;;  %v1985_v25 = vld [vmem:[%s2192_s28 + $0x30] sm:$0xff]   ;;  %v1986_v26 = vld [vmem:[%s2192_s28 + $0x38] sm:$0xff]  }
  0x44   : > { %1810 = vmatprep.subr.bf16.mxu0 %v1980_v18  ;;  %1905 = vmatprep.subr.bf16.mxu1 %v1980_v18  ;;  %v1983_v23 = vld [vmem:[%s2192_s28 + $0x20] sm:$0xff]   ;;  %v1989_v27 = vld [vmem:[%s2214_s24 + $0x8] sm:$0xff]   ;;  %v1991_v29 = vld [vmem:[%s2214_s24 + $0x10] sm:$0xff]  }
  0x45   : > { %1824 = vmatprep.mubr.bf16.mxu0 %v1987_v21  ;;  %1832 = vmatprep.mubr.bf16.mxu1 %v1988_v22  ;;  %v1990_v28 = vld [vmem:[%s2214_s24 + $0x28] sm:$0xff]   ;;  %v1992_v30 = vld [vmem:[%s2214_s24 + $0x30] sm:$0xff]   ;;  %v1993_v31 = vld [vmem:[%s2214_s24 + $0x18] sm:$0xff]   ;;  %v2055_v22 = vmov (!%p1707_p13), 0.0  }
  0x46   : > { %v1994_v32 = vld [vmem:[%s2214_s24 + $0x38] sm:$0xff]   ;;  %v556_v33 = vld [vmem:[%s2207_s21 + $0x10] sm:$0xff]  ;;  %v554_v35 = vld [vmem:[%s2207_s21] sm:$0xff] }
  0x47   : > { %1811 = vmatpush3.bf16.msra.mxu0 %v1980_v18  ;;  %1913 = vmatpush3.bf16.msra.mxu1 %v1980_v18  ;;  %v564_v34 = vld [vmem:[%s2207_s21 + $0x50] sm:$0xff]  ;;  %v562_v36 = vld [vmem:[%s2207_s21 + $0x40] sm:$0xff]  ;;  %v557_v39 = vld [vmem:[%s2207_s21 + $0x18] sm:$0xff] }
  0x48   : > { %1812 = vmatprep.subr.bf16.mxu0 %v1981_v19  ;;  %1906 = vmatprep.subr.bf16.mxu1 %v1981_v19  ;;  %v565_v40 = vld [vmem:[%s2207_s21 + $0x58] sm:$0xff]  ;;  %v555_v45 = vld [vmem:[%s2207_s21 + $0x8] sm:$0xff]  ;;  %v560_v57 = vld [vmem:[%s2207_s21 + $0x30] sm:$0xff] }
  0x49   : > { %v563_v46 = vld [vmem:[%s2207_s21 + $0x48] sm:$0xff]  ;;  %v568_v58 = vld [vmem:[%s2207_s21 + $0x70] sm:$0xff]  ;;  %v558_v59 = vld [vmem:[%s2207_s21 + $0x20] sm:$0xff] }
  0x4a   : > { %v566_v60 = vld [vmem:[%s2207_s21 + $0x60] sm:$0xff]  ;;  %v561_v63 = vld [vmem:[%s2207_s21 + $0x38] sm:$0xff]  ;;  %v559_v5 = vld [vmem:[%s2207_s21 + $0x28] sm:$0xff] }
  0x4b   : > { %1813 = vmatpush3.bf16.msra.mxu0 %v1981_v19  ;;  %1914 = vmatpush3.bf16.msra.mxu1 %v1981_v19  ;;  %v569_v0 = vld [vmem:[%s2207_s21 + $0x78] sm:$0xff]  ;;  %v567_v6 = vld [vmem:[%s2207_s21 + $0x68] sm:$0xff]  ;;  %v833_v17 = vld [vmem:[%s2197_s0 + $0x10] sm:$0xff] (!%p1707_p13)  ;;  %v2054_v19 = vmov (!%p1707_p13), 0  }
  0x4c   : > { %1814 = vmatprep.subr.bf16.mxu0 %v1982_v20  ;;  %1907 = vmatprep.subr.bf16.mxu1 %v1982_v20  ;;  %v831_v18 = vld [vmem:[%s2197_s0] sm:$0xff] (!%p1707_p13)  ;;  %v832_v21 = vld [vmem:[%s2197_s0 + $0x8] sm:$0xff] (!%p1707_p13) }
  0x4d   : > { %1996 = vset.pattern.permute.xlu1 (!%p1707_p13), %v2054_v19  ;;  %1995 = vset.pattern.permute.xlu0 (!%p1707_p13), %v2054_v19  ;;  %v1040_v19 = vld [vmem:[%s2741_s5 + $0x80] sm:$0xff] (!%p1707_p13) }
  0x4e   : > { %875 = vperm.xlu1 (!%p1707_p13), %1996, %v833_v17   ;;  %865 = vperm.xlu0 (!%p1707_p13), %1995, %v831_v18   ;;  %v1021_v17 = vld [vmem:[%s2739_s3 + $0xf0] sm:$0xff] (!%p1707_p13) }
  0x4f   : > { %1815 = vmatpush3.bf16.msra.mxu0 %v1982_v20  ;;  %1915 = vmatpush3.bf16.msra.mxu1 %v1982_v20  ;;  %v834_v20 = vld [vmem:[%s2197_s0 + $0x18] sm:$0xff] (!%p1707_p13) }
  0x50   : > { %1816 = vmatprep.subr.bf16.mxu0 %v1983_v23  ;;  %1908 = vmatprep.subr.bf16.mxu1 %v1983_v23 }
  0x52   : > { %880 = vperm.xlu1 (!%p1707_p13), %1996, %v834_v20   ;;  %870 = vperm.xlu0 (!%p1707_p13), %1995, %v832_v21   ;;  %v1041_v20 = vld [vmem:[%s2741_s5 + $0x88] sm:$0xff] (!%p1707_p13)  ;;  %v1024_v21 = vld [vmem:[%s2741_s5] sm:$0xff] (!%p1707_p13) }
  0x53   : > { %1817 = vmatpush3.bf16.msra.mxu0 %v1983_v23  ;;  %1916 = vmatpush3.bf16.msra.mxu1 %v1983_v23  ;;  %v836_v23 = vld [vmem:[%s2197_s0 + $0x28] sm:$0xff] (!%p1707_p13) }
  0x54   : > { %1818 = vmatprep.subr.bf16.mxu0 %v1984_v24  ;;  %1909 = vmatprep.subr.bf16.mxu1 %v1984_v24 }
  0x56   : > { %890 = vperm.xlu1 (!%p1707_p13), %1996, %v836_v23   ;;  %v1872_v23 = vpack.c.bf16 (!%p1707_p13), %v1041_v20, %v1040_v19 }
  0x57   : > { %1819 = vmatpush3.bf16.msra.mxu0 %v1984_v24  ;;  %1917 = vmatpush3.bf16.msra.mxu1 %v1984_v24  ;;  %v835_v24 = vld [vmem:[%s2197_s0 + $0x20] sm:$0xff] (!%p1707_p13) }
  0x58   : > { %1820 = vmatprep.subr.bf16.mxu0 %v1985_v25  ;;  %1910 = vmatprep.subr.bf16.mxu1 %v1985_v25 }
  0x59   : > { %885 = vperm.xlu0 (!%p1707_p13), %1995, %v835_v24   ;;  %v1025_v24 = vld [vmem:[%s2741_s5 + $0x8] sm:$0xff] (!%p1707_p13) }
  0x5b   : > { %1821 = vmatpush3.bf16.msra.mxu0 %v1985_v25  ;;  %1918 = vmatpush3.bf16.msra.mxu1 %v1985_v25  ;;  %v992_v25 = vld [vmem:[%s2739_s3 + $0x8] sm:$0xff] (!%p1707_p13) }
  0x5c   : > { %1822 = vmatprep.subr.bf16.mxu0 %v1986_v26  ;;  %1911 = vmatprep.subr.bf16.mxu1 %v1986_v26 }
  0x5f   : > { %1823 = vmatpush3.bf16.msra.mxu0 %v1986_v26  ;;  %1919 = vmatpush3.bf16.msra.mxu1 %v1986_v26  ;;  %v994_v26 = vld [vmem:[%s2739_s3 + $0x18] sm:$0xff] (!%p1707_p13) }
  0x60   : > { %1873 = vmatprep.subr.bf16.mxu1 (!%p1707_p13), %v1872_v23 }
  0x62   : > { %1825 = vmatmul.mubr.bf16.vlgmr.msra.gmra.mrb[0].mxu0 %v1989_v27  ;;  %1833 = vmatmul.mubr.bf16.vlgmr.msra.gmra.mrb[0].mxu1 %v1990_v28  ;;  %v1840_v27 = vpack.c.bf16 (!%p1707_p13), %v994_v26, %v992_v25  ;;  %v991_v28 = vld [vmem:[%s2739_s3] sm:$0xff] (!%p1707_p13)  ;;  %v1042_v25 = vld [vmem:[%s2741_s5 + $0x90] sm:$0xff] (!%p1707_p13)  ;;  %v1043_v26 = vld [vmem:[%s2741_s5 + $0x98] sm:$0xff] (!%p1707_p13) }
  0x63   : > { %1828 = vmatprep.mubr.bf16.mxu0 %v1991_v29  ;;  %1836 = vmatprep.mubr.bf16.mxu1 %v1992_v30  ;;  %v993_v29 = vld [vmem:[%s2739_s3 + $0x10] sm:$0xff] (!%p1707_p13)  ;;  %v996_v30 = vld [vmem:[%s2739_s3 + $0x28] sm:$0xff] (!%p1707_p13) }
  0x64   : > { %1841 = vmatprep.subr.bf16.mxu0 (!%p1707_p13), %v1840_v27  ;;  %v1874_v27 = vpack.c.bf16 (!%p1707_p13), %v1025_v24, %v1024_v21 }
  0x66   : > { %1875 = vmatpush3.bf16.msra.mxu1 (!%p1707_p13), %v1874_v27 }
  0x6a   : > { %1829 = vmatmul.mubr.bf16.gmra.mrb[4].mxu0 %v1993_v31  ;;  %1837 = vmatmul.mubr.bf16.gmra.mrb[4].mxu1 %v1994_v32  ;;  %v1842_v31 = vpack.c.bf16 (!%p1707_p13), %v993_v29, %v991_v28  ;;  %v998_v32 = vld [vmem:[%s2739_s3 + $0x38] sm:$0xff] (!%p1707_p13)  ;;  %v1876_v28 = vpack.c.bf16 (!%p1707_p13), %v1043_v26, %v1042_v25  ;;  %v1026_v29 = vld [vmem:[%s2741_s5 + $0x10] sm:$0xff] (!%p1707_p13) }
  0x6b   : > { %1132 = vmatprep.mubr.f32.mxu0 (!%p1707_p13), %v2055_v22 }
  0x6c   : > { %1843 = vmatpush1.bf16.msra.mxu0 (!%p1707_p13), %v1842_v31  ;;  %v1044_v31 = vld [vmem:[%s2741_s5 + $0xa0] sm:$0xff] (!%p1707_p13)  ;;  %1877 = vmatprep.subr.bf16.mxu1 (!%p1707_p13), %v1876_v28 }
 0x135   : > { %v1826_v37 = vpop.f32.mrb[0].mxu0  ;;  %v1834_v38 = vpop.f32.mrb[0].mxu1 }
 0x136   : > { %v797_v41 = vadd.f32 %v1826_v37, %v556_v33  ;;  %v805_v42 = vadd.f32 %v1834_v38, %v564_v34  ;;  %v732_v43 = vpop.f32.mrb[1].mxu0  ;;  %v764_v44 = vpop.f32.mrb[1].mxu1  ;;  %v995_v33 = vld [vmem:[%s2739_s3 + $0x20] sm:$0xff] (!%p1707_p13)  ;;  %v997_v34 = vld [vmem:[%s2739_s3 + $0x30] sm:$0xff] (!%p1707_p13)  ;;  %v1002_v37 = vld [vmem:[%s2739_s3 + $0x58] sm:$0xff] (!%p1707_p13) }
 0x137   : > { %v795_v47 = vadd.f32 %v732_v43, %v554_v35  ;;  %v803_v48 = vadd.f32 %v764_v44, %v562_v36  ;;  %v1827_v49 = vpop.f32.mrb[2].mxu0  ;;  %v1835_v50 = vpop.f32.mrb[2].mxu1  ;;  %v1844_v35 = vpack.c.bf16 (!%p1707_p13), %v998_v32, %v996_v30  ;;  %v1000_v36 = vld [vmem:[%s2739_s3 + $0x48] sm:$0xff] (!%p1707_p13)  ;;  %v1846_v38 = vpack.c.bf16 (!%p1707_p13), %v997_v34, %v995_v33  ;;  %v1027_v30 = vld [vmem:[%s2741_s5 + $0x18] sm:$0xff] (!%p1707_p13) }
 0x138   : > { %813 = vst [vmem:[%s2207_s21 + $0x10] sm:$0xff] %v797_v41  ;;  %821 = vst [vmem:[%s2207_s21 + $0x50] sm:$0xff] %v805_v42  ;;  %v798_v51 = vadd.f32 %v1827_v49, %v557_v39  ;;  %v806_v52 = vadd.f32 %v1835_v50, %v565_v40  ;;  %v735_v53 = vpop.f32.mrb[3].mxu0  ;;  %v767_v54 = vpop.f32.mrb[3].mxu1  ;;  %v999_v39 = vld [vmem:[%s2739_s3 + $0x40] sm:$0xff] (!%p1707_p13)  ;;  %v1001_v40 = vld [vmem:[%s2739_s3 + $0x50] sm:$0xff] (!%p1707_p13)  ;;  %v1848_v43 = vpack.c.bf16 (!%p1707_p13), %v1002_v37, %v1000_v36 }
 0x139   : > { %811 = vst [vmem:[%s2207_s21] sm:$0xff] %v795_v47  ;;  %819 = vst [vmem:[%s2207_s21 + $0x40] sm:$0xff] %v803_v48  ;;  %v796_v55 = vadd.f32 %v735_v53, %v555_v45  ;;  %v804_v56 = vadd.f32 %v767_v54, %v563_v46  ;;  %v838_v41 = vld [vmem:[%s2197_s0 + $0x38] sm:$0xff] (!%p1707_p13)  ;;  %v837_v42 = vld [vmem:[%s2197_s0 + $0x30] sm:$0xff] (!%p1707_p13)  ;;  %1845 = vmatprep.subr.bf16.mxu0 (!%p1707_p13), %v1844_v35  ;;  %v1850_v46 = vpack.c.bf16 (!%p1707_p13), %v1001_v40, %v999_v39 }
 0x13a   : > { %814 = vst [vmem:[%s2207_s21 + $0x18] sm:$0xff] %v798_v51  ;;  %822 = vst [vmem:[%s2207_s21 + $0x58] sm:$0xff] %v806_v52  ;;  %v1004_v44 = vld [vmem:[%s2739_s3 + $0x68] sm:$0xff] (!%p1707_p13)  ;;  %v1006_v45 = vld [vmem:[%s2739_s3 + $0x78] sm:$0xff] (!%p1707_p13)  ;;  %1847 = vmatpush1.bf16.msra.mxu0 (!%p1707_p13), %v1846_v38  ;;  %900 = vperm.xlu1 (!%p1707_p13), %1996, %v838_v41   ;;  %v1878_v33 = vpack.c.bf16 (!%p1707_p13), %v1027_v30, %v1026_v29 }
 0x13b   : > { %812 = vst [vmem:[%s2207_s21 + $0x8] sm:$0xff] %v796_v55  ;;  %820 = vst [vmem:[%s2207_s21 + $0x48] sm:$0xff] %v804_v56  ;;  %895 = vperm.xlu0 (!%p1707_p13), %1995, %v837_v42   ;;  %v1003_v47 = vld [vmem:[%s2739_s3 + $0x60] sm:$0xff] (!%p1707_p13)  ;;  %v1005_v48 = vld [vmem:[%s2739_s3 + $0x70] sm:$0xff] (!%p1707_p13)  ;;  %1849 = vmatprep.subr.bf16.mxu0 (!%p1707_p13), %v1848_v43  ;;  %v1852_v51 = vpack.c.bf16 (!%p1707_p13), %v1006_v45, %v1004_v44 }
 0x13c   : > { %v840_v49 = vld [vmem:[%s2197_s0 + $0x48] sm:$0xff] (!%p1707_p13)  ;;  %v839_v50 = vld [vmem:[%s2197_s0 + $0x40] sm:$0xff] (!%p1707_p13)  ;;  %v1010_v53 = vld [vmem:[%s2739_s3 + $0x98] sm:$0xff] (!%p1707_p13)  ;;  %v1854_v54 = vpack.c.bf16 (!%p1707_p13), %v1005_v48, %v1003_v47  ;;  %1879 = vmatpush3.bf16.msra.mxu1 (!%p1707_p13), %v1878_v33 }
 0x13d   : > { %v1830_v61 = vpop.f32.mrb[4].mxu0  ;;  %v1838_v62 = vpop.f32.mrb[4].mxu1  ;;  %830 = sbr.rel (%p1707_p13) target bundleno = 1067 (0x42b), region = 101  ;;  %v1008_v52 = vld [vmem:[%s2739_s3 + $0x88] sm:$0xff] (!%p1707_p13)  ;;  %v1007_v55 = vld [vmem:[%s2739_s3 + $0x80] sm:$0xff] (!%p1707_p13)  ;;  %v1009_v56 = vld [vmem:[%s2739_s3 + $0x90] sm:$0xff] (!%p1707_p13) }
 0x13e   : > { %v801_v1 = vadd.f32 %v1830_v61, %v560_v57  ;;  %v809_v2 = vadd.f32 %v1838_v62, %v568_v58  ;;  %v748_v3 = vpop.f32.mrb[5].mxu0  ;;  %v780_v4 = vpop.f32.mrb[5].mxu1  ;;  %1851 = vmatpush1.bf16.msra.mxu0 (!%p1707_p13), %v1850_v46  ;;  %910 = vperm.xlu1 (!%p1707_p13), %1996, %v840_v49   ;;  %v842_v57 = vld [vmem:[%s2197_s0 + $0x58] sm:$0xff] (!%p1707_p13)  ;;  %v841_v58 = vld [vmem:[%s2197_s0 + $0x50] sm:$0xff] (!%p1707_p13)  ;;  %v1858_v62 = vpack.c.bf16 (!%p1707_p13), %v1009_v56, %v1007_v55  ;;  %v1045_v32 = vld [vmem:[%s2741_s5 + $0xa8] sm:$0xff] (!%p1707_p13) }
 0x13f   : > { %v799_v7 = vadd.f32 %v748_v3, %v558_v59  ;;  %v807_v8 = vadd.f32 %v780_v4, %v566_v60  ;;  %v1831_v9 = vpop.f32.mrb[6].mxu0  ;;  %v1839_v10 = vpop.f32.mrb[6].mxu1  ;;  %905 = vperm.xlu0 (!%p1707_p13), %1995, %v839_v50   ;;  %1853 = vmatprep.subr.bf16.mxu0 (!%p1707_p13), %v1852_v51  ;;  %v1856_v59 = vpack.c.bf16 (!%p1707_p13), %v1010_v53, %v1008_v52  ;;  %v1012_v60 = vld [vmem:[%s2739_s3 + $0xa8] sm:$0xff] (!%p1707_p13)  ;;  %v1014_v61 = vld [vmem:[%s2739_s3 + $0xb8] sm:$0xff] (!%p1707_p13)  ;;  %v1028_v35 = vld [vmem:[%s2741_s5 + $0x20] sm:$0xff] (!%p1707_p13) }
 0x140   : > { %817 = vst [vmem:[%s2207_s21 + $0x30] sm:$0xff] %v801_v1  ;;  %825 = vst [vmem:[%s2207_s21 + $0x70] sm:$0xff] %v809_v2  ;;  %v802_v11 = vadd.f32 %v1831_v9, %v561_v63  ;;  %v810_v12 = vadd.f32 %v1839_v10, %v569_v0  ;;  %v751_v13 = vpop.f32.mrb[7].mxu0  ;;  %v783_v14 = vpop.f32.mrb[7].mxu1  ;;  %v1011_v63 = vld [vmem:[%s2739_s3 + $0xa0] sm:$0xff] (!%p1707_p13)  ;;  %v1013_v0 = vld [vmem:[%s2739_s3 + $0xb0] sm:$0xff] (!%p1707_p13)  ;;  %v1860_v3 = vpack.c.bf16 (!%p1707_p13), %v1014_v61, %v1012_v60 }
 0x141   : > { %815 = vst [vmem:[%s2207_s21 + $0x20] sm:$0xff] %v799_v7  ;;  %823 = vst [vmem:[%s2207_s21 + $0x60] sm:$0xff] %v807_v8  ;;  %v800_v15 = vadd.f32 %v751_v13, %v559_v5  ;;  %v808_v16 = vadd.f32 %v783_v14, %v567_v6  ;;  %v844_v1 = vld [vmem:[%s2197_s0 + $0x68] sm:$0xff] (!%p1707_p13)  ;;  %v843_v2 = vld [vmem:[%s2197_s0 + $0x60] sm:$0xff] (!%p1707_p13)  ;;  %v1862_v6 = vpack.c.bf16 (!%p1707_p13), %v1013_v0, %v1011_v63  ;;  %v876_v61 = vpop.permute.xlu1 (!%p1707_p13), %875 }
 0x142   : > { %818 = vst [vmem:[%s2207_s21 + $0x38] sm:$0xff] %v802_v11  ;;  %826 = vst [vmem:[%s2207_s21 + $0x78] sm:$0xff] %v810_v12  ;;  %1855 = vmatpush1.bf16.msra.mxu0 (!%p1707_p13), %v1854_v54  ;;  %920 = vperm.xlu1 (!%p1707_p13), %1996, %v842_v57   ;;  %v1016_v4 = vld [vmem:[%s2739_s3 + $0xc8] sm:$0xff] (!%p1707_p13)  ;;  %v1018_v5 = vld [vmem:[%s2739_s3 + $0xd8] sm:$0xff] (!%p1707_p13)  ;;  %v1880_v34 = vpack.c.bf16 (!%p1707_p13), %v1045_v32, %v1044_v31 }
 0x143   : > { %816 = vst [vmem:[%s2207_s21 + $0x28] sm:$0xff] %v800_v15  ;;  %824 = vst [vmem:[%s2207_s21 + $0x68] sm:$0xff] %v808_v16  ;;  %915 = vperm.xlu0 (!%p1707_p13), %1995, %v841_v58   ;;  %1857 = vmatprep.subr.bf16.mxu0 (!%p1707_p13), %v1856_v59  ;;  %v846_v7 = vld [vmem:[%s2197_s0 + $0x78] sm:$0xff] (!%p1707_p13)  ;;  %v1015_v8 = vld [vmem:[%s2739_s3 + $0xc0] sm:$0xff] (!%p1707_p13)  ;;  %v1864_v11 = vpack.c.bf16 (!%p1707_p13), %v1018_v5, %v1016_v4 }
 0x144   : > { %v1017_v9 = vld [vmem:[%s2739_s3 + $0xd0] sm:$0xff]  ;;  %v1020_v12 = vld [vmem:[%s2739_s3 + $0xe8] sm:$0xff]  ;;  %v1022_v13 = vld [vmem:[%s2739_s3 + $0xf8] sm:$0xff]  ;;  %1881 = vmatprep.subr.bf16.mxu1 %v1880_v34 }
 0x145   : > { %v845_v10 = vld [vmem:[%s2197_s0 + $0x70] sm:$0xff]  ;;  %v1866_v14 = vpack.c.bf16 %v1017_v9, %v1015_v8  ;;  %v1868_v15 = vpack.c.bf16 %v1022_v13, %v1020_v12  ;;  %v1019_v16 = vld [vmem:[%s2739_s3 + $0xe0] sm:$0xff]  ;;  %v1029_v36 = vld [vmem:[%s2741_s5 + $0x28] sm:$0xff] }
 0x146   : > { %1859 = vmatpush1.bf16.msra.mxu0 %v1858_v62  ;;  %930 = vperm.xlu1 %1996, %v844_v1   ;;  %v1870_v18 = vpack.c.bf16 %v1021_v17, %v1019_v16  ;;  %v1046_v37 = vld [vmem:[%s2741_s5 + $0xb0] sm:$0xff]  ;;  %v1047_v38 = vld [vmem:[%s2741_s5 + $0xb8] sm:$0xff]  ;;  %v1882_v39 = vpack.c.bf16 %v1029_v36, %v1028_v35  ;;  %v1048_v43 = vld [vmem:[%s2741_s5 + $0xc0] sm:$0xff]  ;;  %v866_v62 = vpop.permute.xlu0 %865 }
 0x147   : > { %925 = vperm.xlu0 %1995, %v843_v2   ;;  %1861 = vmatprep.subr.bf16.mxu0 %v1860_v3  ;;  %v1884_v40 = vpack.c.bf16 %v1047_v38, %v1046_v37  ;;  %v1030_v41 = vld [vmem:[%s2741_s5 + $0x30] sm:$0xff]  ;;  %v1031_v42 = vld [vmem:[%s2741_s5 + $0x38] sm:$0xff]  ;;  %v1049_v44 = vld [vmem:[%s2741_s5 + $0xc8] sm:$0xff]  ;;  %v881_v3 = vpop.permute.xlu1 %880 }
 0x148   : > { %1883 = vmatpush3.bf16.msra.mxu1 %v1882_v39  ;;  %v1886_v45 = vpack.c.bf16 %v1031_v42, %v1030_v41  ;;  %v1888_v46 = vpack.c.bf16 %v1049_v44, %v1048_v43  ;;  %v1032_v47 = vld [vmem:[%s2741_s5 + $0x40] sm:$0xff]  ;;  %v1033_v48 = vld [vmem:[%s2741_s5 + $0x48] sm:$0xff]  ;;  %v1050_v49 = vld [vmem:[%s2741_s5 + $0xd0] sm:$0xff] }
 0x149   : > { %1885 = vmatprep.subr.bf16.mxu1 %v1884_v40  ;;  %v1051_v50 = vld [vmem:[%s2741_s5 + $0xd8] sm:$0xff]  ;;  %v1890_v51 = vpack.c.bf16 %v1033_v48, %v1032_v47  ;;  %v1034_v53 = vld [vmem:[%s2741_s5 + $0x50] sm:$0xff]  ;;  %v1052_v55 = vld [vmem:[%s2741_s5 + $0xe0] sm:$0xff] }
 0x14a   : > { %1863 = vmatpush1.bf16.msra.mxu0 %v1862_v6  ;;  %940 = vperm.xlu1 %1996, %v846_v7   ;;  %v1892_v52 = vpack.c.bf16 %v1051_v50, %v1050_v49  ;;  %v1035_v54 = vld [vmem:[%s2741_s5 + $0x58] sm:$0xff]  ;;  %v1053_v56 = vld [vmem:[%s2741_s5 + $0xe8] sm:$0xff]  ;;  %v849_v59 = vld [vmem:[%s2207_s21 + $0x10] sm:$0xff]  ;;  %v871_v4 = vpop.permute.xlu0 %870 }
 0x14b   : > { %935 = vperm.xlu0 %1995, %v845_v10   ;;  %1865 = vmatprep.subr.bf16.mxu0 %v1864_v11  ;;  %v1894_v57 = vpack.c.bf16 %v1035_v54, %v1034_v53  ;;  %v1896_v58 = vpack.c.bf16 %v1053_v56, %v1052_v55  ;;  %v847_v60 = vld [vmem:[%s2207_s21] sm:$0xff]  ;;  %v945_v63 = vmul.f32 %v876_v61, %v849_v59  ;;  %v850_v1 = vld [vmem:[%s2207_s21 + $0x18] sm:$0xff]  ;;  %v848_v2 = vld [vmem:[%s2207_s21 + $0x8] sm:$0xff]  ;;  %v891_v9 = vpop.permute.xlu1 %890 }
 0x14c   : > { %1887 = vmatpush3.bf16.msra.mxu1 %v1886_v45  ;;  %v943_v0 = vmul.f32 %v866_v62, %v847_v60  ;;  %v946_v5 = vmul.f32 %v881_v3, %v850_v1  ;;  %v944_v6 = vmul.f32 %v871_v4, %v848_v2  ;;  %v852_v7 = vld [vmem:[%s2207_s21 + $0x28] sm:$0xff]  ;;  %v851_v8 = vld [vmem:[%s2207_s21 + $0x20] sm:$0xff]  ;;  %v854_v13 = vld [vmem:[%s2207_s21 + $0x38] sm:$0xff] }
 0x14d   : > { %1889 = vmatprep.subr.bf16.mxu1 %v1888_v46  ;;  %961 = vst [vmem:[%s2207_s21 + $0x10] sm:$0xff] %v945_v63  ;;  %v948_v11 = vmul.f32 %v891_v9, %v852_v7  ;;  %v856_v19 = vld [vmem:[%s2207_s21 + $0x48] sm:$0xff]  ;;  %v855_v20 = vld [vmem:[%s2207_s21 + $0x40] sm:$0xff]  ;;  %v858_v26 = vld [vmem:[%s2207_s21 + $0x58] sm:$0xff] }
 0x14e   : > { %1867 = vmatpush1.bf16.msra.mxu0 %v1866_v14  ;;  %959 = vst [vmem:[%s2207_s21] sm:$0xff] %v943_v0  ;;  %962 = vst [vmem:[%s2207_s21 + $0x18] sm:$0xff] %v946_v5  ;;  %v886_v10 = vpop.permute.xlu0 %885  ;;  %v853_v14 = vld [vmem:[%s2207_s21 + $0x30] sm:$0xff]  ;;  %v860_v32 = vld [vmem:[%s2207_s21 + $0x68] sm:$0xff] }
 0x14f   : > { %1869 = vmatprep.subr.bf16.mxu0 %v1868_v15  ;;  %960 = vst [vmem:[%s2207_s21 + $0x8] sm:$0xff] %v944_v6  ;;  %v947_v12 = vmul.f32 %v886_v10, %v851_v8  ;;  %964 = vst [vmem:[%s2207_s21 + $0x28] sm:$0xff] %v948_v11  ;;  %v857_v27 = vld [vmem:[%s2207_s21 + $0x50] sm:$0xff]  ;;  %v859_v33 = vld [vmem:[%s2207_s21 + $0x60] sm:$0xff] }
 0x150   : > { %1891 = vmatpush3.bf16.msra.mxu1 %v1890_v51  ;;  %v862_v38 = vld [vmem:[%s2207_s21 + $0x78] sm:$0xff]  ;;  %v861_v39 = vld [vmem:[%s2207_s21 + $0x70] sm:$0xff]  ;;  %v1036_v44 = vld [vmem:[%s2741_s5 + $0x60] sm:$0xff] }
 0x151   : > { %1893 = vmatprep.subr.bf16.mxu1 %v1892_v52  ;;  %963 = vst [vmem:[%s2207_s21 + $0x20] sm:$0xff] %v947_v12  ;;  %v1037_v45 = vld [vmem:[%s2741_s5 + $0x68] sm:$0xff]  ;;  %v1054_v47 = vld [vmem:[%s2741_s5 + $0xf0] sm:$0xff]  ;;  %v1055_v48 = vld [vmem:[%s2741_s5 + $0xf8] sm:$0xff]  ;;  %v1058_v52 = vlaneseq }
 0x152   : > { %1871 = vmatpush1.bf16.msra.mxu0 %v1870_v18  ;;  %v1898_v46 = vpack.c.bf16 %v1037_v45, %v1036_v44  ;;  %v1038_v49 = vld [vmem:[%s2741_s5 + $0x70] sm:$0xff]  ;;  %v1039_v50 = vld [vmem:[%s2741_s5 + $0x78] sm:$0xff]  ;;  %v1023_v55 = vld [vmem:[%s2740_s4] sm:$0x3] }
 0x153   : > { %v1902_v51 = vpack.c.bf16 %v1039_v50, %v1038_v49  ;;  %v1059_v53 = vshrl.u32 %v1058_v52, 7 }
 0x154   : > { %1895 = vmatpush3.bf16.msra.mxu1 %v1894_v57 }
 0x155   : > { %1897 = vmatprep.subr.bf16.mxu1 %v1896_v58  ;;  %1133 = vmatmul.mubr.f32.vlgmr.msra.gmra.mrb[0].mxu0 %v943_v0  ;;  %v1060_v54 = vsub.s32 0, %v1059_v53  ;;  %v1064_v56 = vsub.s32 1, %v1059_v53 }
 0x156   : > { %1138 = vmatprep.mubr.f32.mxu0 %v2055_v22 }
 0x157   : > { %v2541_v57 = vrot.slane %v1023_v55, %v1060_v54  ;;  %v2543_v58 = vrot.slane %v1023_v55, %v1064_v56 }
 0x158   : > { %1899 = vmatpush3.bf16.msra.mxu1 %v1898_v46 }
 0x159   : > { %1139 = vmatmul.mubr.f32.gmra.mrb[2].mxu0 %v944_v6 }
 0x15a   : > { %1144 = vmatprep.mubr.f32.mxu0 %v2055_v22 }
 0x15d   : > { %1145 = vmatmul.mubr.f32.gmra.mrb[4].mxu0 %v945_v63 }
 0x15e   : > { %1150 = vmatprep.mubr.f32.mxu0 %v2055_v22 }
 0x161   : > { %1151 = vmatmul.mubr.f32.gmra.mrb[6].mxu0 %v946_v5 }
 0x162   : > { %1156 = vmatprep.mubr.f32.mxu0 %v2055_v22 }
 0x165   : > { %1157 = vmatmul.mubr.f32.gmra.mrb[8].mxu0 %v947_v12 }
 0x166   : > { %1162 = vmatprep.mubr.f32.mxu0 %v2055_v22 }
 0x169   : > { %1163 = vmatmul.mubr.f32.gmra.mrb[10].mxu0 %v948_v11 }
 0x16a   : > { %1168 = vmatprep.mubr.f32.mxu0 %v2055_v22 }
 0x1b9   : > { %v901_v15 = vpop.permute.xlu1 %900 }
 0x1ba   : > { %v896_v16 = vpop.permute.xlu0 %895  ;;  %v950_v17 = vmul.f32 %v901_v15, %v854_v13 }
 0x1bb   : > { %v949_v18 = vmul.f32 %v896_v16, %v853_v14 }
 0x1bc   : > { %966 = vst [vmem:[%s2207_s21 + $0x38] sm:$0xff] %v950_v17 }
 0x1bd   : > { %965 = vst [vmem:[%s2207_s21 + $0x30] sm:$0xff] %v949_v18  ;;  %v911_v21 = vpop.permute.xlu1 %910  ;;  %1169 = vmatmul.mubr.f32.gmra.mrb[12].mxu0 %v949_v18 }
 0x1be   : > { %v906_v23 = vpop.permute.xlu0 %905  ;;  %v952_v24 = vmul.f32 %v911_v21, %v856_v19  ;;  %1174 = vmatprep.mubr.f32.mxu0 %v2055_v22 }
 0x1bf   : > { %v951_v25 = vmul.f32 %v906_v23, %v855_v20 }
 0x1c0   : > { %968 = vst [vmem:[%s2207_s21 + $0x48] sm:$0xff] %v952_v24 }
 0x1c1   : > { %967 = vst [vmem:[%s2207_s21 + $0x40] sm:$0xff] %v951_v25  ;;  %v921_v28 = vpop.permute.xlu1 %920  ;;  %1175 = vmatmul.mubr.f32.gmra.mrb[14].mxu0 %v950_v17 }
 0x1c2   : > { %v916_v29 = vpop.permute.xlu0 %915  ;;  %v954_v30 = vmul.f32 %v921_v28, %v858_v26  ;;  %1180 = vmatprep.mubr.f32.mxu0 %v2055_v22 }
 0x1c3   : > { %v953_v31 = vmul.f32 %v916_v29, %v857_v27 }
 0x1c4   : > { %970 = vst [vmem:[%s2207_s21 + $0x58] sm:$0xff] %v954_v30 }
 0x1c5   : > { %969 = vst [vmem:[%s2207_s21 + $0x50] sm:$0xff] %v953_v31  ;;  %v931_v34 = vpop.permute.xlu1 %930  ;;  %1181 = vmatmul.mubr.f32.gmra.mrb[16].mxu0 %v951_v25 }
 0x1c6   : > { %v926_v35 = vpop.permute.xlu0 %925  ;;  %v956_v36 = vmul.f32 %v931_v34, %v860_v32  ;;  %1186 = vmatprep.mubr.f32.mxu0 %v2055_v22 }
 0x1c7   : > { %v955_v37 = vmul.f32 %v926_v35, %v859_v33 }
 0x1c8   : > { %972 = vst [vmem:[%s2207_s21 + $0x68] sm:$0xff] %v956_v36 }
 0x1c9   : > { %971 = vst [vmem:[%s2207_s21 + $0x60] sm:$0xff] %v955_v37  ;;  %v941_v40 = vpop.permute.xlu1 %940  ;;  %1187 = vmatmul.mubr.f32.gmra.mrb[18].mxu0 %v952_v24 }
 0x1ca   : > { %v936_v41 = vpop.permute.xlu0 %935  ;;  %v958_v42 = vmul.f32 %v941_v40, %v862_v38  ;;  %1192 = vmatprep.mubr.f32.mxu0 %v2055_v22 }
 0x1cb   : > { %v957_v43 = vmul.f32 %v936_v41, %v861_v39 }
 0x1cc   : > { %974 = vst [vmem:[%s2207_s21 + $0x78] sm:$0xff] %v958_v42 }
 0x1cd   : > { %973 = vst [vmem:[%s2207_s21 + $0x70] sm:$0xff] %v957_v43  ;;  %1193 = vmatmul.mubr.f32.gmra.mrb[20].mxu0 %v953_v31 }
 0x1ce   : > { %1198 = vmatprep.mubr.f32.mxu0 %v2055_v22 }
 0x1d1   : > { %1199 = vmatmul.mubr.f32.gmra.mrb[22].mxu0 %v954_v30 }
 0x1d2   : > { %1204 = vmatprep.mubr.f32.mxu0 %v2055_v22 }
 0x1d5   : > { %1205 = vmatmul.mubr.f32.gmra.mrb[24].mxu0 %v955_v37 }
 0x1d6   : > { %1210 = vmatprep.mubr.f32.mxu0 %v2055_v22 }
 0x1d9   : > { %1211 = vmatmul.mubr.f32.gmra.mrb[26].mxu0 %v956_v36 }
 0x1da   : > { %1216 = vmatprep.mubr.f32.mxu0 %v2055_v22 }
 0x1dd   : > { %1217 = vmatmul.mubr.f32.gmra.mrb[28].mxu0 %v957_v43 }
 0x1de   : > { %1222 = vmatprep.mubr.f32.mxu0 %v2055_v22  ;;  %v1900_v22 = vpack.c.bf16 %v1055_v48, %v1054_v47 }
 0x1e0   : > { %1901 = vmatprep.subr.bf16.mxu1 %v1900_v22 }
 0x1e1   : > { %1223 = vmatmul.mubr.f32.gmra.mrb[30].mxu0 %v958_v42  ;;  %1903 = vmatpush3.bf16.msra.mxu1 %v1902_v51 }
 0x228   : > { %v1134_v59 = vpop.f32.mrb[0].mxu0 }
 0x229   : > { %v1135_v60 = vadd.f32 %v1134_v59, %v2541_v57  ;;  %v1136_v61 = vpop.f32.mrb[1].mxu0 }
 0x22a   : > { %v1137_v62 = vadd.f32 %v1136_v61, %v2543_v58 }
 0x22b   : > { %v1229_v1 = vmax.f32 %v1135_v60, 0.0 }
 0x22c   : > { %v1140_v63 = vpop.f32.mrb[2].mxu0  ;;  %v1230_v0 = vmax.f32 %v1137_v62, 0.0 }
 0x22d   : > { %v1141_v2 = vadd.f32 %v1140_v63, %v2541_v57  ;;  %v1142_v3 = vpop.f32.mrb[3].mxu0 }
 0x22e   : > { %v1143_v4 = vadd.f32 %v1142_v3, %v2543_v58  ;;  %1331 = vmatprep.mubr.f32.mxu1 %v1230_v0 }
 0x22f   : > { %1332 = vmatmul.mubr.f32.vlgmr.msra.gmra.mrb[0].mxu1 %v1229_v1  ;;  %v1231_v7 = vmax.f32 %v1141_v2, 0.0 }
 0x230   : > { %v1232_v5 = vmax.f32 %v1143_v4, 0.0  ;;  %v1146_v6 = vpop.f32.mrb[4].mxu0 }
 0x231   : > { %v1147_v8 = vadd.f32 %v1146_v6, %v2541_v57  ;;  %v1148_v9 = vpop.f32.mrb[5].mxu0 }
 0x232   : > { %v1149_v10 = vadd.f32 %v1148_v9, %v2543_v58  ;;  %1336 = vmatprep.mubr.f32.mxu1 %v1232_v5 }
 0x233   : > { %1337 = vmatmul.mubr.f32.gmra.mrb[2].mxu1 %v1231_v7  ;;  %v1233_v13 = vmax.f32 %v1147_v8, 0.0 }
 0x234   : > { %v1234_v11 = vmax.f32 %v1149_v10, 0.0  ;;  %v1152_v12 = vpop.f32.mrb[6].mxu0 }
 0x235   : > { %v1153_v14 = vadd.f32 %v1152_v12, %v2541_v57  ;;  %v1154_v15 = vpop.f32.mrb[7].mxu0 }
 0x236   : > { %v1155_v16 = vadd.f32 %v1154_v15, %v2543_v58  ;;  %1341 = vmatprep.mubr.f32.mxu1 %v1234_v11 }
 0x237   : > { %1342 = vmatmul.mubr.f32.gmra.mrb[4].mxu1 %v1233_v13  ;;  %v1235_v19 = vmax.f32 %v1153_v14, 0.0 }
 0x238   : > { %v1236_v17 = vmax.f32 %v1155_v16, 0.0  ;;  %v1158_v18 = vpop.f32.mrb[8].mxu0 }
 0x239   : > { %v1159_v20 = vadd.f32 %v1158_v18, %v2541_v57  ;;  %v1160_v21 = vpop.f32.mrb[9].mxu0 }
 0x23a   : > { %v1161_v23 = vadd.f32 %v1160_v21, %v2543_v58  ;;  %1346 = vmatprep.mubr.f32.mxu1 %v1236_v17 }
 0x23b   : > { %1347 = vmatmul.mubr.f32.gmra.mrb[6].mxu1 %v1235_v19  ;;  %v1237_v26 = vmax.f32 %v1159_v20, 0.0 }
 0x23c   : > { %v1238_v24 = vmax.f32 %v1161_v23, 0.0  ;;  %v1164_v25 = vpop.f32.mrb[10].mxu0 }
 0x23d   : > { %v1165_v27 = vadd.f32 %v1164_v25, %v2541_v57  ;;  %v1166_v28 = vpop.f32.mrb[11].mxu0 }
 0x23e   : > { %v1167_v29 = vadd.f32 %v1166_v28, %v2543_v58  ;;  %1351 = vmatprep.mubr.f32.mxu1 %v1238_v24 }
 0x23f   : > { %1352 = vmatmul.mubr.f32.gmra.mrb[8].mxu1 %v1237_v26  ;;  %v1239_v32 = vmax.f32 %v1165_v27, 0.0 }
 0x240   : > { %v1240_v30 = vmax.f32 %v1167_v29, 0.0 }
 0x242   : > { %1356 = vmatprep.mubr.f32.mxu1 %v1240_v30 }
 0x243   : > { %1357 = vmatmul.mubr.f32.gmra.mrb[10].mxu1 %v1239_v32  ;;  %v2580_v32 = vld [vmem:[%s2742_s6] ss:$0 sm:$0xff] }
 0x290   : > { %v1170_v31 = vpop.f32.mrb[12].mxu0 }
 0x291   : > { %v1171_v33 = vadd.f32 %v1170_v31, %v2541_v57  ;;  %v1172_v34 = vpop.f32.mrb[13].mxu0 }
 0x292   : > { %v1173_v35 = vadd.f32 %v1172_v34, %v2543_v58 }
 0x293   : > { %v1241_v38 = vmax.f32 %v1171_v33, 0.0 }
 0x294   : > { %v1242_v36 = vmax.f32 %v1173_v35, 0.0  ;;  %v1176_v37 = vpop.f32.mrb[14].mxu0 }
 0x295   : > { %v1177_v39 = vadd.f32 %v1176_v37, %v2541_v57  ;;  %v1178_v40 = vpop.f32.mrb[15].mxu0 }
 0x296   : > { %v1179_v41 = vadd.f32 %v1178_v40, %v2543_v58  ;;  %1361 = vmatprep.mubr.f32.mxu1 %v1242_v36 }
 0x297   : > { %1362 = vmatmul.mubr.f32.gmra.mrb[12].mxu1 %v1241_v38  ;;  %v1243_v44 = vmax.f32 %v1177_v39, 0.0 }
 0x298   : > { %v1244_v42 = vmax.f32 %v1179_v41, 0.0  ;;  %v1182_v43 = vpop.f32.mrb[16].mxu0 }
 0x299   : > { %v1183_v45 = vadd.f32 %v1182_v43, %v2541_v57  ;;  %v1184_v46 = vpop.f32.mrb[17].mxu0 }
 0x29a   : > { %v1185_v47 = vadd.f32 %v1184_v46, %v2543_v58  ;;  %1366 = vmatprep.mubr.f32.mxu1 %v1244_v42 }
 0x29b   : > { %1367 = vmatmul.mubr.f32.gmra.mrb[14].mxu1 %v1243_v44  ;;  %v1245_v49 = vmax.f32 %v1183_v45, 0.0 }
 0x29c   : > { %v1246_v48 = vmax.f32 %v1185_v47, 0.0  ;;  %v1188_v22 = vpop.f32.mrb[18].mxu0 }
 0x29d   : > { %v1189_v50 = vadd.f32 %v1188_v22, %v2541_v57  ;;  %v1190_v51 = vpop.f32.mrb[19].mxu0 }
 0x29e   : > { %v1191_v52 = vadd.f32 %v1190_v51, %v2543_v58  ;;  %1371 = vmatprep.mubr.f32.mxu1 %v1246_v48 }
 0x29f   : > { %1372 = vmatmul.mubr.f32.gmra.mrb[16].mxu1 %v1245_v49  ;;  %v1247_v55 = vmax.f32 %v1189_v50, 0.0 }
 0x2a0   : > { %v1248_v53 = vmax.f32 %v1191_v52, 0.0  ;;  %v1194_v54 = vpop.f32.mrb[20].mxu0 }
 0x2a1   : > { %v1195_v56 = vadd.f32 %v1194_v54, %v2541_v57  ;;  %v1196_v59 = vpop.f32.mrb[21].mxu0 }
 0x2a2   : > { %v1197_v60 = vadd.f32 %v1196_v59, %v2543_v58  ;;  %1376 = vmatprep.mubr.f32.mxu1 %v1248_v53 }
 0x2a3   : > { %1377 = vmatmul.mubr.f32.gmra.mrb[18].mxu1 %v1247_v55  ;;  %v1249_v63 = vmax.f32 %v1195_v56, 0.0 }
 0x2a4   : > { %v1250_v61 = vmax.f32 %v1197_v60, 0.0  ;;  %v1200_v62 = vpop.f32.mrb[22].mxu0 }
 0x2a5   : > { %v1201_v0 = vadd.f32 %v1200_v62, %v2541_v57  ;;  %v1202_v1 = vpop.f32.mrb[23].mxu0 }
 0x2a6   : > { %v1203_v2 = vadd.f32 %v1202_v1, %v2543_v58  ;;  %1381 = vmatprep.mubr.f32.mxu1 %v1250_v61 }
 0x2a7   : > { %1382 = vmatmul.mubr.f32.gmra.mrb[20].mxu1 %v1249_v63  ;;  %v1251_v5 = vmax.f32 %v1201_v0, 0.0 }
 0x2a8   : > { %v1252_v3 = vmax.f32 %v1203_v2, 0.0  ;;  %v1206_v4 = vpop.f32.mrb[24].mxu0 }
 0x2a9   : > { %v1207_v6 = vadd.f32 %v1206_v4, %v2541_v57  ;;  %v1208_v7 = vpop.f32.mrb[25].mxu0 }
 0x2aa   : > { %v1209_v8 = vadd.f32 %v1208_v7, %v2543_v58  ;;  %1386 = vmatprep.mubr.f32.mxu1 %v1252_v3 }
 0x2ab   : > { %1387 = vmatmul.mubr.f32.gmra.mrb[22].mxu1 %v1251_v5  ;;  %v1253_v11 = vmax.f32 %v1207_v6, 0.0 }
 0x2ac   : > { %v1254_v9 = vmax.f32 %v1209_v8, 0.0  ;;  %v1212_v10 = vpop.f32.mrb[26].mxu0 }
 0x2ad   : > { %v1213_v12 = vadd.f32 %v1212_v10, %v2541_v57  ;;  %v1214_v13 = vpop.f32.mrb[27].mxu0 }
 0x2ae   : > { %v1215_v14 = vadd.f32 %v1214_v13, %v2543_v58  ;;  %1391 = vmatprep.mubr.f32.mxu1 %v1254_v9 }
 0x2af   : > { %1392 = vmatmul.mubr.f32.gmra.mrb[24].mxu1 %v1253_v11  ;;  %v1255_v17 = vmax.f32 %v1213_v12, 0.0 }
 0x2b0   : > { %v1256_v15 = vmax.f32 %v1215_v14, 0.0  ;;  %v1218_v16 = vpop.f32.mrb[28].mxu0 }
 0x2b1   : > { %v1219_v18 = vadd.f32 %v1218_v16, %v2541_v57  ;;  %v1220_v19 = vpop.f32.mrb[29].mxu0 }
 0x2b2   : > { %v1221_v20 = vadd.f32 %v1220_v19, %v2543_v58  ;;  %1396 = vmatprep.mubr.f32.mxu1 %v1256_v15 }
 0x2b3   : > { %1397 = vmatmul.mubr.f32.gmra.mrb[26].mxu1 %v1255_v17  ;;  %v1257_v24 = vmax.f32 %v1219_v18, 0.0 }
 0x2b4   : > { %v1258_v21 = vmax.f32 %v1221_v20, 0.0  ;;  %v1224_v23 = vpop.f32.mrb[30].mxu0 }
 0x2b5   : > { %v1225_v25 = vadd.f32 %v1224_v23, %v2541_v57  ;;  %v1226_v26 = vpop.f32.mrb[31].mxu0 }
 0x2b6   : > { %v1227_v27 = vadd.f32 %v1226_v26, %v2543_v58  ;;  %1401 = vmatprep.mubr.f32.mxu1 %v1258_v21 }
 0x2b7   : > { %1402 = vmatmul.mubr.f32.gmra.mrb[28].mxu1 %v1257_v24  ;;  %v1259_v29 = vmax.f32 %v1225_v25, 0.0 }
 0x2b8   : > { %v1260_v28 = vmax.f32 %v1227_v27, 0.0 }
 0x2ba   : > { %1406 = vmatprep.mubr.f32.mxu1 %v1260_v28 }
 0x2bb   : > { %1407 = vmatmul.mubr.f32.gmra.mrb[30].mxu1 %v1259_v29 }
 0x302   : > { %v1760_v30 = vpop.f32.mrb[0].mxu1 }
 0x303   : > { %v1761_v31 = vpop.f32.mrb[1].mxu1 }
 0x304   : > { %v1762_v33 = vadd.f32 %v1761_v31, %v1760_v30 }
 0x306   : > { %v1763_v34 = vpop.f32.mrb[2].mxu1  ;;  %v2583_v57 = vadd.f32 %v1762_v33, %v2580_v32 }
 0x307   : > { %v1764_v35 = vpop.f32.mrb[3].mxu1 }
 0x308   : > { %v1765_v58 = vadd.f32 %v1764_v35, %v1763_v34  ;;  %1412 = vadd.xlane.f32.xlu0 %v2583_v57  ;;  %v975_v34 = vld [vmem:[%s2202_s20] sm:$0xff] }
 0x30a   : > { %v1766_v36 = vpop.f32.mrb[4].mxu1  ;;  %v2587_v37 = vadd.f32 %v1765_v58, %v2580_v32  ;;  %v976_v58 = vld [vmem:[%s2202_s20 + $0x8] sm:$0xff] }
 0x30b   : > { %v1767_v38 = vpop.f32.mrb[5].mxu1 }
 0x30c   : > { %v1768_v39 = vadd.f32 %v1767_v38, %v1766_v36  ;;  %1414 = vadd.xlane.f32.xlu1 %v2587_v37  ;;  %v977_v38 = vld [vmem:[%s2202_s20 + $0x10] sm:$0xff] }
 0x30e   : > { %v1769_v40 = vpop.f32.mrb[6].mxu1  ;;  %v2591_v41 = vadd.f32 %v1768_v39, %v2580_v32  ;;  %v978_v39 = vld [vmem:[%s2202_s20 + $0x18] sm:$0xff] }
 0x30f   : > { %v1770_v42 = vpop.f32.mrb[7].mxu1 }
 0x310   : > { %v1771_v43 = vadd.f32 %v1770_v42, %v1769_v40  ;;  %1416 = vadd.xlane.f32.xlu0 %v2591_v41  ;;  %v979_v40 = vld [vmem:[%s2202_s20 + $0x20] sm:$0xff]  ;;  %v981_v42 = vld [vmem:[%s2202_s20 + $0x30] sm:$0xff] }
 0x312   : > { %v1772_v44 = vpop.f32.mrb[8].mxu1  ;;  %v2595_v45 = vadd.f32 %v1771_v43, %v2580_v32  ;;  %v982_v43 = vld [vmem:[%s2202_s20 + $0x38] sm:$0xff] }
 0x313   : > { %v1773_v46 = vpop.f32.mrb[9].mxu1 }
 0x314   : > { %v1774_v47 = vadd.f32 %v1773_v46, %v1772_v44  ;;  %1418 = vadd.xlane.f32.xlu0 %v2595_v45  ;;  %v983_v44 = vld [vmem:[%s2202_s20 + $0x40] sm:$0xff]  ;;  %v2657_v46 = vld [vmem:[%s2202_s20 + $0x48] sm:$0xff] }
 0x316   : > { %v1775_v48 = vpop.f32.mrb[10].mxu1  ;;  %v2599_v22 = vadd.f32 %v1774_v47, %v2580_v32 }
 0x317   : > { %v1776_v49 = vpop.f32.mrb[11].mxu1 }
 0x318   : > { %v1777_v50 = vadd.f32 %v1776_v49, %v1775_v48  ;;  %1420 = vadd.xlane.f32.xlu1 %v2599_v22  ;;  %v2660_v49 = vld [vmem:[%s2202_s20 + $0x50] sm:$0xff] }
 0x31a   : > { %v2603_v52 = vadd.f32 %v1777_v50, %v2580_v32  ;;  %v2666_v50 = vld [vmem:[%s2202_s20 + $0x60] sm:$0xff] }
 0x31c   : > { %1422 = vadd.xlane.f32.xlu0 %v2603_v52 }
 0x36a   : > { %v1778_v51 = vpop.f32.mrb[12].mxu1 }
 0x36b   : > { %v1779_v53 = vpop.f32.mrb[13].mxu1 }
 0x36c   : > { %v1780_v54 = vadd.f32 %v1779_v53, %v1778_v51  ;;  %v2669_v51 = vld [vmem:[%s2202_s20 + $0x68] sm:$0xff]  ;;  %v2672_v53 = vld [vmem:[%s2202_s20 + $0x70] sm:$0xff] }
 0x36e   : > { %v1781_v55 = vpop.f32.mrb[14].mxu1  ;;  %v2607_v56 = vadd.f32 %v1780_v54, %v2580_v32  ;;  %v2675_v54 = vld [vmem:[%s2202_s20 + $0x78] sm:$0xff] }
 0x36f   : > { %v1782_v59 = vpop.f32.mrb[15].mxu1 }
 0x370   : > { %v1783_v60 = vadd.f32 %v1782_v59, %v1781_v55  ;;  %1424 = vadd.xlane.f32.xlu1 %v2607_v56 }
 0x372   : > { %v1784_v61 = vpop.f32.mrb[16].mxu1  ;;  %v2611_v62 = vadd.f32 %v1783_v60, %v2580_v32 }
 0x373   : > { %v1785_v63 = vpop.f32.mrb[17].mxu1 }
 0x374   : > { %v1786_v0 = vadd.f32 %v1785_v63, %v1784_v61  ;;  %1426 = vadd.xlane.f32.xlu0 %v2611_v62 }
 0x376   : > { %v1787_v1 = vpop.f32.mrb[18].mxu1  ;;  %v2615_v2 = vadd.f32 %v1786_v0, %v2580_v32 }
 0x377   : > { %v1788_v3 = vpop.f32.mrb[19].mxu1 }
 0x378   : > { %v1789_v4 = vadd.f32 %v1788_v3, %v1787_v1  ;;  %1428 = vadd.xlane.f32.xlu1 %v2615_v2 }
 0x37a   : > { %v1790_v5 = vpop.f32.mrb[20].mxu1  ;;  %v2619_v6 = vadd.f32 %v1789_v4, %v2580_v32 }
 0x37b   : > { %v1791_v7 = vpop.f32.mrb[21].mxu1 }
 0x37c   : > { %v1792_v8 = vadd.f32 %v1791_v7, %v1790_v5  ;;  %1430 = vadd.xlane.f32.xlu0 %v2619_v6 }
 0x37e   : > { %v1793_v9 = vpop.f32.mrb[22].mxu1  ;;  %v2623_v10 = vadd.f32 %v1792_v8, %v2580_v32 }
 0x37f   : > { %v1794_v11 = vpop.f32.mrb[23].mxu1 }
 0x380   : > { %v1795_v12 = vadd.f32 %v1794_v11, %v1793_v9  ;;  %1432 = vadd.xlane.f32.xlu1 %v2623_v10 }
 0x382   : > { %v1796_v13 = vpop.f32.mrb[24].mxu1  ;;  %v2627_v14 = vadd.f32 %v1795_v12, %v2580_v32 }
 0x383   : > { %v1797_v15 = vpop.f32.mrb[25].mxu1 }
 0x384   : > { %v1798_v16 = vadd.f32 %v1797_v15, %v1796_v13  ;;  %1434 = vadd.xlane.f32.xlu0 %v2627_v14 }
 0x386   : > { %v1799_v17 = vpop.f32.mrb[26].mxu1  ;;  %v2631_v18 = vadd.f32 %v1798_v16, %v2580_v32 }
 0x387   : > { %v1800_v19 = vpop.f32.mrb[27].mxu1 }
 0x388   : > { %v1801_v20 = vadd.f32 %v1800_v19, %v1799_v17  ;;  %1436 = vadd.xlane.f32.xlu1 %v2631_v18 }
 0x38a   : > { %v1802_v21 = vpop.f32.mrb[28].mxu1  ;;  %v2635_v23 = vadd.f32 %v1801_v20, %v2580_v32 }
 0x38b   : > { %v1803_v24 = vpop.f32.mrb[29].mxu1 }
 0x38c   : > { %v1804_v25 = vadd.f32 %v1803_v24, %v1802_v21  ;;  %1438 = vadd.xlane.f32.xlu0 %v2635_v23 }
 0x38e   : > { %v1805_v26 = vpop.f32.mrb[30].mxu1  ;;  %v2639_v27 = vadd.f32 %v1804_v25, %v2580_v32 }
 0x38f   : > { %v1806_v28 = vpop.f32.mrb[31].mxu1 }
 0x390   : > { %v1807_v29 = vadd.f32 %v1806_v28, %v1805_v26  ;;  %1440 = vadd.xlane.f32.xlu1 %v2639_v27 }
 0x392   : > { %v2643_v30 = vadd.f32 %v1807_v29, %v2580_v32  ;;  %v980_v32 = vld [vmem:[%s2202_s20 + $0x28] sm:$0xff] }
 0x394   : > { %1442 = vadd.xlane.f32.xlu0 %v2643_v30 }
 0x395   : > { %v1413_v31 = vpop.xlane.xlu0 %1412 }
 0x396   : > { %v1444_v33 = vmul.f32 0.0625, %v1413_v31 }
 0x398   : > { %v1460_v35 = vsub.f32 %v2583_v57, %v1444_v33  ;;  %v2663_v57 = vld [vmem:[%s2202_s20 + $0x58] sm:$0xff] }
 0x399   : > { %v1415_v36 = vpop.xlane.xlu1 %1414 }
 0x39a   : > { %v1476_v47 = vmul.f32 15.0, %v1460_v35  ;;  %v1445_v48 = vmul.f32 0.0625, %v1415_v36 }
 0x39c   : > { %v1492_v55 = vadd.f32 %v1476_v47, %v975_v34  ;;  %v1461_v59 = vsub.f32 %v2587_v37, %v1445_v48 }
 0x39d   : > { %v1417_v60 = vpop.xlane.xlu0 %1416 }
 0x39e   : > { %v1477_v61 = vmul.f32 15.0, %v1461_v59  ;;  %v1446_v63 = vmul.f32 0.0625, %v1417_v60  ;;  %1508 = vst [vmem:[%s2212_s27] sm:$0xff] %v1492_v55 }
 0x3a0   : > { %v1493_v0 = vadd.f32 %v1477_v61, %v976_v58  ;;  %v1462_v1 = vsub.f32 %v2591_v41, %v1446_v63 }
 0x3a1   : > { %v1419_v3 = vpop.xlane.xlu0 %1418 }
 0x3a2   : > { %v1478_v4 = vmul.f32 15.0, %v1462_v1  ;;  %v1447_v5 = vmul.f32 0.0625, %v1419_v3  ;;  %1509 = vst [vmem:[%s2212_s27 + $0x8] sm:$0xff] %v1493_v0 }
 0x3a4   : > { %v1494_v7 = vadd.f32 %v1478_v4, %v977_v38  ;;  %v1463_v8 = vsub.f32 %v2595_v45, %v1447_v5 }
 0x3a5   : > { %v1421_v9 = vpop.xlane.xlu1 %1420 }
 0x3a6   : > { %v1479_v11 = vmul.f32 15.0, %v1463_v8  ;;  %v1448_v37 = vmul.f32 0.0625, %v1421_v9  ;;  %1510 = vst [vmem:[%s2212_s27 + $0x10] sm:$0xff] %v1494_v7 }
 0x3a8   : > { %v1495_v12 = vadd.f32 %v1479_v11, %v978_v39  ;;  %v1464_v13 = vsub.f32 %v2599_v22, %v1448_v37 }
 0x3a9   : > { %v1423_v15 = vpop.xlane.xlu0 %1422 }
 0x3aa   : > { %v1480_v16 = vmul.f32 15.0, %v1464_v13  ;;  %v1449_v41 = vmul.f32 0.0625, %v1423_v15  ;;  %1511 = vst [vmem:[%s2212_s27 + $0x18] sm:$0xff] %v1495_v12 }
 0x3ac   : > { %v1496_v17 = vadd.f32 %v1480_v16, %v979_v40  ;;  %v1465_v19 = vsub.f32 %v2603_v52, %v1449_v41 }
 0x3ae   : > { %v1481_v21 = vmul.f32 15.0, %v1465_v19  ;;  %1512 = vst [vmem:[%s2212_s27 + $0x20] sm:$0xff] %v1496_v17 }
 0x3b0   : > { %v1497_v24 = vadd.f32 %v1481_v21, %v980_v32 }
 0x3b2   : > { %1513 = vst [vmem:[%s2212_s27 + $0x28] sm:$0xff] %v1497_v24 }
 0x3fd   : > { %v1425_v20 = vpop.xlane.xlu1 %1424 }
 0x3fe   : > { %v1450_v45 = vmul.f32 0.0625, %v1425_v20 }
 0x400   : > { %v1466_v25 = vsub.f32 %v2607_v56, %v1450_v45 }
 0x401   : > { %v1427_v26 = vpop.xlane.xlu0 %1426 }
 0x402   : > { %v1482_v28 = vmul.f32 15.0, %v1466_v25  ;;  %v1451_v22 = vmul.f32 0.0625, %v1427_v26 }
 0x404   : > { %v1498_v29 = vadd.f32 %v1482_v28, %v981_v42  ;;  %v1467_v31 = vsub.f32 %v2611_v62, %v1451_v22 }
 0x405   : > { %v1429_v33 = vpop.xlane.xlu1 %1428 }
 0x406   : > { %v1483_v34 = vmul.f32 15.0, %v1467_v31  ;;  %v1452_v52 = vmul.f32 0.0625, %v1429_v33  ;;  %1514 = vst [vmem:[%s2212_s27 + $0x30] sm:$0xff] %v1498_v29 }
 0x408   : > { %v1499_v35 = vadd.f32 %v1483_v34, %v982_v43  ;;  %v1468_v58 = vsub.f32 %v2615_v2, %v1452_v52 }
 0x409   : > { %v1431_v36 = vpop.xlane.xlu0 %1430 }
 0x40a   : > { %v1484_v38 = vmul.f32 15.0, %v1468_v58  ;;  %v1453_v56 = vmul.f32 0.0625, %v1431_v36  ;;  %1515 = vst [vmem:[%s2212_s27 + $0x38] sm:$0xff] %v1499_v35 }
 0x40c   : > { %v1500_v39 = vadd.f32 %v1484_v38, %v983_v44  ;;  %v1469_v40 = vsub.f32 %v2619_v6, %v1453_v56 }
 0x40d   : > { %v1433_v32 = vpop.xlane.xlu1 %1432 }
 0x40e   : > { %v1485_v42 = vmul.f32 15.0, %v1469_v40  ;;  %v1454_v62 = vmul.f32 0.0625, %v1433_v32  ;;  %1516 = vst [vmem:[%s2212_s27 + $0x40] sm:$0xff] %v1500_v39 }
 0x410   : > { %v1501_v47 = vadd.f32 %v1485_v42, %v2657_v46  ;;  %v1470_v48 = vsub.f32 %v2623_v10, %v1454_v62 }
 0x411   : > { %v1435_v43 = vpop.xlane.xlu0 %1434 }
 0x412   : > { %v1486_v2 = vmul.f32 15.0, %v1470_v48  ;;  %v1455_v55 = vmul.f32 0.0625, %v1435_v43  ;;  %1517 = vst [vmem:[%s2212_s27 + $0x48] sm:$0xff] %v1501_v47 }
 0x414   : > { %v1502_v59 = vadd.f32 %v1486_v2, %v2660_v49  ;;  %v1471_v44 = vsub.f32 %v2627_v14, %v1455_v55 }
 0x415   : > { %v1437_v6 = vpop.xlane.xlu1 %1436 }
 0x416   : > { %v1487_v60 = vmul.f32 15.0, %v1471_v44  ;;  %v1456_v61 = vmul.f32 0.0625, %v1437_v6  ;;  %1518 = vst [vmem:[%s2212_s27 + $0x50] sm:$0xff] %v1502_v59 }
 0x418   : > { %v1503_v63 = vadd.f32 %v1487_v60, %v2663_v57  ;;  %v1472_v46 = vsub.f32 %v2631_v18, %v1456_v61 }
 0x419   : > { %v1439_v10 = vpop.xlane.xlu0 %1438 }
 0x41a   : > { %v1488_v0 = vmul.f32 15.0, %v1472_v46  ;;  %v1457_v1 = vmul.f32 0.0625, %v1439_v10  ;;  %1519 = vst [vmem:[%s2212_s27 + $0x58] sm:$0xff] %v1503_v63 }
 0x41c   : > { %v1504_v3 = vadd.f32 %v1488_v0, %v2666_v50  ;;  %v1473_v49 = vsub.f32 %v2635_v23, %v1457_v1 }
 0x41d   : > { %v1441_v14 = vpop.xlane.xlu1 %1440 }
 0x41e   : > { %v1489_v4 = vmul.f32 15.0, %v1473_v49  ;;  %v1458_v5 = vmul.f32 0.0625, %v1441_v14  ;;  %1520 = vst [vmem:[%s2212_s27 + $0x60] sm:$0xff] %v1504_v3 }
 0x420   : > { %v1505_v7 = vadd.f32 %v1489_v4, %v2669_v51  ;;  %v1474_v57 = vsub.f32 %v2639_v27, %v1458_v5 }
 0x421   : > { %v1443_v8 = vpop.xlane.xlu0 %1442 }
 0x422   : > { %v1490_v18 = vmul.f32 15.0, %v1474_v57  ;;  %1521 = vst [vmem:[%s2212_s27 + $0x68] sm:$0xff] %v1505_v7  ;;  %v1459_v9 = vmul.f32 0.0625, %v1443_v8 }
 0x424   : > { %v1506_v11 = vadd.f32 %v1490_v18, %v2672_v53  ;;  %v1475_v37 = vsub.f32 %v2643_v30, %v1459_v9 }
 0x426   : > { %1522 = vst [vmem:[%s2212_s27 + $0x70] sm:$0xff] %v1506_v11  ;;  %v1491_v50 = vmul.f32 15.0, %v1475_v37 }
 0x428   : > { %v1507_v23 = vadd.f32 %v1491_v50, %v2675_v54 }
 0x42a   : > { %1523 = vst [vmem:[%s2212_s27 + $0x78] sm:$0xff] %v1507_v23 }
 0x42b PF: > { %s20_s15 = sadd.s32 1, %s2051_s15   ;;  %s2752_s20 = sld [smem:[#allocation3_spill]] }
 0x42c   : > { %p17_p0 = scmp.ge.s32.totalorder %s20_s15, 6   ;;  %s2753_s0 = sld [smem:[#allocation4_spill]] }
 0x42d   : > { %s2754_s30 = smov %s2031_s10  ;;  %s2755_s10 = smov %s2157_s22 }
 0x42e   : > { %s2756_s11 = smov %s2043_s13  ;;  %s2757_s12 = smov %s2047_s14 }
 0x42f   :  { %19 = sbr.rel (!%p17_p0) target bundleno = 6 (0x6), region = 157 }
 0x431   : > { %s2758_s13 = smov %s2752_s20 }
 0x432   : > { %s2759_s14 = smov %s2753_s0 }

</bundles_post_ra>
